<compile_context>
chip_gen: v5e
topology: v5e:2x2
jax: 0.10.0
libtpu: 0.0.40
codegen_flags: <defaults>
</compile_context>

<pallas_src>
import functools

import jax
import jax.numpy as jnp
from jax.experimental import pallas as pl
from jax.experimental.pallas import tpu as pltpu

LN_EPS = 1e-5   # PyTorch nn.LayerNorm default
LANE = 128
SUBLANE = 8


def _round_up(x, m):
    return (x + m - 1) // m * m


def _tpu_generation():
    """Best-effort TPU generation from device_kind; 0 if unknown."""
    try:
        kind = jax.devices()[0].device_kind.lower()
    except Exception:
        return 0
    for g in (7, 6, 5, 4, 3, 2):
        if f"v{g}" in kind or f"{g}x" in kind:
            return g
    return 0


def _pad_dim(d, gen):
    # v6e/v7x MXUs are 256-wide; use 256-granularity once the dim exceeds one
    # lane group.  128 otherwise (and always on v5e's 128x128 MXU).
    mult = 2 * LANE if (gen >= 6 and d > LANE) else LANE
    return _round_up(d, mult)


# --------------------------------------------------------------------------
# Kernel
# --------------------------------------------------------------------------
def actor_kernel(x_ref,
                 w1_ref, b1_ref, g1_ref, be1_ref,
                 w2_ref, b2_ref, g2_ref, be2_ref,
                 w3_ref, b3_ref,
                 o_ref, *, elem_dtype):
    def layernorm_relu(h, g_ref, be_ref):
        # Centered two-pass statistics in f32 (parity with torch LayerNorm);
        # normalize/scale/shift/ReLU in elem_dtype (bf16 on v6e/v7x halves the
        # dominant VPU work; f32 on v5e which has no bf16 VPU).
        mu = jnp.mean(h, axis=-1, keepdims=True)
        d = h - mu
        var = jnp.mean(d * d, axis=-1, keepdims=True)
        inv = jax.lax.rsqrt(var + LN_EPS)
        y = d.astype(elem_dtype) * inv.astype(elem_dtype) * g_ref[...] + be_ref[...]
        return jnp.maximum(y, 0)

    # fc1: Linear + LayerNorm + ReLU  (bf16 matmul, f32 accumulate)
    x = x_ref[...].astype(jnp.bfloat16)
    h1 = jnp.dot(x, w1_ref[...], preferred_element_type=jnp.float32) + b1_ref[...]
    h1 = layernorm_relu(h1, g1_ref, be1_ref)

    # fc2: Linear + LayerNorm + ReLU
    h2 = jnp.dot(h1.astype(jnp.bfloat16), w2_ref[...],
                 preferred_element_type=jnp.float32) + b2_ref[...]
    h2 = layernorm_relu(h2, g2_ref, be2_ref)

    # out: Linear + Tanh  (output lanes padded to a full lane multiple)
    h3 = jnp.dot(h2.astype(jnp.bfloat16), w3_ref[...],
                 preferred_element_type=jnp.float32) + b3_ref[...]
    o_ref[...] = jnp.tanh(h3).astype(o_ref.dtype)


# --------------------------------------------------------------------------
# One-time weight preparation (hoisted out of the per-call path)
# --------------------------------------------------------------------------
def prepare_params(params, *, elem_dtype=None, gen=None):
    """Pad + cast weights once.  Returns (prepared_params, meta)."""
    if gen is None:
        gen = _tpu_generation()
    if elem_dtype is None:
        # bf16 elementwise only where the VPU is bf16-native (v6e / v7x).
        elem_dtype = jnp.bfloat16 if gen >= 6 else jnp.float32

    F = params["w1"].shape[0]
    A = params["w3"].shape[1]
    F_pad = _pad_dim(F, gen)
    A_pad = _pad_dim(A, gen)

    prep = dict(
        w1=jnp.pad(params["w1"], ((0, F_pad - F), (0, 0))).astype(jnp.bfloat16),
        b1=params["b1"].astype(jnp.float32),
        g1=params["g1"].astype(elem_dtype),
        be1=params["be1"].astype(elem_dtype),
        w2=params["w2"].astype(jnp.bfloat16),
        b2=params["b2"].astype(jnp.float32),
        g2=params["g2"].astype(elem_dtype),
        be2=params["be2"].astype(elem_dtype),
        w3=jnp.pad(params["w3"], ((0, 0), (0, A_pad - A))).astype(jnp.bfloat16),
        b3=jnp.pad(params["b3"], ((0, 0), (0, A_pad - A))).astype(jnp.float32),
    )
    meta = dict(F=F, F_pad=F_pad, A=A, A_pad=A_pad,
                elem_dtype=elem_dtype, gen=gen)
    return prep, meta


# --------------------------------------------------------------------------
# Forward wrapper
# --------------------------------------------------------------------------
def actor_forward(state, prep, meta, *, block_b=512):
    """state: (B, num_feature) float32 -> (B, num_action) float32.

    block_b is the batch tile; sweep 256..1024 for large batches.
    """
    B, F = state.shape
    assert F == meta["F"], "state feature dim does not match prepared params"
    gen = meta["gen"]
    F_pad, A_pad, A = meta["F_pad"], meta["A_pad"], meta["A"]

    B8 = _round_up(B, SUBLANE)
    TB = _round_up(min(block_b, B8), SUBLANE)
    if gen >= 7 and B8 >= 2 * SUBLANE:
        # v7x has 2 TensorCores: keep >=2 grid steps so the "parallel" batch
        # axis can be sharded across both cores.
        TB = min(TB, _round_up(B8 // 2, SUBLANE))
    B_pad = _round_up(B, TB)

    # Per-call work: pad only the state (weights were prepared once).
    x = jnp.pad(state.astype(jnp.float32), ((0, B_pad - B), (0, F_pad - F)))

    weights = (prep["w1"], prep["b1"], prep["g1"], prep["be1"],
               prep["w2"], prep["b2"], prep["g2"], prep["be2"],
               prep["w3"], prep["b3"])

    cp_kwargs = dict(dimension_semantics=("parallel",))
    if 2 <= gen <= 6:
        # >=128 MiB physical VMEM on these generations; raise the scoped limit
        # so large-TB f32 intermediates never hit the 16/32 MiB default.
        cp_kwargs["vmem_limit_bytes"] = 64 * 1024 * 1024
    compiler_params = pltpu.CompilerParams(**cp_kwargs)

    kernel = functools.partial(actor_kernel, elem_dtype=meta["elem_dtype"])

    def run(single_buffer_weights):
        if single_buffer_weights:
            # Constant index_map -> DMA'd once; Buffered(1) drops the dead
            # second buffer, halving the resident-weight VMEM footprint.
            def resident(a):
                return pl.BlockSpec(a.shape, lambda i: (0, 0),
                                    pipeline_mode=pl.Buffered(1))
        else:
            def resident(a):
                return pl.BlockSpec(a.shape, lambda i: (0, 0))

        in_specs = [pl.BlockSpec((TB, F_pad), lambda i: (i, 0))]
        in_specs += [resident(a) for a in weights]

        return pl.pallas_call(
            kernel,
            out_shape=jax.ShapeDtypeStruct((B_pad, A_pad), jnp.float32),
            grid=(B_pad // TB,),
            in_specs=in_specs,
            out_specs=pl.BlockSpec((TB, A_pad), lambda i: (i, 0)),
            compiler_params=compiler_params,
        )(x, *weights)

    try:
        out = run(True)
    except Exception:
        # Fallback if this jax version rejects pipeline_mode=pl.Buffered(1).
        out = run(False)
    return out[:B, :A]


# --------------------------------------------------------------------------
# Params / reference
# --------------------------------------------------------------------------
def init_params(key, num_feature, num_action):
    """Deterministic synthetic init, PyTorch-style uniform bounds 1/sqrt(fan_in)."""
    ks = jax.random.split(key, 6)

    def lin(kw, kb, fan_in, fan_out):
        bound = 1.0 / jnp.sqrt(fan_in)
        w = jax.random.uniform(kw, (fan_in, fan_out), jnp.float32, -bound, bound)
        b = jax.random.uniform(kb, (1, fan_out), jnp.float32, -bound, bound)
        return w, b

    w1, b1 = lin(ks[0], ks[1], num_feature, 1024)
    w2, b2 = lin(ks[2], ks[3], 1024, 256)
    w3, b3 = lin(ks[4], ks[5], 256, num_action)
    return dict(
        w1=w1, b1=b1,
        g1=jnp.ones((1, 1024), jnp.float32), be1=jnp.zeros((1, 1024), jnp.float32),
        w2=w2, b2=b2,
        g2=jnp.ones((1, 256), jnp.float32), be2=jnp.zeros((1, 256), jnp.float32),
        w3=w3, b3=b3,
    )


def reference_forward(state, p):
    """Pure-JAX f32 reference mirroring the PyTorch module."""
    def ln(h, g, b):
        mu = jnp.mean(h, axis=-1, keepdims=True)
        var = jnp.mean((h - mu) ** 2, axis=-1, keepdims=True)
        return (h - mu) / jnp.sqrt(var + LN_EPS) * g + b
    h = jnp.maximum(ln(state @ p["w1"] + p["b1"], p["g1"], p["be1"]), 0.0)
    h = jnp.maximum(ln(h @ p["w2"] + p["b2"], p["g2"], p["be2"]), 0.0)
    return jnp.tanh(h @ p["w3"] + p["b3"])


if __name__ == "__main__":
    key = jax.random.PRNGKey(0)
    k_param, k_state = jax.random.split(key)

    batch = 2
    num_feature = 32
    num_action = 8

    params = init_params(k_param, num_feature, num_action)
    prep, meta = prepare_params(params)          # one-time weight prep

    state = jax.random.normal(k_state, (batch, num_feature), jnp.float32)

    out = actor_forward(state, prep, meta)
    out = jax.block_until_ready(out)

    ref = reference_forward(state, params)
    assert out.shape == (batch, num_action)
    # bf16 MXU inputs (+ bf16 LayerNorm/ReLU on v6e/v7x) with f32 accumulation
    # -> loosened tolerance vs the f32 reference.
    assert jnp.allclose(out, ref, atol=3e-2, rtol=0.0), "mismatch vs reference"

    print("KERNEL_OK")
</pallas_src>

<mosaic_0001>
module attributes {stable_mosaic.version = 11 : i64} {
  func.func @actor_kernel(%arg0: i32, %arg1: memref<8x128xf32, #tpu.memory_space<vmem>>, %arg2: memref<128x1024xbf16, #tpu.memory_space<vmem>>, %arg3: memref<1x1024xf32, #tpu.memory_space<vmem>>, %arg4: memref<1x1024xf32, #tpu.memory_space<vmem>>, %arg5: memref<1x1024xf32, #tpu.memory_space<vmem>>, %arg6: memref<1024x256xbf16, #tpu.memory_space<vmem>>, %arg7: memref<1x256xf32, #tpu.memory_space<vmem>>, %arg8: memref<1x256xf32, #tpu.memory_space<vmem>>, %arg9: memref<1x256xf32, #tpu.memory_space<vmem>>, %arg10: memref<256x128xbf16, #tpu.memory_space<vmem>>, %arg11: memref<1x128xf32, #tpu.memory_space<vmem>>, %arg12: memref<8x128xf32, #tpu.memory_space<vmem>>) attributes {dimension_semantics = [#tpu.dimension_semantics<parallel>], iteration_bounds = array<i64: 1>, scalar_prefetch = 0 : i64, scratch_operands = 0 : i64, tpu.core_type = #tpu.core_type<tc>, window_params = [{transform_indices = @transform_0, window_bounds = array<i64: 8, 128>}, {pipeline_mode = #tpu.pipeline_mode<synchronous>, transform_indices = @transform_1, window_bounds = array<i64: 128, 1024>}, {pipeline_mode = #tpu.pipeline_mode<synchronous>, transform_indices = @transform_2, window_bounds = array<i64: 1, 1024>}, {pipeline_mode = #tpu.pipeline_mode<synchronous>, transform_indices = @transform_3, window_bounds = array<i64: 1, 1024>}, {pipeline_mode = #tpu.pipeline_mode<synchronous>, transform_indices = @transform_4, window_bounds = array<i64: 1, 1024>}, {pipeline_mode = #tpu.pipeline_mode<synchronous>, transform_indices = @transform_5, window_bounds = array<i64: 1024, 256>}, {pipeline_mode = #tpu.pipeline_mode<synchronous>, transform_indices = @transform_6, window_bounds = array<i64: 1, 256>}, {pipeline_mode = #tpu.pipeline_mode<synchronous>, transform_indices = @transform_7, window_bounds = array<i64: 1, 256>}, {pipeline_mode = #tpu.pipeline_mode<synchronous>, transform_indices = @transform_8, window_bounds = array<i64: 1, 256>}, {pipeline_mode = #tpu.pipeline_mode<synchronous>, transform_indices = @transform_9, window_bounds = array<i64: 256, 128>}, {pipeline_mode = #tpu.pipeline_mode<synchronous>, transform_indices = @transform_10, window_bounds = array<i64: 1, 128>}, {transform_indices = @transform_11, window_bounds = array<i64: 8, 128>}]} {
    %c0 = arith.constant 0 : index
    %c0_0 = arith.constant 0 : index
    %0 = vector.load %arg1[%c0, %c0_0] : memref<8x128xf32, #tpu.memory_space<vmem>>, vector<8x128xf32>
    %1 = arith.truncf %0 : vector<8x128xf32> to vector<8x128xbf16>
    %c0_1 = arith.constant 0 : index
    %c0_2 = arith.constant 0 : index
    %2 = vector.load %arg2[%c0_1, %c0_2] : memref<128x1024xbf16, #tpu.memory_space<vmem>>, vector<128x1024xbf16>
    %cst = arith.constant dense<0.000000e+00> : vector<8x1024xf32>
    %3 = tpu.matmul %1, %2, %cst {dimension_numbers = #tpu.dot_dimension_numbers<[1], [0], [0], [1], [0, 0, 1, 1], [], []>} : vector<8x128xbf16>, vector<128x1024xbf16>, vector<8x1024xf32> -> vector<8x1024xf32>
    %c0_3 = arith.constant 0 : index
    %c0_4 = arith.constant 0 : index
    %4 = vector.load %arg3[%c0_3, %c0_4] : memref<1x1024xf32, #tpu.memory_space<vmem>>, vector<1x1024xf32>
    %5 = vector.broadcast %4 : vector<1x1024xf32> to vector<8x1024xf32>
    %6 = arith.addf %3, %5 : vector<8x1024xf32>
    %cst_5 = arith.constant dense<0.000000e+00> : vector<8xf32>
    %7 = vector.multi_reduction <add>, %6, %cst_5 [1] : vector<8x1024xf32> to vector<8xf32>
    %8 = vector.shape_cast %7 : vector<8xf32> to vector<8x1xf32>
    %cst_6 = arith.constant 1.024000e+03 : f32
    %9 = vector.broadcast %cst_6 : f32 to vector<8x1xf32>
    %10 = arith.divf %8, %9 : vector<8x1xf32>
    %11 = vector.broadcast %10 : vector<8x1xf32> to vector<8x1024xf32>
    %12 = arith.subf %6, %11 : vector<8x1024xf32>
    %13 = arith.mulf %12, %12 : vector<8x1024xf32>
    %cst_7 = arith.constant dense<0.000000e+00> : vector<8xf32>
    %14 = vector.multi_reduction <add>, %13, %cst_7 [1] : vector<8x1024xf32> to vector<8xf32>
    %15 = vector.shape_cast %14 : vector<8xf32> to vector<8x1xf32>
    %cst_8 = arith.constant 1.024000e+03 : f32
    %16 = vector.broadcast %cst_8 : f32 to vector<8x1xf32>
    %17 = arith.divf %15, %16 : vector<8x1xf32>
    %cst_9 = arith.constant 9.99999974E-6 : f32
    %18 = vector.broadcast %cst_9 : f32 to vector<8x1xf32>
    %19 = arith.addf %17, %18 : vector<8x1xf32>
    %20 = math.rsqrt %19 : vector<8x1xf32>
    %21 = vector.broadcast %20 : vector<8x1xf32> to vector<8x1024xf32>
    %22 = arith.mulf %12, %21 : vector<8x1024xf32>
    %c0_10 = arith.constant 0 : index
    %c0_11 = arith.constant 0 : index
    %23 = vector.load %arg4[%c0_10, %c0_11] : memref<1x1024xf32, #tpu.memory_space<vmem>>, vector<1x1024xf32>
    %24 = vector.broadcast %23 : vector<1x1024xf32> to vector<8x1024xf32>
    %25 = arith.mulf %22, %24 : vector<8x1024xf32>
    %c0_12 = arith.constant 0 : index
    %c0_13 = arith.constant 0 : index
    %26 = vector.load %arg5[%c0_12, %c0_13] : memref<1x1024xf32, #tpu.memory_space<vmem>>, vector<1x1024xf32>
    %27 = vector.broadcast %26 : vector<1x1024xf32> to vector<8x1024xf32>
    %28 = arith.addf %25, %27 : vector<8x1024xf32>
    %cst_14 = arith.constant 0.000000e+00 : f32
    %29 = vector.broadcast %cst_14 : f32 to vector<8x1024xf32>
    %30 = arith.maximumf %28, %29 : vector<8x1024xf32>
    %31 = arith.truncf %30 : vector<8x1024xf32> to vector<8x1024xbf16>
    %c0_15 = arith.constant 0 : index
    %c0_16 = arith.constant 0 : index
    %32 = vector.load %arg6[%c0_15, %c0_16] : memref<1024x256xbf16, #tpu.memory_space<vmem>>, vector<1024x256xbf16>
    %cst_17 = arith.constant dense<0.000000e+00> : vector<8x256xf32>
    %33 = tpu.matmul %31, %32, %cst_17 {dimension_numbers = #tpu.dot_dimension_numbers<[1], [0], [0], [1], [0, 0, 1, 1], [], []>} : vector<8x1024xbf16>, vector<1024x256xbf16>, vector<8x256xf32> -> vector<8x256xf32>
    %c0_18 = arith.constant 0 : index
    %c0_19 = arith.constant 0 : index
    %34 = vector.load %arg7[%c0_18, %c0_19] : memref<1x256xf32, #tpu.memory_space<vmem>>, vector<1x256xf32>
    %35 = vector.broadcast %34 : vector<1x256xf32> to vector<8x256xf32>
    %36 = arith.addf %33, %35 : vector<8x256xf32>
    %cst_20 = arith.constant dense<0.000000e+00> : vector<8xf32>
    %37 = vector.multi_reduction <add>, %36, %cst_20 [1] : vector<8x256xf32> to vector<8xf32>
    %38 = vector.shape_cast %37 : vector<8xf32> to vector<8x1xf32>
    %cst_21 = arith.constant 2.560000e+02 : f32
    %39 = vector.broadcast %cst_21 : f32 to vector<8x1xf32>
    %40 = arith.divf %38, %39 : vector<8x1xf32>
    %41 = vector.broadcast %40 : vector<8x1xf32> to vector<8x256xf32>
    %42 = arith.subf %36, %41 : vector<8x256xf32>
    %43 = arith.mulf %42, %42 : vector<8x256xf32>
    %cst_22 = arith.constant dense<0.000000e+00> : vector<8xf32>
    %44 = vector.multi_reduction <add>, %43, %cst_22 [1] : vector<8x256xf32> to vector<8xf32>
    %45 = vector.shape_cast %44 : vector<8xf32> to vector<8x1xf32>
    %cst_23 = arith.constant 2.560000e+02 : f32
    %46 = vector.broadcast %cst_23 : f32 to vector<8x1xf32>
    %47 = arith.divf %45, %46 : vector<8x1xf32>
    %cst_24 = arith.constant 9.99999974E-6 : f32
    %48 = vector.broadcast %cst_24 : f32 to vector<8x1xf32>
    %49 = arith.addf %47, %48 : vector<8x1xf32>
    %50 = math.rsqrt %49 : vector<8x1xf32>
    %51 = vector.broadcast %50 : vector<8x1xf32> to vector<8x256xf32>
    %52 = arith.mulf %42, %51 : vector<8x256xf32>
    %c0_25 = arith.constant 0 : index
    %c0_26 = arith.constant 0 : index
    %53 = vector.load %arg8[%c0_25, %c0_26] : memref<1x256xf32, #tpu.memory_space<vmem>>, vector<1x256xf32>
    %54 = vector.broadcast %53 : vector<1x256xf32> to vector<8x256xf32>
    %55 = arith.mulf %52, %54 : vector<8x256xf32>
    %c0_27 = arith.constant 0 : index
    %c0_28 = arith.constant 0 : index
    %56 = vector.load %arg9[%c0_27, %c0_28] : memref<1x256xf32, #tpu.memory_space<vmem>>, vector<1x256xf32>
    %57 = vector.broadcast %56 : vector<1x256xf32> to vector<8x256xf32>
    %58 = arith.addf %55, %57 : vector<8x256xf32>
    %cst_29 = arith.constant 0.000000e+00 : f32
    %59 = vector.broadcast %cst_29 : f32 to vector<8x256xf32>
    %60 = arith.maximumf %58, %59 : vector<8x256xf32>
    %61 = arith.truncf %60 : vector<8x256xf32> to vector<8x256xbf16>
    %c0_30 = arith.constant 0 : index
    %c0_31 = arith.constant 0 : index
    %62 = vector.load %arg10[%c0_30, %c0_31] : memref<256x128xbf16, #tpu.memory_space<vmem>>, vector<256x128xbf16>
    %cst_32 = arith.constant dense<0.000000e+00> : vector<8x128xf32>
    %63 = tpu.matmul %61, %62, %cst_32 {dimension_numbers = #tpu.dot_dimension_numbers<[1], [0], [0], [1], [0, 0, 1, 1], [], []>} : vector<8x256xbf16>, vector<256x128xbf16>, vector<8x128xf32> -> vector<8x128xf32>
    %c0_33 = arith.constant 0 : index
    %c0_34 = arith.constant 0 : index
    %64 = vector.load %arg11[%c0_33, %c0_34] : memref<1x128xf32, #tpu.memory_space<vmem>>, vector<1x128xf32>
    %65 = vector.broadcast %64 : vector<1x128xf32> to vector<8x128xf32>
    %66 = arith.addf %63, %65 : vector<8x128xf32>
    %67 = math.tanh %66 : vector<8x128xf32>
    %c0_35 = arith.constant 0 : index
    %c0_36 = arith.constant 0 : index
    %68 = vector.load %arg12[%c0_35, %c0_36] : memref<8x128xf32, #tpu.memory_space<vmem>>, vector<8x128xf32>
    tpu.vector_store %arg12[%c0_35, %c0_36], %67 {strides = array<i32>} : memref<8x128xf32, #tpu.memory_space<vmem>>, vector<8x128xf32>,
    return
  }
  func.func @transform_0(%arg0: i32) -> (i32, i32) {
    %c0_i32 = arith.constant 0 : i32
    %c0_i32_0 = arith.constant 0 : i32
    return %arg0, %c0_i32 : i32, i32
  }
  func.func @transform_1(%arg0: i32) -> (i32, i32) {
    %c0_i32 = arith.constant 0 : i32
    %c0_i32_0 = arith.constant 0 : i32
    %c0_i32_1 = arith.constant 0 : i32
    return %c0_i32, %c0_i32_0 : i32, i32
  }
  func.func @transform_2(%arg0: i32) -> (i32, i32) {
    %c0_i32 = arith.constant 0 : i32
    %c0_i32_0 = arith.constant 0 : i32
    %c0_i32_1 = arith.constant 0 : i32
    return %c0_i32, %c0_i32_0 : i32, i32
  }
  func.func @transform_3(%arg0: i32) -> (i32, i32) {
    %c0_i32 = arith.constant 0 : i32
    %c0_i32_0 = arith.constant 0 : i32
    %c0_i32_1 = arith.constant 0 : i32
    return %c0_i32, %c0_i32_0 : i32, i32
  }
  func.func @transform_4(%arg0: i32) -> (i32, i32) {
    %c0_i32 = arith.constant 0 : i32
    %c0_i32_0 = arith.constant 0 : i32
    %c0_i32_1 = arith.constant 0 : i32
    return %c0_i32, %c0_i32_0 : i32, i32
  }
  func.func @transform_5(%arg0: i32) -> (i32, i32) {
    %c0_i32 = arith.constant 0 : i32
    %c0_i32_0 = arith.constant 0 : i32
    %c0_i32_1 = arith.constant 0 : i32
    return %c0_i32, %c0_i32_0 : i32, i32
  }
  func.func @transform_6(%arg0: i32) -> (i32, i32) {
    %c0_i32 = arith.constant 0 : i32
    %c0_i32_0 = arith.constant 0 : i32
    %c0_i32_1 = arith.constant 0 : i32
    return %c0_i32, %c0_i32_0 : i32, i32
  }
  func.func @transform_7(%arg0: i32) -> (i32, i32) {
    %c0_i32 = arith.constant 0 : i32
    %c0_i32_0 = arith.constant 0 : i32
    %c0_i32_1 = arith.constant 0 : i32
    return %c0_i32, %c0_i32_0 : i32, i32
  }
  func.func @transform_8(%arg0: i32) -> (i32, i32) {
    %c0_i32 = arith.constant 0 : i32
    %c0_i32_0 = arith.constant 0 : i32
    %c0_i32_1 = arith.constant 0 : i32
    return %c0_i32, %c0_i32_0 : i32, i32
  }
  func.func @transform_9(%arg0: i32) -> (i32, i32) {
    %c0_i32 = arith.constant 0 : i32
    %c0_i32_0 = arith.constant 0 : i32
    %c0_i32_1 = arith.constant 0 : i32
    return %c0_i32, %c0_i32_0 : i32, i32
  }
  func.func @transform_10(%arg0: i32) -> (i32, i32) {
    %c0_i32 = arith.constant 0 : i32
    %c0_i32_0 = arith.constant 0 : i32
    %c0_i32_1 = arith.constant 0 : i32
    return %c0_i32, %c0_i32_0 : i32, i32
  }
  func.func @transform_11(%arg0: i32) -> (i32, i32) {
    %c0_i32 = arith.constant 0 : i32
    %c0_i32_0 = arith.constant 0 : i32
    return %arg0, %c0_i32 : i32, i32
  }
}

module attributes {stable_mosaic.version = 11 : i64} {
  func.func @actor_kernel(%arg0: i32, %arg1: memref<8x128xf32, #tpu.memory_space<vmem>>, %arg2: memref<128x1024xbf16, #tpu.memory_space<vmem>>, %arg3: memref<1x1024xf32, #tpu.memory_space<vmem>>, %arg4: memref<1x1024xf32, #tpu.memory_space<vmem>>, %arg5: memref<1x1024xf32, #tpu.memory_space<vmem>>, %arg6: memref<1024x256xbf16, #tpu.memory_space<vmem>>, %arg7: memref<1x256xf32, #tpu.memory_space<vmem>>, %arg8: memref<1x256xf32, #tpu.memory_space<vmem>>, %arg9: memref<1x256xf32, #tpu.memory_space<vmem>>, %arg10: memref<256x128xbf16, #tpu.memory_space<vmem>>, %arg11: memref<1x128xf32, #tpu.memory_space<vmem>>, %arg12: memref<8x128xf32, #tpu.memory_space<vmem>>) attributes {dimension_semantics = [#tpu.dimension_semantics<parallel>], iteration_bounds = array<i64: 1>, scalar_prefetch = 0 : i64, scratch_operands = 0 : i64, tpu.core_type = #tpu.core_type<tc>, window_params = [{transform_indices = @transform_0, window_bounds = array<i64: 8, 128>}, {pipeline_mode = #tpu.pipeline_mode<synchronous>, transform_indices = @transform_1, window_bounds = array<i64: 128, 1024>}, {pipeline_mode = #tpu.pipeline_mode<synchronous>, transform_indices = @transform_2, window_bounds = array<i64: 1, 1024>}, {pipeline_mode = #tpu.pipeline_mode<synchronous>, transform_indices = @transform_3, window_bounds = array<i64: 1, 1024>}, {pipeline_mode = #tpu.pipeline_mode<synchronous>, transform_indices = @transform_4, window_bounds = array<i64: 1, 1024>}, {pipeline_mode = #tpu.pipeline_mode<synchronous>, transform_indices = @transform_5, window_bounds = array<i64: 1024, 256>}, {pipeline_mode = #tpu.pipeline_mode<synchronous>, transform_indices = @transform_6, window_bounds = array<i64: 1, 256>}, {pipeline_mode = #tpu.pipeline_mode<synchronous>, transform_indices = @transform_7, window_bounds = array<i64: 1, 256>}, {pipeline_mode = #tpu.pipeline_mode<synchronous>, transform_indices = @transform_8, window_bounds = array<i64: 1, 256>}, {pipeline_mode = #tpu.pipeline_mode<synchronous>, transform_indices = @transform_9, window_bounds = array<i64: 256, 128>}, {pipeline_mode = #tpu.pipeline_mode<synchronous>, transform_indices = @transform_10, window_bounds = array<i64: 1, 128>}, {transform_indices = @transform_11, window_bounds = array<i64: 8, 128>}]} {
    %c0 = arith.constant 0 : index
    %c0_0 = arith.constant 0 : index
    %0 = vector.load %arg1[%c0, %c0_0] : memref<8x128xf32, #tpu.memory_space<vmem>>, vector<8x128xf32>
    %1 = arith.truncf %0 : vector<8x128xf32> to vector<8x128xbf16>
    %c0_1 = arith.constant 0 : index
    %c0_2 = arith.constant 0 : index
    %2 = vector.load %arg2[%c0_1, %c0_2] : memref<128x1024xbf16, #tpu.memory_space<vmem>>, vector<128x1024xbf16>
    %cst = arith.constant dense<0.000000e+00> : vector<8x1024xf32>
    %3 = tpu.matmul %1, %2, %cst {dimension_numbers = #tpu.dot_dimension_numbers<[1], [0], [0], [1], [0, 0, 1, 1], [], []>} : vector<8x128xbf16>, vector<128x1024xbf16>, vector<8x1024xf32> -> vector<8x1024xf32>
    %c0_3 = arith.constant 0 : index
    %c0_4 = arith.constant 0 : index
    %4 = vector.load %arg3[%c0_3, %c0_4] : memref<1x1024xf32, #tpu.memory_space<vmem>>, vector<1x1024xf32>
    %5 = vector.broadcast %4 : vector<1x1024xf32> to vector<8x1024xf32>
    %6 = arith.addf %3, %5 : vector<8x1024xf32>
    %cst_5 = arith.constant dense<0.000000e+00> : vector<8xf32>
    %7 = vector.multi_reduction <add>, %6, %cst_5 [1] : vector<8x1024xf32> to vector<8xf32>
    %8 = vector.shape_cast %7 : vector<8xf32> to vector<8x1xf32>
    %cst_6 = arith.constant 1.024000e+03 : f32
    %9 = vector.broadcast %cst_6 : f32 to vector<8x1xf32>
    %10 = arith.divf %8, %9 : vector<8x1xf32>
    %11 = vector.broadcast %10 : vector<8x1xf32> to vector<8x1024xf32>
    %12 = arith.subf %6, %11 : vector<8x1024xf32>
    %13 = arith.mulf %12, %12 : vector<8x1024xf32>
    %cst_7 = arith.constant dense<0.000000e+00> : vector<8xf32>
    %14 = vector.multi_reduction <add>, %13, %cst_7 [1] : vector<8x1024xf32> to vector<8xf32>
    %15 = vector.shape_cast %14 : vector<8xf32> to vector<8x1xf32>
    %cst_8 = arith.constant 1.024000e+03 : f32
    %16 = vector.broadcast %cst_8 : f32 to vector<8x1xf32>
    %17 = arith.divf %15, %16 : vector<8x1xf32>
    %cst_9 = arith.constant 9.99999974E-6 : f32
    %18 = vector.broadcast %cst_9 : f32 to vector<8x1xf32>
    %19 = arith.addf %17, %18 : vector<8x1xf32>
    %20 = math.rsqrt %19 : vector<8x1xf32>
    %21 = vector.broadcast %20 : vector<8x1xf32> to vector<8x1024xf32>
    %22 = arith.mulf %12, %21 : vector<8x1024xf32>
    %c0_10 = arith.constant 0 : index
    %c0_11 = arith.constant 0 : index
    %23 = vector.load %arg4[%c0_10, %c0_11] : memref<1x1024xf32, #tpu.memory_space<vmem>>, vector<1x1024xf32>
    %24 = vector.broadcast %23 : vector<1x1024xf32> to vector<8x1024xf32>
    %25 = arith.mulf %22, %24 : vector<8x1024xf32>
    %c0_12 = arith.constant 0 : index
    %c0_13 = arith.constant 0 : index
    %26 = vector.load %arg5[%c0_12, %c0_13] : memref<1x1024xf32, #tpu.memory_space<vmem>>, vector<1x1024xf32>
    %27 = vector.broadcast %26 : vector<1x1024xf32> to vector<8x1024xf32>
    %28 = arith.addf %25, %27 : vector<8x1024xf32>
    %cst_14 = arith.constant 0.000000e+00 : f32
    %29 = vector.broadcast %cst_14 : f32 to vector<8x1024xf32>
    %30 = arith.maximumf %28, %29 : vector<8x1024xf32>
    %31 = arith.truncf %30 : vector<8x1024xf32> to vector<8x1024xbf16>
    %c0_15 = arith.constant 0 : index
    %c0_16 = arith.constant 0 : index
    %32 = vector.load %arg6[%c0_15, %c0_16] : memref<1024x256xbf16, #tpu.memory_space<vmem>>, vector<1024x256xbf16>
    %cst_17 = arith.constant dense<0.000000e+00> : vector<8x256xf32>
    %33 = tpu.matmul %31, %32, %cst_17 {dimension_numbers = #tpu.dot_dimension_numbers<[1], [0], [0], [1], [0, 0, 1, 1], [], []>} : vector<8x1024xbf16>, vector<1024x256xbf16>, vector<8x256xf32> -> vector<8x256xf32>
    %c0_18 = arith.constant 0 : index
    %c0_19 = arith.constant 0 : index
    %34 = vector.load %arg7[%c0_18, %c0_19] : memref<1x256xf32, #tpu.memory_space<vmem>>, vector<1x256xf32>
    %35 = vector.broadcast %34 : vector<1x256xf32> to vector<8x256xf32>
    %36 = arith.addf %33, %35 : vector<8x256xf32>
    %cst_20 = arith.constant dense<0.000000e+00> : vector<8xf32>
    %37 = vector.multi_reduction <add>, %36, %cst_20 [1] : vector<8x256xf32> to vector<8xf32>
    %38 = vector.shape_cast %37 : vector<8xf32> to vector<8x1xf32>
    %cst_21 = arith.constant 2.560000e+02 : f32
    %39 = vector.broadcast %cst_21 : f32 to vector<8x1xf32>
    %40 = arith.divf %38, %39 : vector<8x1xf32>
    %41 = vector.broadcast %40 : vector<8x1xf32> to vector<8x256xf32>
    %42 = arith.subf %36, %41 : vector<8x256xf32>
    %43 = arith.mulf %42, %42 : vector<8x256xf32>
    %cst_22 = arith.constant dense<0.000000e+00> : vector<8xf32>
    %44 = vector.multi_reduction <add>, %43, %cst_22 [1] : vector<8x256xf32> to vector<8xf32>
    %45 = vector.shape_cast %44 : vector<8xf32> to vector<8x1xf32>
    %cst_23 = arith.constant 2.560000e+02 : f32
    %46 = vector.broadcast %cst_23 : f32 to vector<8x1xf32>
    %47 = arith.divf %45, %46 : vector<8x1xf32>
    %cst_24 = arith.constant 9.99999974E-6 : f32
    %48 = vector.broadcast %cst_24 : f32 to vector<8x1xf32>
    %49 = arith.addf %47, %48 : vector<8x1xf32>
    %50 = math.rsqrt %49 : vector<8x1xf32>
    %51 = vector.broadcast %50 : vector<8x1xf32> to vector<8x256xf32>
    %52 = arith.mulf %42, %51 : vector<8x256xf32>
    %c0_25 = arith.constant 0 : index
    %c0_26 = arith.constant 0 : index
    %53 = vector.load %arg8[%c0_25, %c0_26] : memref<1x256xf32, #tpu.memory_space<vmem>>, vector<1x256xf32>
    %54 = vector.broadcast %53 : vector<1x256xf32> to vector<8x256xf32>
    %55 = arith.mulf %52, %54 : vector<8x256xf32>
    %c0_27 = arith.constant 0 : index
    %c0_28 = arith.constant 0 : index
    %56 = vector.load %arg9[%c0_27, %c0_28] : memref<1x256xf32, #tpu.memory_space<vmem>>, vector<1x256xf32>
    %57 = vector.broadcast %56 : vector<1x256xf32> to vector<8x256xf32>
    %58 = arith.addf %55, %57 : vector<8x256xf32>
    %cst_29 = arith.constant 0.000000e+00 : f32
    %59 = vector.broadcast %cst_29 : f32 to vector<8x256xf32>
    %60 = arith.maximumf %58, %59 : vector<8x256xf32>
    %61 = arith.truncf %60 : vector<8x256xf32> to vector<8x256xbf16>
    %c0_30 = arith.constant 0 : index
    %c0_31 = arith.constant 0 : index
    %62 = vector.load %arg10[%c0_30, %c0_31] : memref<256x128xbf16, #tpu.memory_space<vmem>>, vector<256x128xbf16>
    %cst_32 = arith.constant dense<0.000000e+00> : vector<8x128xf32>
    %63 = tpu.matmul %61, %62, %cst_32 {dimension_numbers = #tpu.dot_dimension_numbers<[1], [0], [0], [1], [0, 0, 1, 1], [], []>} : vector<8x256xbf16>, vector<256x128xbf16>, vector<8x128xf32> -> vector<8x128xf32>
    %c0_33 = arith.constant 0 : index
    %c0_34 = arith.constant 0 : index
    %64 = vector.load %arg11[%c0_33, %c0_34] : memref<1x128xf32, #tpu.memory_space<vmem>>, vector<1x128xf32>
    %65 = vector.broadcast %64 : vector<1x128xf32> to vector<8x128xf32>
    %66 = arith.addf %63, %65 : vector<8x128xf32>
    %67 = math.tanh %66 : vector<8x128xf32>
    %c0_35 = arith.constant 0 : index
    %c0_36 = arith.constant 0 : index
    %68 = vector.load %arg12[%c0_35, %c0_36] : memref<8x128xf32, #tpu.memory_space<vmem>>, vector<8x128xf32>
    tpu.vector_store %arg12[%c0_35, %c0_36], %67 {strides = array<i32>} : memref<8x128xf32, #tpu.memory_space<vmem>>, vector<8x128xf32>,
    return
  }
  func.func @transform_0(%arg0: i32) -> (i32, i32) {
    %c0_i32 = arith.constant 0 : i32
    %c0_i32_0 = arith.constant 0 : i32
    return %arg0, %c0_i32 : i32, i32
  }
  func.func @transform_1(%arg0: i32) -> (i32, i32) {
    %c0_i32 = arith.constant 0 : i32
    %c0_i32_0 = arith.constant 0 : i32
    %c0_i32_1 = arith.constant 0 : i32
    return %c0_i32, %c0_i32_0 : i32, i32
  }
  func.func @transform_2(%arg0: i32) -> (i32, i32) {
    %c0_i32 = arith.constant 0 : i32
    %c0_i32_0 = arith.constant 0 : i32
    %c0_i32_1 = arith.constant 0 : i32
    return %c0_i32, %c0_i32_0 : i32, i32
  }
  func.func @transform_3(%arg0: i32) -> (i32, i32) {
    %c0_i32 = arith.constant 0 : i32
    %c0_i32_0 = arith.constant 0 : i32
    %c0_i32_1 = arith.constant 0 : i32
    return %c0_i32, %c0_i32_0 : i32, i32
  }
  func.func @transform_4(%arg0: i32) -> (i32, i32) {
    %c0_i32 = arith.constant 0 : i32
    %c0_i32_0 = arith.constant 0 : i32
    %c0_i32_1 = arith.constant 0 : i32
    return %c0_i32, %c0_i32_0 : i32, i32
  }
  func.func @transform_5(%arg0: i32) -> (i32, i32) {
    %c0_i32 = arith.constant 0 : i32
    %c0_i32_0 = arith.constant 0 : i32
    %c0_i32_1 = arith.constant 0 : i32
    return %c0_i32, %c0_i32_0 : i32, i32
  }
  func.func @transform_6(%arg0: i32) -> (i32, i32) {
    %c0_i32 = arith.constant 0 : i32
    %c0_i32_0 = arith.constant 0 : i32
    %c0_i32_1 = arith.constant 0 : i32
    return %c0_i32, %c0_i32_0 : i32, i32
  }
  func.func @transform_7(%arg0: i32) -> (i32, i32) {
    %c0_i32 = arith.constant 0 : i32
    %c0_i32_0 = arith.constant 0 : i32
    %c0_i32_1 = arith.constant 0 : i32
    return %c0_i32, %c0_i32_0 : i32, i32
  }
  func.func @transform_8(%arg0: i32) -> (i32, i32) {
    %c0_i32 = arith.constant 0 : i32
    %c0_i32_0 = arith.constant 0 : i32
    %c0_i32_1 = arith.constant 0 : i32
    return %c0_i32, %c0_i32_0 : i32, i32
  }
  func.func @transform_9(%arg0: i32) -> (i32, i32) {
    %c0_i32 = arith.constant 0 : i32
    %c0_i32_0 = arith.constant 0 : i32
    %c0_i32_1 = arith.constant 0 : i32
    return %c0_i32, %c0_i32_0 : i32, i32
  }
  func.func @transform_10(%arg0: i32) -> (i32, i32) {
    %c0_i32 = arith.constant 0 : i32
    %c0_i32_0 = arith.constant 0 : i32
    %c0_i32_1 = arith.constant 0 : i32
    return %c0_i32, %c0_i32_0 : i32, i32
  }
  func.func @transform_11(%arg0: i32) -> (i32, i32) {
    %c0_i32 = arith.constant 0 : i32
    %c0_i32_0 = arith.constant 0 : i32
    return %arg0, %c0_i32 : i32, i32
  }
}

</mosaic_0001>

<bundles_post_ra>
// kernel: tpu_custom_call.1
= control target key start
LH: loop header
LB: loop body
LE: loop exit
PB: predicated region body
PF: predicated region fallthrough
CT: control target
= control target key end

     0   :  { %16 = vsyncpa [#allocation3], 0  ;;  %s3522_s0 = inlined_call_operand.hbm [shape: f32[8,128], index: 0, kind: input, shape index: {}]   ;;  %s3523_s1 = inlined_call_operand.hbm [shape: bf16[128,1024], index: 1, kind: input, shape index: {}]   ;;  %s3524_s2 = inlined_call_operand.hbm [shape: f32[1,1024], index: 2, kind: input, shape index: {}]   ;;  %s3525_s3 = inlined_call_operand.hbm [shape: f32[1,1024], index: 3, kind: input, shape index: {}]   ;;  %s3526_s4 = inlined_call_operand.hbm [shape: f32[1,1024], index: 4, kind: input, shape index: {}]   ;;  %s3527_s5 = inlined_call_operand.hbm [shape: bf16[1024,256], index: 5, kind: input, shape index: {}]   ;;  %s3528_s6 = inlined_call_operand.vmem [shape: f32[1,256], index: 6, kind: input, shape index: {}]   ;;  %s3529_s7 = inlined_call_operand.vmem [shape: f32[1,256], index: 7, kind: input, shape index: {}]   ;;  %s3530_s8 = inlined_call_operand.vmem [shape: f32[1,256], index: 8, kind: input, shape index: {}]   ;;  %s3531_s9 = inlined_call_operand.hbm [shape: bf16[256,128], index: 9, kind: input, shape index: {}]   ;;  %s3532_s10 = inlined_call_operand.vmem [shape: f32[1,128], index: 10, kind: input, shape index: {}]   ;;  %s3533_s11 = inlined_call_operand.hbm [shape: f32[8,128], index: 11, kind: output, shape index: {}]  }
   0x1   :  { %17 = vsyncpa [#allocation6], 0 }
   0x2   :  { %18 = vsyncpa [#allocation9], 0 }
   0x3   :  { %19 = vsyncpa [#allocation12], 0  ;;  %s36_s19 = sshll.u32 %s3523_s1, 4  ;;  %s37_s19 = int_to_ptr.hbm [resolvable:$true] %s36_s19 }
   0x4   :  { %20 = vsyncpa [#allocation4], 0  ;;  %s3261_s20 = smov [#allocation5]   ;;  %s61_s24 = sshll.u32 %s3525_s3, 4  ;;  %s62_s24 = int_to_ptr.hbm [resolvable:$true] %s61_s24 }
   0x5   :  { %s38_s21 = sshll.u32 %s3261_s20, 4  ;;  %s3262_s25 = smov 512   ;;  %s39_s21 = int_to_ptr.vmem [resolvable:$true] %s38_s21 }
   0x6   :  { %s3263_s26 = smov 32   ;;  %s3264_s27 = smov [#allocation8]  }
   0x7   :  { %44 = dma.hbm_to_vmem [thread:$0]  %s37_s19, 8192, %s39_s21, [#allocation6], %s3262_s25, %s3262_s25, %s3263_s26  }
   0x8   :  { %s63_s28 = sshll.u32 %s3264_s27, 4  ;;  %s82_s12 = sshll.u32 %s3527_s5, 4  ;;  %s64_s28 = int_to_ptr.vmem [resolvable:$true] %s63_s28  ;;  %s83_s12 = int_to_ptr.hbm [resolvable:$true] %s82_s12 }
   0x9   :  { %66 = dma.hbm_to_vmem [thread:$0]  %s62_s24, 128, %s64_s28, [#allocation9]  }
   0xa   :  { %s3265_s1 = smov [#allocation11]   ;;  %s26_s3 = sshll.u32 %s3522_s0, 4  ;;  %s27_s3 = int_to_ptr.hbm [resolvable:$true] %s26_s3 }
   0xb   :  { %s84_s13 = sshll.u32 %s3265_s1, 4  ;;  %s3266_s16 = smov 128   ;;  %s85_s13 = int_to_ptr.vmem [resolvable:$true] %s84_s13 }
   0xc   :  { %s3267_s17 = smov 8   ;;  %s3268_s18 = smov [#allocation2]  }
   0xd   :  { %90 = dma.hbm_to_vmem [thread:$0]  %s83_s12, 16384, %s85_s13, [#allocation12], %s3266_s16, %s3266_s16, %s3267_s17  }
   0xe   :  { %s28_s19 = sshll.u32 %s3268_s18, 4  ;;  %s50_s5 = sshll.u32 %s3524_s2, 4  ;;  %s29_s19 = int_to_ptr.vmem [resolvable:$true] %s28_s19  ;;  %s51_s5 = int_to_ptr.hbm [resolvable:$true] %s50_s5 }
   0xf   :  { %31 = dma.hbm_to_vmem [thread:$0]  %s27_s3, 128, %s29_s19, [#allocation3]  }
  0x10   :  { %s72_s24 = sshll.u32 %s3526_s4, 4  ;;  %s3269_s25 = smov [#allocation7]   ;;  %s73_s24 = int_to_ptr.hbm [resolvable:$true] %s72_s24 }
  0x11   :  { %s52_s26 = sshll.u32 %s3269_s25, 4  ;;  %s3270_s0 = smov [#allocation10]   ;;  %s53_s26 = int_to_ptr.vmem [resolvable:$true] %s52_s26 }
  0x12   :  { %55 = dma.hbm_to_vmem [thread:$0]  %s51_s5, 128, %s53_s26, [#allocation6]  }
  0x13   :  { %s74_s27 = sshll.u32 %s3270_s0, 4  ;;  %s101_s30 = sshll.u32 %s3531_s9, 4  ;;  %s75_s27 = int_to_ptr.vmem [resolvable:$true] %s74_s27  ;;  %s102_s30 = int_to_ptr.hbm [resolvable:$true] %s101_s30 }
  0x14   :  { %77 = dma.hbm_to_vmem [thread:$0]  %s73_s24, 128, %s75_s27, [#allocation9]  }
  0x15   :  { %s3271_s2 = smov [#allocation13]   ;;  %s3272_s1 = smov 64  }
  0x16   :  { %s103_s12 = sshll.u32 %s3271_s2, 4  ;;  %s3273_s13 = smov 4   ;;  %s104_s12 = int_to_ptr.vmem [resolvable:$true] %s103_s12 }
  0x17   :  { %109 = dma.hbm_to_vmem [thread:$0]  %s102_s30, 2048, %s104_s12, [#allocation12], %s3272_s1, %s3272_s1, %s3273_s13  }
  0x18   :  { %3251 = dma.done.wait [#allocation3], 128  }
  0x19   :  { %3252 = vsyncadd [#allocation3], 4294967168 }
  0x1a   :  { %3253 = dma.done.wait [#allocation6], 8320  }
  0x1b   :  { %3254 = vsyncadd [#allocation6], 4294958976 }
  0x1c   :  { %3255 = dma.done.wait [#allocation9], 256  }
  0x1d   :  { %3256 = vsyncadd [#allocation9], 4294967040 }
  0x1e   :  { %3257 = dma.done.wait [#allocation12], 18432  }
  0x1f   :  { %3258 = vsyncadd [#allocation12], 4294948864  ;;  %v2218_v0 = vld [vmem:[#allocation5 + $0x1c0] sm:$0xf]  ;;  %v2880_v2 = vld [vmem:[#allocation5 + $0x1c4] sm:$0xf] }
  0x20   :  { %v2884_v1 = vld [vmem:[#allocation5 + $0x1dc] sm:$0xf0]  ;;  %v2220_v4 = vld [vmem:[#allocation5 + $0x1e0] sm:$0xf0]  ;;  %v2226_v5 = vld [vmem:[#allocation5 + $0x1c8] sm:$0xf] }
  0x21   :  { %v2219_v3 = vor.u32 %v2884_v1, %v2218_v0  ;;  %v2885_v6 = vld [vmem:[#allocation5 + $0x1e4] sm:$0xf0]  ;;  %v2223_v7 = vor.u32 %v2880_v2, %v2220_v4  ;;  %v2881_v9 = vld [vmem:[#allocation5 + $0x1cc] sm:$0xf]  ;;  %v2186_v11 = vld [vmem:[#allocation5 + $0x180] sm:$0xf] }
  0x22   :  { %v2227_v8 = vor.u32 %v2885_v6, %v2226_v5  ;;  %v2228_v10 = vld [vmem:[#allocation5 + $0x1e8] sm:$0xf0]  ;;  %v2876_v13 = vld [vmem:[#allocation5 + $0x19c] sm:$0xf0]  ;;  %v2872_v14 = vld [vmem:[#allocation5 + $0x184] sm:$0xf] }
  0x23   :  { %544 = vmatpush.bf16.msra.mxu0 %v2219_v3  ;;  %v2231_v12 = vor.u32 %v2881_v9, %v2228_v10  ;;  %v2188_v15 = vld [vmem:[#allocation5 + $0x1a0] sm:$0xf0]  ;;  %557 = vmatpush.bf16.msra.mxu1 %v2223_v7  ;;  %v2187_v16 = vor.u32 %v2876_v13, %v2186_v11  ;;  %v2194_v18 = vld [vmem:[#allocation5 + $0x188] sm:$0xf]  ;;  %v2873_v20 = vld [vmem:[#allocation5 + $0x18c] sm:$0xf] }
  0x24   :  { %570 = vmatpush.bf16.msra.mxu2 %v2227_v8  ;;  %v2191_v17 = vor.u32 %v2872_v14, %v2188_v15  ;;  %v2877_v19 = vld [vmem:[#allocation5 + $0x1a4] sm:$0xf0]  ;;  %v2196_v22 = vld [vmem:[#allocation5 + $0x1a8] sm:$0xf0]  ;;  %v2154_v23 = vld [vmem:[#allocation5 + $0x140] sm:$0xf] }
  0x25   :  { %583 = vmatpush.bf16.msra.mxu3 %v2231_v12  ;;  %v2195_v21 = vor.u32 %v2877_v19, %v2194_v18  ;;  %v2868_v24 = vld [vmem:[#allocation5 + $0x15c] sm:$0xf0]  ;;  %v2199_v25 = vor.u32 %v2873_v20, %v2196_v22  ;;  %v2864_v26 = vld [vmem:[#allocation5 + $0x144] sm:$0xf]  ;;  %v2162_v28 = vld [vmem:[#allocation5 + $0x148] sm:$0xf] }
  0x26   :  { %v2156_v27 = vld [vmem:[#allocation5 + $0x160] sm:$0xf0]  ;;  %v2155_v29 = vor.u32 %v2868_v24, %v2154_v23  ;;  %v2869_v30 = vld [vmem:[#allocation5 + $0x164] sm:$0xf0]  ;;  %v2865_v31 = vld [vmem:[#allocation5 + $0x14c] sm:$0xf] }
  0x27   :  { %545 = vmatpush.bf16.msra.mxu0 %v2187_v16  ;;  %v2164_v32 = vld [vmem:[#allocation5 + $0x168] sm:$0xf0]  ;;  %558 = vmatpush.bf16.msra.mxu1 %v2191_v17  ;;  %v2159_v33 = vor.u32 %v2864_v26, %v2156_v27  ;;  %v2163_v34 = vor.u32 %v2869_v30, %v2162_v28  ;;  %v2122_v35 = vld [vmem:[#allocation5 + $0x100] sm:$0xf]  ;;  %v2856_v37 = vld [vmem:[#allocation5 + $0x104] sm:$0xf] }
  0x28   :  { %571 = vmatpush.bf16.msra.mxu2 %v2195_v21  ;;  %v2860_v36 = vld [vmem:[#allocation5 + $0x11c] sm:$0xf0]  ;;  %v2167_v38 = vor.u32 %v2865_v31, %v2164_v32  ;;  %v2124_v39 = vld [vmem:[#allocation5 + $0x120] sm:$0xf0]  ;;  %v2130_v40 = vld [vmem:[#allocation5 + $0x108] sm:$0xf] }
  0x29   :  { %584 = vmatpush.bf16.msra.mxu3 %v2199_v25  ;;  %v2861_v41 = vld [vmem:[#allocation5 + $0x124] sm:$0xf0]  ;;  %v2857_v42 = vld [vmem:[#allocation5 + $0x10c] sm:$0xf]  ;;  %v2123_v44 = vor.u32 %v2860_v36, %v2122_v35  ;;  %v2127_v45 = vor.u32 %v2856_v37, %v2124_v39  ;;  %v2090_v47 = vld [vmem:[#allocation5 + $0xc0] sm:$0xf] }
  0x2a   :  { %v2132_v43 = vld [vmem:[#allocation5 + $0x128] sm:$0xf0]  ;;  %v2131_v46 = vor.u32 %v2861_v41, %v2130_v40  ;;  %v2852_v48 = vld [vmem:[#allocation5 + $0xdc] sm:$0xf0]  ;;  %v2848_v49 = vld [vmem:[#allocation5 + $0xc4] sm:$0xf] }
  0x2b   :  { %546 = vmatpush.bf16.msra.mxu0 %v2155_v29  ;;  %559 = vmatpush.bf16.msra.mxu1 %v2159_v33  ;;  %v2135_v50 = vor.u32 %v2857_v42, %v2132_v43  ;;  %v2092_v51 = vld [vmem:[#allocation5 + $0xe0] sm:$0xf0]  ;;  %v2098_v52 = vld [vmem:[#allocation5 + $0xc8] sm:$0xf]  ;;  %v2849_v54 = vld [vmem:[#allocation5 + $0xcc] sm:$0xf]  ;;  %v2091_v56 = vor.u32 %v2852_v48, %v2090_v47 }
  0x2c   :  { %572 = vmatpush.bf16.msra.mxu2 %v2163_v34  ;;  %v2853_v53 = vld [vmem:[#allocation5 + $0xe4] sm:$0xf0]  ;;  %v2100_v55 = vld [vmem:[#allocation5 + $0xe8] sm:$0xf0]  ;;  %v2095_v57 = vor.u32 %v2848_v49, %v2092_v51  ;;  %v2058_v59 = vld [vmem:[#allocation5 + $0x80] sm:$0xf] }
  0x2d   :  { %585 = vmatpush.bf16.msra.mxu3 %v2167_v38  ;;  %v2099_v58 = vor.u32 %v2853_v53, %v2098_v52  ;;  %v2844_v60 = vld [vmem:[#allocation5 + $0x9c] sm:$0xf0]  ;;  %v2840_v61 = vld [vmem:[#allocation5 + $0x84] sm:$0xf]  ;;  %v2103_v62 = vor.u32 %v2849_v54, %v2100_v55  ;;  %v2066_v0 = vld [vmem:[#allocation5 + $0x88] sm:$0xf] }
  0x2e   :  { %v2060_v63 = vld [vmem:[#allocation5 + $0xa0] sm:$0xf0]  ;;  %v2845_v1 = vld [vmem:[#allocation5 + $0xa4] sm:$0xf0]  ;;  %v2841_v2 = vld [vmem:[#allocation5 + $0x8c] sm:$0xf]  ;;  %v2059_v4 = vor.u32 %v2844_v60, %v2058_v59 }
  0x2f   :  { %547 = vmatpush.bf16.msra.mxu0 %v2123_v44  ;;  %560 = vmatpush.bf16.msra.mxu1 %v2127_v45  ;;  %v2068_v3 = vld [vmem:[#allocation5 + $0xa8] sm:$0xf0]  ;;  %v2063_v5 = vor.u32 %v2840_v61, %v2060_v63  ;;  %v2067_v6 = vor.u32 %v2845_v1, %v2066_v0  ;;  %v2026_v7 = vld [vmem:[#allocation5 + $0x40] sm:$0xf]  ;;  %v2832_v9 = vld [vmem:[#allocation5 + $0x44] sm:$0xf] }
  0x30   :  { %573 = vmatpush.bf16.msra.mxu2 %v2131_v46  ;;  %v2836_v8 = vld [vmem:[#allocation5 + $0x5c] sm:$0xf0]  ;;  %v2071_v10 = vor.u32 %v2841_v2, %v2068_v3  ;;  %v2028_v11 = vld [vmem:[#allocation5 + $0x60] sm:$0xf0]  ;;  %v2034_v12 = vld [vmem:[#allocation5 + $0x48] sm:$0xf] }
  0x31   :  { %586 = vmatpush.bf16.msra.mxu3 %v2135_v50  ;;  %v2837_v13 = vld [vmem:[#allocation5 + $0x64] sm:$0xf0]  ;;  %v2833_v14 = vld [vmem:[#allocation5 + $0x4c] sm:$0xf]  ;;  %v2027_v16 = vor.u32 %v2836_v8, %v2026_v7  ;;  %v1994_v17 = vld [vmem:[#allocation5] sm:$0xf]  ;;  %v2031_v19 = vor.u32 %v2832_v9, %v2028_v11 }
  0x32   :  { %v2036_v15 = vld [vmem:[#allocation5 + $0x68] sm:$0xf0]  ;;  %v2828_v18 = vld [vmem:[#allocation5 + $0x1c] sm:$0xf0]  ;;  %v2035_v20 = vor.u32 %v2837_v13, %v2034_v12  ;;  %v2824_v21 = vld [vmem:[#allocation5 + $0x4] sm:$0xf] }
  0x33   :  { %548 = vmatpush.bf16.msra.mxu0 %v2091_v56  ;;  %561 = vmatpush.bf16.msra.mxu1 %v2095_v57  ;;  %v1996_v22 = vld [vmem:[#allocation5 + $0x20] sm:$0xf0]  ;;  %v2002_v23 = vld [vmem:[#allocation5 + $0x8] sm:$0xf]  ;;  %v2039_v24 = vor.u32 %v2833_v14, %v2036_v15  ;;  %v2825_v26 = vld [vmem:[#allocation5 + $0xc] sm:$0xf]  ;;  %v1995_v31 = vor.u32 %v2828_v18, %v1994_v17 }
  0x34   :  { %574 = vmatpush.bf16.msra.mxu2 %v2099_v58  ;;  %v2829_v25 = vld [vmem:[#allocation5 + $0x24] sm:$0xf0]  ;;  %v2004_v27 = vld [vmem:[#allocation5 + $0x28] sm:$0xf0]  ;;  %v2234_v28 = vld [vmem:[#allocation5 + $0x1d0] sm:$0xf]  ;;  %v1999_v35 = vor.u32 %v2824_v21, %v1996_v22 }
  0x35   :  { %587 = vmatpush.bf16.msra.mxu3 %v2103_v62  ;;  %v2886_v29 = vld [vmem:[#allocation5 + $0x1ec] sm:$0xf0]  ;;  %v2882_v30 = vld [vmem:[#allocation5 + $0x1d4] sm:$0xf]  ;;  %v2242_v33 = vld [vmem:[#allocation5 + $0x1d8] sm:$0xf]  ;;  %v2003_v36 = vor.u32 %v2829_v25, %v2002_v23  ;;  %v2007_v40 = vor.u32 %v2825_v26, %v2004_v27 }
  0x36   :  { %v2236_v32 = vld [vmem:[#allocation5 + $0x1f0] sm:$0xf0]  ;;  %v2887_v34 = vld [vmem:[#allocation5 + $0x1f4] sm:$0xf0]  ;;  %v2883_v37 = vld [vmem:[#allocation5 + $0x1dc] sm:$0xf]  ;;  %v2235_v41 = vor.u32 %v2886_v29, %v2234_v28 }
  0x37   :  { %549 = vmatpush.bf16.msra.mxu0 %v2059_v4  ;;  %562 = vmatpush.bf16.msra.mxu1 %v2063_v5  ;;  %v2244_v38 = vld [vmem:[#allocation5 + $0x1f8] sm:$0xf0]  ;;  %v2239_v42 = vor.u32 %v2882_v30, %v2236_v32  ;;  %v2243_v43 = vor.u32 %v2887_v34, %v2242_v33  ;;  %v2202_v44 = vld [vmem:[#allocation5 + $0x190] sm:$0xf]  ;;  %v2874_v46 = vld [vmem:[#allocation5 + $0x194] sm:$0xf] }
  0x38   :  { %575 = vmatpush.bf16.msra.mxu2 %v2067_v6  ;;  %v140_v39 = vld [vmem:[#allocation2] sm:$0xff]  ;;  %v2878_v45 = vld [vmem:[#allocation5 + $0x1ac] sm:$0xf0]  ;;  %v2247_v47 = vor.u32 %v2883_v37, %v2244_v38  ;;  %v2204_v48 = vld [vmem:[#allocation5 + $0x1b0] sm:$0xf0]  ;;  %s3276_s16 = smov [#allocation14]  }
  0x39   :  { %588 = vmatpush.bf16.msra.mxu3 %v2071_v10  ;;  %v2210_v49 = vld [vmem:[#allocation5 + $0x198] sm:$0xf]  ;;  %v3358_v51 = vpack.c.bf16 %v140_v39, %v140_v39  ;;  %v2875_v52 = vld [vmem:[#allocation5 + $0x19c] sm:$0xf]  ;;  %v2203_v54 = vor.u32 %v2878_v45, %v2202_v44  ;;  %v2207_v55 = vor.u32 %v2874_v46, %v2204_v48  ;;  %v2170_v57 = vld [vmem:[#allocation5 + $0x150] sm:$0xf] }
  0x3a   :  { %v2879_v50 = vld [vmem:[#allocation5 + $0x1b4] sm:$0xf0]  ;;  %v2212_v53 = vld [vmem:[#allocation5 + $0x1b8] sm:$0xf0]  ;;  %v2870_v58 = vld [vmem:[#allocation5 + $0x16c] sm:$0xf0] }
  0x3b   :  { %550 = vmatpush.bf16.msra.mxu0 %v2027_v16  ;;  %563 = vmatpush.bf16.msra.mxu1 %v2031_v19  ;;  %v2211_v56 = vor.u32 %v2879_v50, %v2210_v49  ;;  %v2866_v59 = vld [vmem:[#allocation5 + $0x154] sm:$0xf]  ;;  %v2215_v60 = vor.u32 %v2875_v52, %v2212_v53  ;;  %v2178_v62 = vld [vmem:[#allocation5 + $0x158] sm:$0xf]  ;;  %v2867_v0 = vld [vmem:[#allocation5 + $0x15c] sm:$0xf]  ;;  %v2171_v2 = vor.u32 %v2870_v58, %v2170_v57 }
  0x3c   :  { %576 = vmatpush.bf16.msra.mxu2 %v2035_v20  ;;  %v2172_v61 = vld [vmem:[#allocation5 + $0x170] sm:$0xf0]  ;;  %v2871_v63 = vld [vmem:[#allocation5 + $0x174] sm:$0xf0]  ;;  %v2180_v1 = vld [vmem:[#allocation5 + $0x178] sm:$0xf0] }
  0x3d   :  { %589 = vmatpush.bf16.msra.mxu3 %v2039_v24  ;;  %v2175_v3 = vor.u32 %v2866_v59, %v2172_v61  ;;  %v2179_v4 = vor.u32 %v2871_v63, %v2178_v62  ;;  %v2138_v5 = vld [vmem:[#allocation5 + $0x110] sm:$0xf]  ;;  %v2858_v7 = vld [vmem:[#allocation5 + $0x114] sm:$0xf]  ;;  %v2183_v8 = vor.u32 %v2867_v0, %v2180_v1  ;;  %v2146_v10 = vld [vmem:[#allocation5 + $0x118] sm:$0xf] }
  0x3e   :  { %v2862_v6 = vld [vmem:[#allocation5 + $0x12c] sm:$0xf0]  ;;  %v2140_v9 = vld [vmem:[#allocation5 + $0x130] sm:$0xf0]  ;;  %v2863_v11 = vld [vmem:[#allocation5 + $0x134] sm:$0xf0] }
  0x3f   :  { %551 = vmatpush.bf16.msra.mxu0 %v1995_v31  ;;  %564 = vmatpush.bf16.msra.mxu1 %v1999_v35  ;;  %v2859_v12 = vld [vmem:[#allocation5 + $0x11c] sm:$0xf]  ;;  %v2139_v14 = vor.u32 %v2862_v6, %v2138_v5  ;;  %v2106_v15 = vld [vmem:[#allocation5 + $0xd0] sm:$0xf]  ;;  %v2143_v16 = vor.u32 %v2858_v7, %v2140_v9  ;;  %v2147_v17 = vor.u32 %v2863_v11, %v2146_v10  ;;  %v2850_v19 = vld [vmem:[#allocation5 + $0xd4] sm:$0xf] }
  0x40   :  { %577 = vmatpush.bf16.msra.mxu2 %v2003_v36  ;;  %v2148_v13 = vld [vmem:[#allocation5 + $0x138] sm:$0xf0]  ;;  %v2854_v18 = vld [vmem:[#allocation5 + $0xec] sm:$0xf0]  ;;  %v2108_v20 = vld [vmem:[#allocation5 + $0xf0] sm:$0xf0] }
  0x41   :  { %590 = vmatpush.bf16.msra.mxu3 %v2007_v40  ;;  %v2151_v21 = vor.u32 %v2859_v12, %v2148_v13  ;;  %v2114_v22 = vld [vmem:[#allocation5 + $0xd8] sm:$0xf]  ;;  %v2851_v24 = vld [vmem:[#allocation5 + $0xdc] sm:$0xf]  ;;  %v2107_v26 = vor.u32 %v2854_v18, %v2106_v15  ;;  %v2111_v27 = vor.u32 %v2850_v19, %v2108_v20  ;;  %v2074_v29 = vld [vmem:[#allocation5 + $0x90] sm:$0xf] }
  0x42   :  { %552 = vmatmul.bf16.vlgmr.msra.gmra.mxu0 %v3358_v51  ;;  %565 = vmatmul.bf16.vlgmr.msra.gmra.mxu1 %v3358_v51  ;;  %v2855_v23 = vld [vmem:[#allocation5 + $0xf4] sm:$0xf0]  ;;  %v2116_v25 = vld [vmem:[#allocation5 + $0xf8] sm:$0xf0]  ;;  %v2846_v30 = vld [vmem:[#allocation5 + $0xac] sm:$0xf0] }
  0x43   :  { %596 = vmatpush.bf16.msrb.mxu0 %v2235_v41  ;;  %609 = vmatpush.bf16.msrb.mxu1 %v2239_v42  ;;  %v2115_v28 = vor.u32 %v2855_v23, %v2114_v22  ;;  %v2842_v31 = vld [vmem:[#allocation5 + $0x94] sm:$0xf]  ;;  %v2119_v32 = vor.u32 %v2851_v24, %v2116_v25  ;;  %v2082_v34 = vld [vmem:[#allocation5 + $0x98] sm:$0xf]  ;;  %v2843_v36 = vld [vmem:[#allocation5 + $0x9c] sm:$0xf]  ;;  %v2075_v38 = vor.u32 %v2846_v30, %v2074_v29 }
  0x44   :  { %622 = vmatpush.bf16.msrb.mxu2 %v2243_v43  ;;  %591 = vmatmul.bf16.vlgmr.msra.gmra.mxu3 %v3358_v51  ;;  %v2076_v33 = vld [vmem:[#allocation5 + $0xb0] sm:$0xf0]  ;;  %v2847_v35 = vld [vmem:[#allocation5 + $0xb4] sm:$0xf0]  ;;  %v2084_v37 = vld [vmem:[#allocation5 + $0xb8] sm:$0xf0] }
  0x45   :  { %635 = vmatpush.bf16.msrb.mxu3 %v2247_v47  ;;  %578 = vmatmul.bf16.vlgmr.msra.gmra.mxu2 %v3358_v51  ;;  %v2079_v39 = vor.u32 %v2842_v31, %v2076_v33  ;;  %v2083_v40 = vor.u32 %v2847_v35, %v2082_v34  ;;  %v2042_v41 = vld [vmem:[#allocation5 + $0x50] sm:$0xf]  ;;  %v2834_v43 = vld [vmem:[#allocation5 + $0x54] sm:$0xf]  ;;  %v2087_v44 = vor.u32 %v2843_v36, %v2084_v37  ;;  %v2050_v46 = vld [vmem:[#allocation5 + $0x58] sm:$0xf] }
  0x46   :  { %v2838_v42 = vld [vmem:[#allocation5 + $0x6c] sm:$0xf0]  ;;  %v2044_v45 = vld [vmem:[#allocation5 + $0x70] sm:$0xf0]  ;;  %v2839_v47 = vld [vmem:[#allocation5 + $0x74] sm:$0xf0] }
  0x47   :  { %597 = vmatpush.bf16.msrb.mxu0 %v2203_v54  ;;  %610 = vmatpush.bf16.msrb.mxu1 %v2207_v55  ;;  %v2835_v48 = vld [vmem:[#allocation5 + $0x5c] sm:$0xf]  ;;  %v2043_v50 = vor.u32 %v2838_v42, %v2042_v41  ;;  %v2047_v52 = vor.u32 %v2834_v43, %v2044_v45  ;;  %v2051_v53 = vor.u32 %v2839_v47, %v2050_v46  ;;  %v2010_v54 = vld [vmem:[#allocation5 + $0x10] sm:$0xf]  ;;  %v2012_v58 = vld [vmem:[#allocation5 + $0x30] sm:$0xf0] }
  0x48   :  { %623 = vmatpush.bf16.msrb.mxu2 %v2211_v56  ;;  %v2052_v49 = vld [vmem:[#allocation5 + $0x78] sm:$0xf0]  ;;  %v2830_v55 = vld [vmem:[#allocation5 + $0x2c] sm:$0xf0]  ;;  %v2826_v56 = vld [vmem:[#allocation5 + $0x14] sm:$0xf] }
  0x49   :  { %636 = vmatpush.bf16.msrb.mxu3 %v2215_v60  ;;  %v2055_v57 = vor.u32 %v2835_v48, %v2052_v49  ;;  %v2018_v59 = vld [vmem:[#allocation5 + $0x18] sm:$0xf]  ;;  %v2827_v61 = vld [vmem:[#allocation5 + $0x1c] sm:$0xf]  ;;  %v2011_v63 = vor.u32 %v2830_v55, %v2010_v54  ;;  %v2015_v0 = vor.u32 %v2826_v56, %v2012_v58  ;;  %v206_v9 = vld [vmem:[#allocation7] sm:$0xff]  ;;  %v3274_v42 = vmov 1024.0  }
  0x4a   :  { %v2831_v60 = vld [vmem:[#allocation5 + $0x34] sm:$0xf0]  ;;  %v2020_v62 = vld [vmem:[#allocation5 + $0x38] sm:$0xf0]  ;;  %v208_v11 = vperm.slane %v206_v9, 0  ;;  %v209_v12 = vperm.slane %v206_v9, 1  ;;  %3049 = vrcp.f32 %v3274_v42 }
  0x4b   :  { %598 = vmatpush.bf16.msrb.mxu0 %v2171_v2  ;;  %611 = vmatpush.bf16.msrb.mxu1 %v2175_v3  ;;  %v2019_v1 = vor.u32 %v2831_v60, %v2018_v59  ;;  %v2023_v2 = vor.u32 %v2827_v61, %v2020_v62  ;;  %v211_v18 = vperm.slane %v206_v9, 3  ;;  %v212_v19 = vperm.slane %v206_v9, 4  ;;  %v2306_v46 = vld [vmem:[#allocation11 + $0x70] sm:$0xf]  ;;  %v2903_v47 = vld [vmem:[#allocation11 + $0x74] sm:$0xf0] }
  0x4c   :  { %624 = vmatpush.bf16.msrb.mxu2 %v2179_v4  ;;  %v213_v23 = vperm.slane %v206_v9, 5  ;;  %v214_v29 = vperm.slane %v206_v9, 6  ;;  %v215_v30 = vperm.slane %v206_v9, 7  ;;  %v2370_v48 = vld [vmem:[#allocation11 + $0xf0] sm:$0xf]  ;;  %s1977_s17 = sshll.u32 %s3276_s16, 4  ;;  %s1978_s17 = int_to_ptr.vmem [resolvable:$true] %s1977_s17 }
  0x4d   :  { %637 = vmatpush.bf16.msrb.mxu3 %v2183_v8  ;;  %v2935_v54 = vld [vmem:[#allocation11 + $0x174] sm:$0xf0]  ;;  %v2298_v59 = vld [vmem:[#allocation11 + $0x60] sm:$0xf]  ;;  %v2901_v61 = vld [vmem:[#allocation11 + $0x64] sm:$0xf0] }
  0x4e   :  { %v2951_v58 = vld [vmem:[#allocation11 + $0x1f4] sm:$0xf0]  ;;  %v2362_v62 = vld [vmem:[#allocation11 + $0xe0] sm:$0xf]  ;;  %s1979_s20 = sshll.u32 %s3533_s11, 4  ;;  %s1980_s20 = int_to_ptr.hbm [resolvable:$true] %s1979_s20 }
  0x4f   :  { %599 = vmatpush.bf16.msrb.mxu0 %v2139_v14  ;;  %612 = vmatpush.bf16.msrb.mxu1 %v2143_v16  ;;  %v210_v16 = vperm.slane %v206_v9, 2  ;;  %v2899_v9 = vld [vmem:[#allocation11 + $0x54] sm:$0xf0] }
  0x50   :  { %625 = vmatpush.bf16.msrb.mxu2 %v2147_v17  ;;  %v3050_v43 = vpop.eup %3049  ;;  %v2895_v42 = vld [vmem:[#allocation11 + $0x34] sm:$0xf0] }
  0x51   :  { %638 = vmatpush.bf16.msrb.mxu3 %v2151_v21  ;;  %vm662_vm0 = vweird.f32 %v3050_v43 }
  0x53   :  { %600 = vmatpush.bf16.msrb.mxu0 %v2107_v26  ;;  %613 = vmatpush.bf16.msrb.mxu1 %v2111_v27 }
  0x54   :  { %626 = vmatpush.bf16.msrb.mxu2 %v2115_v28 }
  0x55   :  { %639 = vmatpush.bf16.msrb.mxu3 %v2119_v32 }
  0x57   :  { %601 = vmatpush.bf16.msrb.mxu0 %v2075_v38  ;;  %614 = vmatpush.bf16.msrb.mxu1 %v2079_v39 }
  0x58   :  { %627 = vmatpush.bf16.msrb.mxu2 %v2083_v40 }
  0x59   :  { %640 = vmatpush.bf16.msrb.mxu3 %v2087_v44  ;;  %v658_v44 = vmul.f32 1024.0, %v3050_v43 }
  0x5b   :  { %602 = vmatpush.bf16.msrb.mxu0 %v2043_v50  ;;  %615 = vmatpush.bf16.msrb.mxu1 %v2047_v52  ;;  %v659_v45 = vsub.f32 1.0, %v658_v44  ;;  %v2307_v50 = vor.u32 %v2903_v47, %v2306_v46  ;;  %v2919_v52 = vld [vmem:[#allocation11 + $0xf4] sm:$0xf0]  ;;  %v2338_v44 = vld [vmem:[#allocation11 + $0xb0] sm:$0xf] }
  0x5c   :  { %628 = vmatpush.bf16.msrb.mxu2 %v2051_v53  ;;  %v2434_v53 = vld [vmem:[#allocation11 + $0x170] sm:$0xf]  ;;  %v2371_v55 = vor.u32 %v2919_v52, %v2370_v48  ;;  %v2927_v52 = vld [vmem:[#allocation11 + $0x134] sm:$0xf0] }
  0x5d   :  { %641 = vmatpush.bf16.msrb.mxu3 %v2055_v57  ;;  %v660_v49 = vmul.f32 %v3050_v43, %v659_v45  ;;  %v2435_v56 = vor.u32 %v2935_v54, %v2434_v53  ;;  %v2498_v57 = vld [vmem:[#allocation11 + $0x1f0] sm:$0xf]  ;;  %v2911_v45 = vld [vmem:[#allocation11 + $0xb4] sm:$0xf0] }
  0x5e   :  { %v2499_v60 = vor.u32 %v2951_v58, %v2498_v57  ;;  %v2466_v54 = vld [vmem:[#allocation11 + $0x1b0] sm:$0xf]  ;;  %v2266_v57 = vld [vmem:[#allocation11 + $0x20] sm:$0xf]  ;;  %v2893_v58 = vld [vmem:[#allocation11 + $0x24] sm:$0xf0] }
  0x5f   :  { %603 = vmatpush.bf16.msrb.mxu0 %v2011_v63  ;;  %616 = vmatpush.bf16.msrb.mxu1 %v2015_v0  ;;  %v2917_v63 = vld [vmem:[#allocation11 + $0xe4] sm:$0xf0]  ;;  %v2299_v0 = vor.u32 %v2901_v61, %v2298_v59 }
  0x60   :  { %629 = vmatpush.bf16.msrb.mxu2 %v2019_v1  ;;  %v2363_v1 = vor.u32 %v2917_v63, %v2362_v62  ;;  %v2909_v61 = vld [vmem:[#allocation11 + $0xa4] sm:$0xf0] }
  0x61   :  { %642 = vmatpush.bf16.msrb.mxu3 %v2023_v2  ;;  %v2426_v2 = vld [vmem:[#allocation11 + $0x160] sm:$0xf] }
  0x62   :  { %604 = vmatmul.bf16.vlgmr.msrb.gmra.mxu0 %v3358_v51  ;;  %617 = vmatmul.bf16.vlgmr.msrb.gmra.mxu1 %v3358_v51 }
  0x63   :  { %630 = vmatmul.bf16.vlgmr.msrb.gmra.mxu2 %v3358_v51  ;;  %1552 = vmatpush.bf16.msra.mxu0 %v2307_v50  ;;  %v2402_v50 = vld [vmem:[#allocation11 + $0x130] sm:$0xf] }
  0x64   :  { %643 = vmatmul.bf16.vlgmr.msrb.gmra.mxu3 %v3358_v51  ;;  %1565 = vmatpush.bf16.msra.mxu1 %v2371_v55  ;;  %v2943_v55 = vld [vmem:[#allocation11 + $0x1b4] sm:$0xf0]  ;;  %v2403_v59 = vor.u32 %v2927_v52, %v2402_v50  ;;  %v2442_v52 = vld [vmem:[#allocation11 + $0x180] sm:$0xf] }
  0x65   :  { %1578 = vmatpush.bf16.msra.mxu2 %v2435_v56  ;;  %1591 = vmatpush.bf16.msra.mxu3 %v2499_v60  ;;  %v2330_v60 = vld [vmem:[#allocation11 + $0xa0] sm:$0xf] }
  0x67   :  { %1553 = vmatpush.bf16.msra.mxu0 %v2299_v0  ;;  %v2467_v0 = vor.u32 %v2943_v55, %v2466_v54  ;;  %v2562_v54 = vld [vmem:[#allocation11 + $0x270] sm:$0xf] }
  0x68   :  { %1566 = vmatpush.bf16.msra.mxu1 %v2363_v1  ;;  %v2394_v1 = vld [vmem:[#allocation11 + $0x120] sm:$0xf] }
  0xbf   :  { %v553_v3 = vpop.f32.mrf.mxu0  ;;  %v566_v4 = vpop.f32.mrf.mxu1 }
  0xc0   :  { %v3368_v14 = vadd.f32 %v553_v3, %v208_v11  ;;  %v3370_v15 = vadd.f32 %v566_v4, %v209_v12  ;;  %v2933_v3 = vld [vmem:[#allocation11 + $0x164] sm:$0xf0]  ;;  %v2490_v4 = vld [vmem:[#allocation11 + $0x1e0] sm:$0xf]  ;;  %v2354_v11 = vld [vmem:[#allocation11 + $0xd0] sm:$0xf] }
  0xc1   :  { %v2915_v12 = vld [vmem:[#allocation11 + $0xd4] sm:$0xf0] }
  0xc2   :  { %v648_v17 = vadd.f32 %v3370_v15, %v3368_v14 }
  0xc7   :  { %v592_v6 = vpop.f32.mrf.mxu3  ;;  %v555_v7 = vpop.f32.mrf.mxu0 }
  0xc8   :  { %v579_v5 = vpop.f32.mrf.mxu2  ;;  %v568_v8 = vpop.f32.mrf.mxu1  ;;  %v3377_v21 = vadd.f32 %v592_v6, %v211_v18  ;;  %v2427_v6 = vor.u32 %v2933_v3, %v2426_v2  ;;  %v2949_v7 = vld [vmem:[#allocation11 + $0x1e4] sm:$0xf0]  ;;  %v2482_v18 = vld [vmem:[#allocation11 + $0x1d0] sm:$0xf]  ;;  %v2267_v3 = vor.u32 %v2893_v58, %v2266_v57 }
  0xc9   :  { %v3374_v51 = vadd.f32 %v579_v5, %v210_v16  ;;  %v661_v5 = vadd.f32 %v3050_v43, %v660_v49  ;;  %v2290_v8 = vld [vmem:[#allocation11 + $0x50] sm:$0xf]  ;;  %v2925_v2 = vld [vmem:[#allocation11 + $0x124] sm:$0xf0] }
  0xca   :  { %v2291_v16 = vor.u32 %v2899_v9, %v2290_v8  ;;  %1579 = vmatpush.bf16.msra.mxu2 %v2427_v6  ;;  %v2331_v8 = vor.u32 %v2909_v61, %v2330_v60  ;;  %v2258_v9 = vld [vmem:[#allocation11 + $0x10] sm:$0xf]  ;;  %v2999_v60 = vld [vmem:[#allocation11 + $0x374] sm:$0xf0] }
  0xcb   :  { %v649_v20 = vadd.f32 %v648_v17, %v3374_v51  ;;  %v2931_v17 = vld [vmem:[#allocation11 + $0x154] sm:$0xf0]  ;;  %v2754_v61 = vld [vmem:[#allocation11 + $0x3f0] sm:$0xf] }
  0xcc   :  { %1554 = vmatpush.bf16.msra.mxu0 %v2291_v16 }
  0xcd   :  { %v650_v26 = vadd.f32 %v649_v20, %v3377_v21  ;;  %v2355_v20 = vor.u32 %v2915_v12, %v2354_v11  ;;  %v2395_v11 = vor.u32 %v2925_v2, %v2394_v1  ;;  %v2322_v12 = vld [vmem:[#allocation11 + $0x90] sm:$0xf]  ;;  %v2965_v1 = vld [vmem:[#allocation11 + $0x264] sm:$0xf0] }
  0xcf   :  { %v594_v13 = vpop.f32.mrf.mxu3  ;;  %1567 = vmatpush.bf16.msra.mxu1 %v2355_v20  ;;  %v2923_v20 = vld [vmem:[#allocation11 + $0x114] sm:$0xf0] }
  0xd0   :  { %v581_v10 = vpop.f32.mrf.mxu2  ;;  %v2418_v13 = vld [vmem:[#allocation11 + $0x150] sm:$0xf] }
  0xd1   :  { %v2491_v10 = vor.u32 %v2949_v7, %v2490_v4  ;;  %v2458_v4 = vld [vmem:[#allocation11 + $0x1a0] sm:$0xf] }
  0xd3   :  { %1592 = vmatpush.bf16.msra.mxu3 %v2491_v10  ;;  %v2891_v10 = vld [vmem:[#allocation11 + $0x14] sm:$0xf0] }
  0xdf   :  { %v605_v22 = vpop.f32.mrf.mxu0  ;;  %v618_v25 = vpop.f32.mrf.mxu1 }
  0xe0   :  { %v3379_v24 = vadd.f32 %v605_v22, %v212_v19  ;;  %v3383_v28 = vadd.f32 %v618_v25, %v213_v23  ;;  %v2947_v19 = vld [vmem:[#allocation11 + $0x1d4] sm:$0xf0]  ;;  %v2419_v22 = vor.u32 %v2931_v17, %v2418_v13  ;;  %v2282_v23 = vld [vmem:[#allocation11 + $0x40] sm:$0xf]  ;;  %v2897_v25 = vld [vmem:[#allocation11 + $0x44] sm:$0xf0] }
  0xe1   :  { %v2907_v13 = vld [vmem:[#allocation11 + $0x94] sm:$0xf0] }
  0xe2   :  { %v651_v27 = vadd.f32 %v650_v26, %v3379_v24  ;;  %v3393_v26 = vsel %vm662_vm0, %v3050_v43, %v661_v5  ;;  %1580 = vmatpush.bf16.msra.mxu2 %v2419_v22  ;;  %v2941_v5 = vld [vmem:[#allocation11 + $0x1a4] sm:$0xf0]  ;;  %v2259_v22 = vor.u32 %v2891_v10, %v2258_v9  ;;  %v2746_v9 = vld [vmem:[#allocation11 + $0x3e0] sm:$0xf] }
  0xe3   :  { %v3013_v10 = vld [vmem:[#allocation11 + $0x3e4] sm:$0xf0] }
  0xe4   :  { %v652_v32 = vadd.f32 %v651_v27, %v3383_v28  ;;  %v2483_v27 = vor.u32 %v2947_v19, %v2482_v18  ;;  %v2459_v18 = vor.u32 %v2941_v5, %v2458_v4  ;;  %v2386_v19 = vld [vmem:[#allocation11 + $0x110] sm:$0xf]  ;;  %v2618_v4 = vld [vmem:[#allocation11 + $0x2e0] sm:$0xf]  ;;  %v2981_v5 = vld [vmem:[#allocation11 + $0x2e4] sm:$0xf0] }
  0xe6   :  { %v631_v31 = vpop.f32.mrf.mxu2  ;;  %1593 = vmatpush.bf16.msra.mxu3 %v2483_v27 }
  0xe7   :  { %v3386_v33 = vadd.f32 %v631_v31, %v214_v29  ;;  %v644_v34 = vpop.f32.mrf.mxu3  ;;  %v607_v35 = vpop.f32.mrf.mxu0  ;;  %v2346_v29 = vld [vmem:[#allocation11 + $0xc0] sm:$0xf] }
  0xe8   :  { %v3388_v36 = vadd.f32 %v644_v34, %v215_v30  ;;  %v620_v37 = vpop.f32.mrf.mxu1  ;;  %v2913_v30 = vld [vmem:[#allocation11 + $0xc4] sm:$0xf0]  ;;  %v2410_v31 = vld [vmem:[#allocation11 + $0x140] sm:$0xf]  ;;  %v2283_v35 = vor.u32 %v2897_v25, %v2282_v23  ;;  %v2450_v23 = vld [vmem:[#allocation11 + $0x190] sm:$0xf] }
  0xe9   :  { %v653_v38 = vadd.f32 %v652_v32, %v3386_v33  ;;  %v2929_v32 = vld [vmem:[#allocation11 + $0x144] sm:$0xf0]  ;;  %v2474_v37 = vld [vmem:[#allocation11 + $0x1c0] sm:$0xf]  ;;  %v2939_v25 = vld [vmem:[#allocation11 + $0x194] sm:$0xf0] }
  0xea   :  { %v2411_v43 = vor.u32 %v2929_v32, %v2410_v31  ;;  %1555 = vmatpush.bf16.msra.mxu0 %v2283_v35  ;;  %v2387_v31 = vor.u32 %v2923_v20, %v2386_v19  ;;  %v2451_v35 = vor.u32 %v2939_v25, %v2450_v23  ;;  %v2979_v19 = vld [vmem:[#allocation11 + $0x2d4] sm:$0xf0]  ;;  %v2674_v20 = vld [vmem:[#allocation11 + $0x350] sm:$0xf] }
  0xeb   :  { %v654_v39 = vadd.f32 %v653_v38, %v3388_v36  ;;  %v2945_v38 = vld [vmem:[#allocation11 + $0x1c4] sm:$0xf0] }
  0xec   :  { %v2475_v49 = vor.u32 %v2945_v38, %v2474_v37  ;;  %1581 = vmatpush.bf16.msra.mxu2 %v2411_v43  ;;  %v2905_v43 = vld [vmem:[#allocation11 + $0x84] sm:$0xf0] }
  0xed   :  { %655 = vadd.xlane.f32.xlu0 %v654_v39 }
  0xee   :  { %v633_v40 = vpop.f32.mrf.mxu2  ;;  %1594 = vmatpush.bf16.msra.mxu3 %v2475_v49 }
  0xef   :  { %v646_v41 = vpop.f32.mrf.mxu3  ;;  %v2347_v40 = vor.u32 %v2913_v30, %v2346_v29  ;;  %v2323_v30 = vor.u32 %v2907_v13, %v2322_v12  ;;  %v2747_v12 = vor.u32 %v3013_v10, %v2746_v9  ;;  %v2546_v13 = vld [vmem:[#allocation11 + $0x250] sm:$0xf]  ;;  %v2971_v9 = vld [vmem:[#allocation11 + $0x294] sm:$0xf0] }
  0xf0   :  { %v2274_v41 = vld [vmem:[#allocation11 + $0x30] sm:$0xf]  ;;  %1582 = vmatpush.bf16.msra.mxu2 %v2403_v59 }
  0xf1   :  { %v2275_v53 = vor.u32 %v2895_v42, %v2274_v41  ;;  %1568 = vmatpush.bf16.msra.mxu1 %v2347_v40  ;;  %v2889_v40 = vld [vmem:[#allocation11 + $0x4] sm:$0xf0]  ;;  %v2314_v41 = vld [vmem:[#allocation11 + $0x80] sm:$0xf]  ;;  %v2690_v59 = vld [vmem:[#allocation11 + $0x370] sm:$0xf] }
  0xf2   :  { %1595 = vmatpush.bf16.msra.mxu3 %v2467_v0  ;;  %v2315_v49 = vor.u32 %v2905_v43, %v2314_v41  ;;  %v2554_v0 = vld [vmem:[#allocation11 + $0x260] sm:$0xf]  ;;  %v2642_v10 = vld [vmem:[#allocation11 + $0x310] sm:$0xf] }
  0xf3   :  { %1556 = vmatpush.bf16.msra.mxu0 %v2275_v53  ;;  %v2937_v53 = vld [vmem:[#allocation11 + $0x184] sm:$0xf0]  ;;  %v2730_v41 = vld [vmem:[#allocation11 + $0x3c0] sm:$0xf] }
  0xf4   :  { %1583 = vmatpush.bf16.msra.mxu2 %v2395_v11  ;;  %v2443_v55 = vor.u32 %v2937_v53, %v2442_v52  ;;  %v2975_v52 = vld [vmem:[#allocation11 + $0x2b4] sm:$0xf0]  ;;  %v2658_v53 = vld [vmem:[#allocation11 + $0x330] sm:$0xf] }
  0xf6   :  { %1596 = vmatpush.bf16.msra.mxu3 %v2459_v18 }
  0xf7   :  { %1557 = vmatpush.bf16.msra.mxu0 %v2267_v3  ;;  %v2555_v3 = vor.u32 %v2965_v1, %v2554_v0  ;;  %v2989_v0 = vld [vmem:[#allocation11 + $0x324] sm:$0xf0] }
  0xf8   :  { %1584 = vmatpush.bf16.msra.mxu2 %v2387_v31  ;;  %v2538_v31 = vld [vmem:[#allocation11 + $0x240] sm:$0xf] }
  0xfa   :  { %1597 = vmatpush.bf16.msra.mxu3 %v2451_v35 }
  0xfb   :  { %1558 = vmatpush.bf16.msra.mxu0 %v2259_v22  ;;  %v2995_v22 = vld [vmem:[#allocation11 + $0x354] sm:$0xf0] }
  0xfc   :  { %v2675_v25 = vor.u32 %v2995_v22, %v2674_v20  ;;  %v2953_v20 = vld [vmem:[#allocation11 + $0x204] sm:$0xf0]  ;;  %v2570_v22 = vld [vmem:[#allocation11 + $0x280] sm:$0xf] }
  0xfe   :  { %1598 = vmatpush.bf16.msra.mxu3 %v2443_v55 }
 0x160   :  { %v656_v34 = vpop.xlane.xlu0 %655 }
 0x161   :  { %v3396_v39 = vmul.f32 %v3393_v26, %v656_v34 }
 0x163   :  { %v3400_v46 = vsub.f32 %v3368_v14, %v3396_v39  ;;  %v3404_v47 = vsub.f32 %v3370_v15, %v3396_v39  ;;  %v3408_v48 = vsub.f32 %v3374_v51, %v3396_v39  ;;  %v3412_v56 = vsub.f32 %v3377_v21, %v3396_v39 }
 0x164   :  { %v2339_v51 = vor.u32 %v2911_v45, %v2338_v44  ;;  %v3420_v62 = vsub.f32 %v3379_v24, %v3396_v39  ;;  %v3426_v6 = vsub.f32 %v3383_v28, %v3396_v39  ;;  %v3432_v16 = vsub.f32 %v3386_v33, %v3396_v39  ;;  %v2378_v44 = vld [vmem:[#allocation11 + $0x100] sm:$0xf]  ;;  %v2921_v45 = vld [vmem:[#allocation11 + $0x104] sm:$0xf0] }
 0x165   :  { %v673_v14 = vmul.f32 %v3400_v46, %v3400_v46  ;;  %v674_v15 = vmul.f32 %v3404_v47, %v3404_v47  ;;  %v675_v21 = vmul.f32 %v3408_v48, %v3408_v48  ;;  %v676_v24 = vmul.f32 %v3412_v56, %v3412_v56 }
 0x166   :  { %1569 = vmatpush.bf16.msra.mxu1 %v2339_v51  ;;  %v677_v28 = vmul.f32 %v3420_v62, %v3420_v62  ;;  %v3438_v27 = vsub.f32 %v3388_v36, %v3396_v39  ;;  %v678_v33 = vmul.f32 %v3426_v6, %v3426_v6  ;;  %v679_v32 = vmul.f32 %v3432_v16, %v3432_v16  ;;  %v2250_v39 = vld [vmem:[#allocation11] sm:$0xf]  ;;  %v2983_v51 = vld [vmem:[#allocation11 + $0x2f4] sm:$0xf0] }
 0x167   :  { %v681_v63 = vadd.f32 %v674_v15, %v673_v14  ;;  %v2251_v42 = vor.u32 %v2889_v40, %v2250_v39  ;;  %v2379_v50 = vor.u32 %v2921_v45, %v2378_v44  ;;  %v2967_v14 = vld [vmem:[#allocation11 + $0x274] sm:$0xf0]  ;;  %v2626_v15 = vld [vmem:[#allocation11 + $0x2f0] sm:$0xf] }
 0x168   :  { %v680_v37 = vmul.f32 %v3438_v27, %v3438_v27  ;;  %v2563_v57 = vor.u32 %v2967_v14, %v2562_v54  ;;  %v2627_v58 = vor.u32 %v2983_v51, %v2626_v15  ;;  %v2530_v44 = vld [vmem:[#allocation11 + $0x230] sm:$0xf]  ;;  %v2959_v45 = vld [vmem:[#allocation11 + $0x234] sm:$0xf0] }
 0x169   :  { %v682_v7 = vadd.f32 %v681_v63, %v675_v21  ;;  %1559 = vmatpush.bf16.msra.mxu0 %v2251_v42  ;;  %1585 = vmatpush.bf16.msra.mxu2 %v2379_v50  ;;  %v2691_v21 = vor.u32 %v2999_v60, %v2690_v59  ;;  %v3015_v63 = vld [vmem:[#allocation11 + $0x3f4] sm:$0xf0]  ;;  %v3009_v42 = vld [vmem:[#allocation11 + $0x3c4] sm:$0xf0]  ;;  %v2531_v50 = vor.u32 %v2959_v45, %v2530_v44  ;;  %v2722_v15 = vld [vmem:[#allocation11 + $0x3b0] sm:$0xf] }
 0x16a   :  { %1570 = vmatpush.bf16.msra.mxu1 %v2331_v8  ;;  %v2755_v2 = vor.u32 %v3015_v63, %v2754_v61  ;;  %v2997_v8 = vld [vmem:[#allocation11 + $0x364] sm:$0xf0]  ;;  %v2731_v43 = vor.u32 %v3009_v42, %v2730_v41  ;;  %v2991_v54 = vld [vmem:[#allocation11 + $0x334] sm:$0xf0]  ;;  %v2586_v60 = vld [vmem:[#allocation11 + $0x2a0] sm:$0xf] }
 0x16b   :  { %v683_v17 = vadd.f32 %v682_v7, %v676_v24  ;;  %v2682_v24 = vld [vmem:[#allocation11 + $0x360] sm:$0xf]  ;;  %v2619_v7 = vor.u32 %v2981_v5, %v2618_v4  ;;  %v2659_v14 = vor.u32 %v2991_v54, %v2658_v53  ;;  %v3007_v51 = vld [vmem:[#allocation11 + $0x3b4] sm:$0xf0]  ;;  %v2957_v59 = vld [vmem:[#allocation11 + $0x224] sm:$0xf0] }
 0x16c   :  { %1643 = vmatpush.bf16.msrb.mxu3 %v2755_v2  ;;  %v2683_v11 = vor.u32 %v2997_v8, %v2682_v24  ;;  %v2650_v63 = vld [vmem:[#allocation11 + $0x320] sm:$0xf]  ;;  %v3005_v4 = vld [vmem:[#allocation11 + $0x3a4] sm:$0xf0]  ;;  %v2514_v5 = vld [vmem:[#allocation11 + $0x210] sm:$0xf] }
 0x16d   :  { %v684_v29 = vadd.f32 %v683_v17, %v677_v28  ;;  %1604 = vmatpush.bf16.msrb.mxu0 %v2563_v57  ;;  %1630 = vmatpush.bf16.msrb.mxu2 %v2691_v21  ;;  %v2963_v28 = vld [vmem:[#allocation11 + $0x254] sm:$0xf0]  ;;  %v2610_v17 = vld [vmem:[#allocation11 + $0x2d0] sm:$0xf]  ;;  %v2723_v57 = vor.u32 %v3007_v51, %v2722_v15  ;;  %v2973_v21 = vld [vmem:[#allocation11 + $0x2a4] sm:$0xf0]  ;;  %v2651_v2 = vor.u32 %v2989_v0, %v2650_v63 }
 0x16e   :  { %1571 = vmatpush.bf16.msra.mxu1 %v2323_v30  ;;  %v2547_v18 = vor.u32 %v2963_v28, %v2546_v13  ;;  %v2611_v23 = vor.u32 %v2979_v19, %v2610_v17  ;;  %v2587_v1 = vor.u32 %v2973_v21, %v2586_v60  ;;  %v2578_v8 = vld [vmem:[#allocation11 + $0x290] sm:$0xf]  ;;  %v3003_v17 = vld [vmem:[#allocation11 + $0x394] sm:$0xf0]  ;;  %v2902_v21 = vld [vmem:[#allocation11 + $0x74] sm:$0xf] }
 0x16f   :  { %v685_v34 = vadd.f32 %v684_v29, %v678_v33  ;;  %v2738_v33 = vld [vmem:[#allocation11 + $0x3d0] sm:$0xf]  ;;  %v3011_v29 = vld [vmem:[#allocation11 + $0x3d4] sm:$0xf0]  ;;  %v2579_v28 = vor.u32 %v2971_v9, %v2578_v8  ;;  %v2308_v63 = vld [vmem:[#allocation11 + $0x78] sm:$0xf0] }
 0x170   :  { %1644 = vmatpush.bf16.msrb.mxu3 %v2747_v12  ;;  %v2739_v30 = vor.u32 %v3011_v29, %v2738_v33  ;;  %v2706_v12 = vld [vmem:[#allocation11 + $0x390] sm:$0xf]  ;;  %v2634_v33 = vld [vmem:[#allocation11 + $0x300] sm:$0xf]  ;;  %v2985_v29 = vld [vmem:[#allocation11 + $0x304] sm:$0xf0] }
 0x171   :  { %v686_v36 = vadd.f32 %v685_v34, %v679_v32  ;;  %1605 = vmatpush.bf16.msrb.mxu0 %v2555_v3  ;;  %1631 = vmatpush.bf16.msrb.mxu2 %v2683_v11  ;;  %v2961_v32 = vld [vmem:[#allocation11 + $0x244] sm:$0xf0]  ;;  %v2602_v34 = vld [vmem:[#allocation11 + $0x2c0] sm:$0xf]  ;;  %v2987_v11 = vld [vmem:[#allocation11 + $0x314] sm:$0xf0] }
 0x172   :  { %1572 = vmatpush.bf16.msra.mxu1 %v2315_v49  ;;  %v2539_v35 = vor.u32 %v2961_v32, %v2538_v31  ;;  %v2594_v49 = vld [vmem:[#allocation11 + $0x2b0] sm:$0xf]  ;;  %v2714_v3 = vld [vmem:[#allocation11 + $0x3a0] sm:$0xf]  ;;  %v2643_v19 = vor.u32 %v2987_v11, %v2642_v10  ;;  %v3001_v31 = vld [vmem:[#allocation11 + $0x384] sm:$0xf0] }
 0x173   :  { %v687_v38 = vadd.f32 %v686_v36, %v680_v37  ;;  %v2977_v37 = vld [vmem:[#allocation11 + $0x2c4] sm:$0xf0]  ;;  %v2666_v36 = vld [vmem:[#allocation11 + $0x340] sm:$0xf]  ;;  %v2595_v55 = vor.u32 %v2975_v52, %v2594_v49  ;;  %v2715_v24 = vor.u32 %v3005_v4, %v2714_v3  ;;  %v3447_v44 = vld [vmem:[#allocation8] sm:$0xff] }
 0x174   :  { %v2603_v39 = vor.u32 %v2977_v37, %v2602_v34  ;;  %1645 = vmatpush.bf16.msrb.mxu3 %v2739_v30  ;;  %v2698_v30 = vld [vmem:[#allocation11 + $0x380] sm:$0xf]  ;;  %v2635_v37 = vor.u32 %v2985_v29, %v2634_v33  ;;  %v3449_v49 = vld [vmem:[#allocation10] sm:$0xff]  ;;  %v713_v53 = vperm.slane %v3447_v44, 1  ;;  %v714_v54 = vperm.slane %v3447_v44, 2 }
 0x175   :  { %688 = vadd.xlane.f32.xlu0 %v687_v38  ;;  %1606 = vmatpush.bf16.msrb.mxu0 %v2547_v18  ;;  %v2993_v38 = vld [vmem:[#allocation11 + $0x344] sm:$0xf0]  ;;  %v2506_v18 = vld [vmem:[#allocation11 + $0x200] sm:$0xf]  ;;  %v738_v52 = vperm.slane %v3449_v49, 0  ;;  %v739_v15 = vperm.slane %v3449_v49, 1 }
 0x176   :  { %1617 = vmatpush.bf16.msrb.mxu1 %v2627_v58  ;;  %1632 = vmatpush.bf16.msrb.mxu2 %v2675_v25  ;;  %v2667_v40 = vor.u32 %v2993_v38, %v2666_v36  ;;  %v2522_v58 = vld [vmem:[#allocation11 + $0x220] sm:$0xf]  ;;  %v2707_v25 = vor.u32 %v3003_v17, %v2706_v12  ;;  %v2507_v32 = vor.u32 %v2953_v20, %v2506_v18  ;;  %v740_v51 = vperm.slane %v3449_v49, 2  ;;  %v2918_v0 = vld [vmem:[#allocation11 + $0xf4] sm:$0xf] }
 0x177   :  { %v2523_v61 = vor.u32 %v2957_v59, %v2522_v58  ;;  %v2699_v38 = vor.u32 %v3001_v31, %v2698_v30  ;;  %v2950_v8 = vld [vmem:[#allocation11 + $0x1f4] sm:$0xf]  ;;  %v2500_v9 = vld [vmem:[#allocation11 + $0x1f8] sm:$0xf0]  ;;  %v2311_v12 = vor.u32 %v2902_v21, %v2308_v63  ;;  %v2900_v20 = vld [vmem:[#allocation11 + $0x64] sm:$0xf] }
 0x178   :  { %1646 = vmatpush.bf16.msrb.mxu3 %v2731_v43  ;;  %v716_v33 = vperm.slane %v3447_v44, 4  ;;  %v717_v30 = vperm.slane %v3447_v44, 5  ;;  %v2484_v21 = vld [vmem:[#allocation11 + $0x1d8] sm:$0xf0] }
 0x179   :  { %1607 = vmatpush.bf16.msrb.mxu0 %v2539_v35 }
 0x17a   :  { %1618 = vmatpush.bf16.msrb.mxu1 %v2619_v7  ;;  %1633 = vmatpush.bf16.msrb.mxu2 %v2667_v40  ;;  %v2955_v7 = vld [vmem:[#allocation11 + $0x214] sm:$0xf0] }
 0x17b   :  { %v2515_v13 = vor.u32 %v2955_v7, %v2514_v5  ;;  %v2436_v7 = vld [vmem:[#allocation11 + $0x178] sm:$0xf0] }
 0x17c   :  { %1647 = vmatpush.bf16.msrb.mxu3 %v2723_v57  ;;  %v741_v57 = vperm.slane %v3449_v49, 3 }
 0x17d   :  { %1608 = vmatpush.bf16.msrb.mxu0 %v2531_v50 }
 0x17e   :  { %1619 = vmatpush.bf16.msrb.mxu1 %v2611_v23  ;;  %1634 = vmatpush.bf16.msrb.mxu2 %v2659_v14  ;;  %v2969_v23 = vld [vmem:[#allocation11 + $0x284] sm:$0xf0] }
 0x17f   :  { %v2571_v34 = vor.u32 %v2969_v23, %v2570_v22  ;;  %v2300_v22 = vld [vmem:[#allocation11 + $0x68] sm:$0xf0]  ;;  %v2916_v23 = vld [vmem:[#allocation11 + $0xe4] sm:$0xf] }
 0x180   :  { %1648 = vmatpush.bf16.msrb.mxu3 %v2715_v24 }
 0x181   :  { %1609 = vmatpush.bf16.msrb.mxu0 %v2523_v61 }
 0x182   :  { %1620 = vmatpush.bf16.msrb.mxu1 %v2603_v39  ;;  %1635 = vmatpush.bf16.msrb.mxu2 %v2651_v2  ;;  %v2934_v2 = vld [vmem:[#allocation11 + $0x174] sm:$0xf] }
 0x184   :  { %1649 = vmatpush.bf16.msrb.mxu3 %v2707_v25 }
 0x185   :  { %1610 = vmatpush.bf16.msrb.mxu0 %v2515_v13  ;;  %v2439_v13 = vor.u32 %v2934_v2, %v2436_v7  ;;  %v2896_v2 = vld [vmem:[#allocation11 + $0x44] sm:$0xf] }
 0x186   :  { %1621 = vmatpush.bf16.msrb.mxu1 %v2595_v55  ;;  %1636 = vmatpush.bf16.msrb.mxu2 %v2643_v19  ;;  %v715_v55 = vperm.slane %v3447_v44, 3  ;;  %v2912_v7 = vld [vmem:[#allocation11 + $0xc4] sm:$0xf] }
 0x188   :  { %1650 = vmatpush.bf16.msrb.mxu3 %v2699_v38  ;;  %v2428_v38 = vld [vmem:[#allocation11 + $0x168] sm:$0xf0] }
 0x189   :  { %1611 = vmatpush.bf16.msrb.mxu0 %v2507_v32 }
 0x18a   :  { %1622 = vmatpush.bf16.msrb.mxu1 %v2587_v1  ;;  %1637 = vmatpush.bf16.msrb.mxu2 %v2635_v37  ;;  %v2372_v1 = vld [vmem:[#allocation11 + $0xf8] sm:$0xf0]  ;;  %v2364_v37 = vld [vmem:[#allocation11 + $0xe8] sm:$0xf0] }
 0x18e   :  { %1623 = vmatpush.bf16.msrb.mxu1 %v2579_v28 }
 0x192   :  { %1624 = vmatpush.bf16.msrb.mxu1 %v2571_v34 }
 0x1e8   :  { %v689_v35 = vpop.xlane.xlu0 %688 }
 0x1e9   :  { %v690_v36 = vmul.f32 %v689_v35, %v3393_v26  ;;  %v712_v26 = vperm.slane %v3447_v44, 0 }
 0x1eb   :  { %v691_v39 = vadd.f32 1e-05, %v690_v36  ;;  %v2932_v36 = vld [vmem:[#allocation11 + $0x164] sm:$0xf] }
 0x1ed   :  { %3051 = vrsqrt.f32 %v691_v39  ;;  %vm698_vm2 = vweird.f32 %v691_v39 }
 0x1f3   :  { %v3052_v40 = vpop.eup %3051 }
 0x1f4   :  { %v693_v41 = vmul.f32 %v3052_v40, %v691_v39  ;;  %vm699_vm1 = vweird.f32 %v3052_v40  ;;  %v2948_v39 = vld [vmem:[#allocation11 + $0x1e4] sm:$0xf] }
 0x1f5   :  { %vm700_vm3 = vmor %vm698_vm2, %vm699_vm1 }
 0x1f6   :  { %v694_v42 = vmul.f32 %v3052_v40, %v693_v41  ;;  %v718_v41 = vperm.slane %v3447_v44, 6 }
 0x1f8   :  { %v695_v43 = vmul.f32 0.5, %v694_v42  ;;  %v719_v42 = vperm.slane %v3447_v44, 7  ;;  %v2292_v44 = vld [vmem:[#allocation11 + $0x58] sm:$0xf0] }
 0x1fa   :  { %v696_v45 = vsub.f32 1.5, %v695_v43  ;;  %v742_v43 = vperm.slane %v3449_v49, 4 }
 0x1fc   :  { %v697_v50 = vmul.f32 %v3052_v40, %v696_v45  ;;  %v2303_v45 = vor.u32 %v2900_v20, %v2300_v22 }
 0x1fe   :  { %v701_v14 = vsel %vm700_vm3, %v3052_v40, %v697_v50  ;;  %v2492_v40 = vld [vmem:[#allocation11 + $0x1e8] sm:$0xf0]  ;;  %v2367_v50 = vor.u32 %v2916_v23, %v2364_v37  ;;  %v2468_v37 = vld [vmem:[#allocation11 + $0x1b8] sm:$0xf0] }
 0x1ff   :  { %v702_v58 = vmul.f32 %v701_v14, %v3400_v46  ;;  %v703_v59 = vmul.f32 %v701_v14, %v3404_v47  ;;  %v704_v60 = vmul.f32 %v701_v14, %v3408_v48  ;;  %v705_v61 = vmul.f32 %v701_v14, %v3412_v56 }
 0x200   :  { %v2375_v48 = vor.u32 %v2918_v0, %v2372_v1  ;;  %v2503_v56 = vor.u32 %v2950_v8, %v2500_v9  ;;  %v706_v25 = vmul.f32 %v701_v14, %v3420_v62  ;;  %v707_v29 = vmul.f32 %v701_v14, %v3426_v6  ;;  %v2348_v8 = vld [vmem:[#allocation11 + $0xc8] sm:$0xf0]  ;;  %v2928_v9 = vld [vmem:[#allocation11 + $0x144] sm:$0xf] }
 0x201   :  { %v728_v3 = vmul.f32 %v712_v26, %v702_v58  ;;  %v729_v4 = vmul.f32 %v713_v53, %v703_v59  ;;  %v730_v5 = vmul.f32 %v714_v54, %v704_v60  ;;  %v731_v24 = vmul.f32 %v715_v55, %v705_v61  ;;  %v2914_v53 = vld [vmem:[#allocation11 + $0xd4] sm:$0xf]  ;;  %v2356_v54 = vld [vmem:[#allocation11 + $0xd8] sm:$0xf0] }
 0x202   :  { %v708_v62 = vmul.f32 %v701_v14, %v3432_v16  ;;  %v709_v6 = vmul.f32 %v701_v14, %v3438_v27  ;;  %v2431_v26 = vor.u32 %v2932_v36, %v2428_v38  ;;  %v2898_v16 = vld [vmem:[#allocation11 + $0x54] sm:$0xf]  ;;  %v2495_v27 = vor.u32 %v2948_v39, %v2492_v40 }
 0x203   :  { %v754_v10 = vadd.f32 %v738_v52, %v728_v3  ;;  %v755_v46 = vadd.f32 %v739_v15, %v729_v4  ;;  %v756_v11 = vadd.f32 %v740_v51, %v730_v5  ;;  %v757_v47 = vadd.f32 %v741_v57, %v731_v24  ;;  %v2930_v15 = vld [vmem:[#allocation11 + $0x154] sm:$0xf]  ;;  %v2420_v51 = vld [vmem:[#allocation11 + $0x158] sm:$0xf0]  ;;  %v2284_v3 = vld [vmem:[#allocation11 + $0x48] sm:$0xf0] }
 0x204   :  { %v743_v52 = vperm.slane %v3449_v49, 5  ;;  %v732_v55 = vmul.f32 %v716_v33, %v706_v25  ;;  %v733_v14 = vmul.f32 %v717_v30, %v707_v29  ;;  %v734_v57 = vmul.f32 %v718_v41, %v708_v62  ;;  %v2946_v61 = vld [vmem:[#allocation11 + $0x1d4] sm:$0xf]  ;;  %v2404_v29 = vld [vmem:[#allocation11 + $0x138] sm:$0xf0] }
 0x205   :  { %v762_v28 = vmax.f32 %v754_v10, 0.0  ;;  %v763_v17 = vmax.f32 %v755_v46, 0.0  ;;  %v764_v18 = vmax.f32 %v756_v11, 0.0  ;;  %v765_v19 = vmax.f32 %v757_v47, 0.0  ;;  %v2944_v11 = vld [vmem:[#allocation11 + $0x1c4] sm:$0xf] }
 0x206   :  { %v744_v58 = vperm.slane %v3449_v49, 6  ;;  %v735_v59 = vmul.f32 %v719_v42, %v709_v6  ;;  %v745_v60 = vperm.slane %v3449_v49, 7  ;;  %v2295_v63 = vor.u32 %v2898_v16, %v2292_v44  ;;  %v2412_v49 = vld [vmem:[#allocation11 + $0x148] sm:$0xf0]  ;;  %v2926_v33 = vld [vmem:[#allocation11 + $0x134] sm:$0xf] }
 0x207   :  { %v3467_v31 = vpack.c.bf16 %v762_v28, %v762_v28  ;;  %v3469_v32 = vpack.c.bf16 %v763_v17, %v763_v17  ;;  %v3471_v34 = vpack.c.bf16 %v764_v18, %v764_v18  ;;  %v3473_v35 = vpack.c.bf16 %v765_v19, %v765_v19  ;;  %v2476_v47 = vld [vmem:[#allocation11 + $0x1c8] sm:$0xf0]  ;;  %v2910_v18 = vld [vmem:[#allocation11 + $0xb4] sm:$0xf]  ;;  %v2340_v19 = vld [vmem:[#allocation11 + $0xb8] sm:$0xf0] }
 0x208   :  { %v2359_v0 = vor.u32 %v2914_v53, %v2356_v54  ;;  %v2423_v1 = vor.u32 %v2930_v15, %v2420_v51  ;;  %v758_v4 = vadd.f32 %v742_v43, %v732_v55  ;;  %v759_v5 = vadd.f32 %v743_v52, %v733_v14  ;;  %v2942_v30 = vld [vmem:[#allocation11 + $0x1b4] sm:$0xf]  ;;  %v2892_v41 = vld [vmem:[#allocation11 + $0x24] sm:$0xf]  ;;  %v2268_v6 = vld [vmem:[#allocation11 + $0x28] sm:$0xf0] }
 0x209   :  { %1560 = vmatmul.bf16.vlgmr.msra.gmra.mxu0 %v3467_v31  ;;  %1573 = vmatmul.bf16.vlgmr.msra.gmra.mxu1 %v3469_v32  ;;  %v2487_v24 = vor.u32 %v2946_v61, %v2484_v21  ;;  %v760_v10 = vadd.f32 %v744_v58, %v734_v57  ;;  %v761_v46 = vadd.f32 %v745_v60, %v735_v59  ;;  %v2924_v16 = vld [vmem:[#allocation11 + $0x124] sm:$0xf]  ;;  %v2396_v52 = vld [vmem:[#allocation11 + $0x128] sm:$0xf0]  ;;  %v2890_v55 = vld [vmem:[#allocation11 + $0x14] sm:$0xf] }
 0x20a   :  { %1586 = vmatmul.bf16.vlgmr.msra.gmra.mxu2 %v3471_v34  ;;  %1599 = vmatmul.bf16.vlgmr.msra.gmra.mxu3 %v3473_v35  ;;  %v766_v28 = vmax.f32 %v758_v4, 0.0  ;;  %v767_v17 = vmax.f32 %v759_v5, 0.0  ;;  %v2415_v20 = vor.u32 %v2928_v9, %v2412_v49  ;;  %v2479_v22 = vor.u32 %v2944_v11, %v2476_v47  ;;  %v2460_v44 = vld [vmem:[#allocation11 + $0x1a8] sm:$0xf0]  ;;  %v2260_v14 = vld [vmem:[#allocation11 + $0x18] sm:$0xf0] }
 0x20b   :  { %1656 = vmatpush.bf16.msra.mxu0 %v2311_v12  ;;  %1669 = vmatpush.bf16.msra.mxu1 %v2375_v48  ;;  %v2894_v12 = vld [vmem:[#allocation11 + $0x34] sm:$0xf]  ;;  %v2276_v48 = vld [vmem:[#allocation11 + $0x38] sm:$0xf0]  ;;  %v768_v23 = vmax.f32 %v760_v10, 0.0  ;;  %v769_v25 = vmax.f32 %v761_v46, 0.0  ;;  %v2343_v38 = vor.u32 %v2910_v18, %v2340_v19  ;;  %v2407_v62 = vor.u32 %v2926_v33, %v2404_v29 }
 0x20c   :  { %1682 = vmatpush.bf16.msra.mxu2 %v2439_v13  ;;  %1695 = vmatpush.bf16.msra.mxu3 %v2503_v56  ;;  %v2287_v13 = vor.u32 %v2896_v2, %v2284_v3  ;;  %v2351_v56 = vor.u32 %v2912_v7, %v2348_v8  ;;  %v2279_v36 = vor.u32 %v2894_v12, %v2276_v48  ;;  %v2906_v57 = vld [vmem:[#allocation11 + $0x94] sm:$0xf]  ;;  %v2324_v58 = vld [vmem:[#allocation11 + $0x98] sm:$0xf0]  ;;  %v2252_v2 = vld [vmem:[#allocation11 + $0x8] sm:$0xf0] }
 0x20d   :  { %v3487_v39 = vpack.c.bf16 %v766_v28, %v766_v28  ;;  %v3489_v40 = vpack.c.bf16 %v767_v17, %v767_v17  ;;  %v3491_v42 = vpack.c.bf16 %v768_v23, %v768_v23  ;;  %v3493_v43 = vpack.c.bf16 %v769_v25, %v769_v25  ;;  %v2922_v59 = vld [vmem:[#allocation11 + $0x114] sm:$0xf]  ;;  %v2388_v60 = vld [vmem:[#allocation11 + $0x118] sm:$0xf0]  ;;  %v2904_v3 = vld [vmem:[#allocation11 + $0x84] sm:$0xf] }
 0x20e   :  { %v2271_v53 = vor.u32 %v2892_v41, %v2268_v6  ;;  %v2399_v15 = vor.u32 %v2924_v16, %v2396_v52  ;;  %v2938_v61 = vld [vmem:[#allocation11 + $0x194] sm:$0xf]  ;;  %v2452_v21 = vld [vmem:[#allocation11 + $0x198] sm:$0xf0]  ;;  %v2316_v4 = vld [vmem:[#allocation11 + $0x88] sm:$0xf0]  ;;  %v2391_v5 = vor.u32 %v2922_v59, %v2388_v60 }
 0x20f   :  { %1657 = vmatpush.bf16.msra.mxu0 %v2303_v45  ;;  %1670 = vmatpush.bf16.msra.mxu1 %v2367_v50  ;;  %v2471_v45 = vor.u32 %v2942_v30, %v2468_v37  ;;  %v2908_v50 = vld [vmem:[#allocation11 + $0xa4] sm:$0xf]  ;;  %v2380_v8 = vld [vmem:[#allocation11 + $0x108] sm:$0xf0]  ;;  %v2966_v46 = vld [vmem:[#allocation11 + $0x274] sm:$0xf] }
 0x210   :  { %1683 = vmatpush.bf16.msra.mxu2 %v2431_v26  ;;  %1696 = vmatpush.bf16.msra.mxu3 %v2495_v27  ;;  %v2332_v26 = vld [vmem:[#allocation11 + $0xa8] sm:$0xf0]  ;;  %v2940_v27 = vld [vmem:[#allocation11 + $0x1a4] sm:$0xf]  ;;  %v2564_v49 = vld [vmem:[#allocation11 + $0x278] sm:$0xf0] }
 0x211   :  { %v2335_v54 = vor.u32 %v2908_v50, %v2332_v26  ;;  %v2463_v51 = vor.u32 %v2940_v27, %v2460_v44  ;;  %v2920_v7 = vld [vmem:[#allocation11 + $0x104] sm:$0xf]  ;;  %v2444_v10 = vld [vmem:[#allocation11 + $0x188] sm:$0xf0]  ;;  %v2982_v11 = vld [vmem:[#allocation11 + $0x2f4] sm:$0xf] }
 0x212   :  { %v2936_v9 = vld [vmem:[#allocation11 + $0x184] sm:$0xf]  ;;  %v2628_v47 = vld [vmem:[#allocation11 + $0x2f8] sm:$0xf0]  ;;  %v2998_v12 = vld [vmem:[#allocation11 + $0x374] sm:$0xf]  ;;  %v2383_v18 = vor.u32 %v2920_v7, %v2380_v8 }
 0x213   :  { %1658 = vmatpush.bf16.msra.mxu0 %v2295_v63  ;;  %1671 = vmatpush.bf16.msra.mxu1 %v2359_v0  ;;  %v2888_v63 = vld [vmem:[#allocation11 + $0x4] sm:$0xf]  ;;  %v2263_v0 = vor.u32 %v2890_v55, %v2260_v14  ;;  %v3014_v28 = vld [vmem:[#allocation11 + $0x3f4] sm:$0xf]  ;;  %v2756_v17 = vld [vmem:[#allocation11 + $0x3f8] sm:$0xf0]  ;;  %v2447_v19 = vor.u32 %v2936_v9, %v2444_v10 }
 0x214   :  { %1684 = vmatpush.bf16.msra.mxu2 %v2423_v1  ;;  %1697 = vmatpush.bf16.msra.mxu3 %v2487_v24  ;;  %v2327_v1 = vor.u32 %v2906_v57, %v2324_v58  ;;  %v2455_v24 = vor.u32 %v2938_v61, %v2452_v21  ;;  %v2255_v48 = vor.u32 %v2888_v63, %v2252_v2  ;;  %v2964_v23 = vld [vmem:[#allocation11 + $0x264] sm:$0xf]  ;;  %v2556_v25 = vld [vmem:[#allocation11 + $0x268] sm:$0xf0]  ;;  %v2962_v50 = vld [vmem:[#allocation11 + $0x254] sm:$0xf] }
 0x215   :  { %v2759_v29 = vor.u32 %v3014_v28, %v2756_v17  ;;  %v2980_v30 = vld [vmem:[#allocation11 + $0x2e4] sm:$0xf]  ;;  %v2620_v37 = vld [vmem:[#allocation11 + $0x2e8] sm:$0xf0]  ;;  %v2559_v6 = vor.u32 %v2964_v23, %v2556_v25  ;;  %v2548_v26 = vld [vmem:[#allocation11 + $0x258] sm:$0xf0] }
 0x216   :  { %v2748_v41 = vld [vmem:[#allocation11 + $0x3e8] sm:$0xf0]  ;;  %v2978_v27 = vld [vmem:[#allocation11 + $0x2d4] sm:$0xf]  ;;  %v2612_v44 = vld [vmem:[#allocation11 + $0x2d8] sm:$0xf0] }
 0x217   :  { %1659 = vmatpush.bf16.msra.mxu0 %v2287_v13  ;;  %1672 = vmatpush.bf16.msra.mxu1 %v2351_v56  ;;  %v2319_v13 = vor.u32 %v2904_v3, %v2316_v4  ;;  %v2692_v56 = vld [vmem:[#allocation11 + $0x378] sm:$0xf0]  ;;  %v3010_v55 = vld [vmem:[#allocation11 + $0x3d4] sm:$0xf]  ;;  %v2960_v57 = vld [vmem:[#allocation11 + $0x244] sm:$0xf] }
 0x218   :  { %1685 = vmatpush.bf16.msra.mxu2 %v2415_v20  ;;  %1698 = vmatpush.bf16.msra.mxu3 %v2479_v22  ;;  %v2567_v20 = vor.u32 %v2966_v46, %v2564_v49  ;;  %v2631_v22 = vor.u32 %v2982_v11, %v2628_v47  ;;  %v2695_v33 = vor.u32 %v2998_v12, %v2692_v56  ;;  %v2740_v14 = vld [vmem:[#allocation11 + $0x3d8] sm:$0xf0]  ;;  %v2540_v58 = vld [vmem:[#allocation11 + $0x248] sm:$0xf0]  ;;  %v3008_v63 = vld [vmem:[#allocation11 + $0x3c4] sm:$0xf] }
 0x219   :  { %1612 = vmatmul.bf16.vlgmr.msrb.gmra.mxu0 %v3487_v39  ;;  %1625 = vmatmul.bf16.vlgmr.msrb.gmra.mxu1 %v3489_v40  ;;  %v2743_v60 = vor.u32 %v3010_v55, %v2740_v14  ;;  %v2604_v61 = vld [vmem:[#allocation11 + $0x2c8] sm:$0xf0]  ;;  %v2532_v2 = vld [vmem:[#allocation11 + $0x238] sm:$0xf0]  ;;  %v2990_v7 = vld [vmem:[#allocation11 + $0x334] sm:$0xf] }
 0x21a   :  { %1638 = vmatmul.bf16.vlgmr.msrb.gmra.mxu2 %v3491_v42  ;;  %1651 = vmatmul.bf16.vlgmr.msrb.gmra.mxu3 %v3493_v43  ;;  %v2668_v21 = vld [vmem:[#allocation11 + $0x348] sm:$0xf0]  ;;  %v2660_v8 = vld [vmem:[#allocation11 + $0x338] sm:$0xf0]  ;;  %v3006_v9 = vld [vmem:[#allocation11 + $0x3b4] sm:$0xf] }
 0x21b   :  { %1660 = vmatpush.bf16.msra.mxu0 %v2279_v36  ;;  %1673 = vmatpush.bf16.msra.mxu1 %v2343_v38  ;;  %v2996_v36 = vld [vmem:[#allocation11 + $0x364] sm:$0xf]  ;;  %v2684_v38 = vld [vmem:[#allocation11 + $0x368] sm:$0xf0]  ;;  %v2724_v10 = vld [vmem:[#allocation11 + $0x3b8] sm:$0xf0]  ;;  %v2663_v12 = vor.u32 %v2990_v7, %v2660_v8 }
 0x21c   :  { %1686 = vmatpush.bf16.msra.mxu2 %v2407_v62  ;;  %1699 = vmatpush.bf16.msra.mxu3 %v2471_v45  ;;  %v3012_v62 = vld [vmem:[#allocation11 + $0x3e4] sm:$0xf]  ;;  %v2623_v45 = vor.u32 %v2980_v30, %v2620_v37  ;;  %v2687_v16 = vor.u32 %v2996_v36, %v2684_v38  ;;  %v2524_v47 = vld [vmem:[#allocation11 + $0x228] sm:$0xf0]  ;;  %v2954_v23 = vld [vmem:[#allocation11 + $0x214] sm:$0xf] }
 0x21d   :  { %v2751_v52 = vor.u32 %v3012_v62, %v2748_v41  ;;  %v2956_v11 = vld [vmem:[#allocation11 + $0x224] sm:$0xf]  ;;  %v2588_v56 = vld [vmem:[#allocation11 + $0x2a8] sm:$0xf0]  ;;  %v2516_v25 = vld [vmem:[#allocation11 + $0x218] sm:$0xf0] }
 0x21e   :  { %v2988_v28 = vld [vmem:[#allocation11 + $0x324] sm:$0xf]  ;;  %v2652_v17 = vld [vmem:[#allocation11 + $0x328] sm:$0xf0]  ;;  %v2970_v30 = vld [vmem:[#allocation11 + $0x294] sm:$0xf] }
 0x21f   :  { %1661 = vmatpush.bf16.msra.mxu0 %v2271_v53  ;;  %1674 = vmatpush.bf16.msra.mxu1 %v2335_v54  ;;  %v2994_v53 = vld [vmem:[#allocation11 + $0x354] sm:$0xf]  ;;  %v2676_v54 = vld [vmem:[#allocation11 + $0x358] sm:$0xf0]  ;;  %v3000_v55 = vld [vmem:[#allocation11 + $0x384] sm:$0xf] }
 0x220   :  { %1687 = vmatpush.bf16.msra.mxu2 %v2399_v15  ;;  %1700 = vmatpush.bf16.msra.mxu3 %v2463_v51  ;;  %v2551_v15 = vor.u32 %v2962_v50, %v2548_v26  ;;  %v2615_v51 = vor.u32 %v2978_v27, %v2612_v44  ;;  %v2679_v59 = vor.u32 %v2994_v53, %v2676_v54  ;;  %v2580_v37 = vld [vmem:[#allocation11 + $0x298] sm:$0xf0]  ;;  %v2986_v36 = vld [vmem:[#allocation11 + $0x314] sm:$0xf]  ;;  %v2952_v50 = vld [vmem:[#allocation11 + $0x204] sm:$0xf] }
 0x221   :  { %v2644_v38 = vld [vmem:[#allocation11 + $0x318] sm:$0xf0]  ;;  %v3002_v62 = vld [vmem:[#allocation11 + $0x394] sm:$0xf]  ;;  %v2508_v26 = vld [vmem:[#allocation11 + $0x208] sm:$0xf0] }
 0x222   :  { %v2708_v41 = vld [vmem:[#allocation11 + $0x398] sm:$0xf0]  ;;  %v2968_v27 = vld [vmem:[#allocation11 + $0x284] sm:$0xf]  ;;  %v2572_v44 = vld [vmem:[#allocation11 + $0x288] sm:$0xf0] }
 0x223   :  { %1662 = vmatpush.bf16.msra.mxu0 %v2263_v0  ;;  %1675 = vmatpush.bf16.msra.mxu1 %v2327_v1  ;;  %v2732_v0 = vld [vmem:[#allocation11 + $0x3c8] sm:$0xf0]  ;;  %v2958_v1 = vld [vmem:[#allocation11 + $0x234] sm:$0xf]  ;;  %v2984_v53 = vld [vmem:[#allocation11 + $0x304] sm:$0xf] }
 0x224   :  { %1688 = vmatpush.bf16.msra.mxu2 %v2391_v5  ;;  %1701 = vmatpush.bf16.msra.mxu3 %v2455_v24  ;;  %v2735_v4 = vor.u32 %v3008_v63, %v2732_v0  ;;  %v2974_v5 = vld [vmem:[#allocation11 + $0x2b4] sm:$0xf]  ;;  %v2596_v24 = vld [vmem:[#allocation11 + $0x2b8] sm:$0xf0]  ;;  %v2535_v46 = vor.u32 %v2958_v1, %v2532_v2  ;;  %v2636_v54 = vld [vmem:[#allocation11 + $0x308] sm:$0xf0] }
 0x225   :  { %v2599_v49 = vor.u32 %v2974_v5, %v2596_v24  ;;  %v2700_v14 = vld [vmem:[#allocation11 + $0x388] sm:$0xf0] }
 0x227   :  { %1663 = vmatpush.bf16.msra.mxu0 %v2255_v48  ;;  %1676 = vmatpush.bf16.msra.mxu1 %v2319_v13  ;;  %v2727_v48 = vor.u32 %v3006_v9, %v2724_v10  ;;  %v2972_v13 = vld [vmem:[#allocation11 + $0x2a4] sm:$0xf]  ;;  %v906_v9 = vld [vmem:[%s3528_s6] sm:$0x3] }
 0x228   :  { %1689 = vmatpush.bf16.msra.mxu2 %v2383_v18  ;;  %1702 = vmatpush.bf16.msra.mxu3 %v2447_v19  ;;  %v3004_v18 = vld [vmem:[#allocation11 + $0x3a4] sm:$0xf]  ;;  %v2716_v19 = vld [vmem:[#allocation11 + $0x3a8] sm:$0xf0]  ;;  %v908_v10 = vperm.slane %v906_v9, 0 }
 0x22a   :  { %1664 = vmatmul.bf16.vlgmr.msra.gmra.mxu0 %v3467_v31  ;;  %1677 = vmatmul.bf16.vlgmr.msra.gmra.mxu1 %v3469_v32  ;;  %v2976_v31 = vld [vmem:[#allocation11 + $0x2c4] sm:$0xf] }
 0x22b   :  { %1708 = vmatpush.bf16.msrb.mxu0 %v2567_v20  ;;  %1721 = vmatpush.bf16.msrb.mxu1 %v2631_v22  ;;  %v2992_v32 = vld [vmem:[#allocation11 + $0x344] sm:$0xf]  ;;  %v2527_v20 = vor.u32 %v2956_v11, %v2524_v47  ;;  %v2591_v22 = vor.u32 %v2972_v13, %v2588_v56 }
 0x22c   :  { %1734 = vmatpush.bf16.msrb.mxu2 %v2695_v33  ;;  %1747 = vmatpush.bf16.msrb.mxu3 %v2759_v29  ;;  %v2671_v3 = vor.u32 %v2992_v32, %v2668_v21  ;;  %v2655_v33 = vor.u32 %v2988_v28, %v2652_v17  ;;  %v2719_v29 = vor.u32 %v3004_v18, %v2716_v19 }
 0x22d   :  { %1690 = vmatmul.bf16.vlgmr.msra.gmra.mxu2 %v3471_v34  ;;  %1703 = vmatmul.bf16.vlgmr.msra.gmra.mxu3 %v3473_v35  ;;  %v2543_v34 = vor.u32 %v2960_v57, %v2540_v58  ;;  %v2607_v35 = vor.u32 %v2976_v31, %v2604_v61  ;;  %v2639_v57 = vor.u32 %v2984_v53, %v2636_v54 }
 0x22e   :  { %v2703_v58 = vor.u32 %v3000_v55, %v2700_v14 }
 0x22f   :  { %1709 = vmatpush.bf16.msrb.mxu0 %v2559_v6  ;;  %1722 = vmatpush.bf16.msrb.mxu1 %v2623_v45  ;;  %v2519_v6 = vor.u32 %v2954_v23, %v2516_v25  ;;  %v2583_v45 = vor.u32 %v2970_v30, %v2580_v37 }
 0x230   :  { %1735 = vmatpush.bf16.msrb.mxu2 %v2687_v16  ;;  %1748 = vmatpush.bf16.msrb.mxu3 %v2751_v52  ;;  %v2647_v16 = vor.u32 %v2986_v36, %v2644_v38  ;;  %v2711_v52 = vor.u32 %v3002_v62, %v2708_v41 }
 0x233   :  { %1710 = vmatpush.bf16.msrb.mxu0 %v2551_v15  ;;  %1723 = vmatpush.bf16.msrb.mxu1 %v2615_v51  ;;  %v2511_v15 = vor.u32 %v2952_v50, %v2508_v26  ;;  %v2575_v51 = vor.u32 %v2968_v27, %v2572_v44 }
 0x234   :  { %1736 = vmatpush.bf16.msrb.mxu2 %v2679_v59  ;;  %1749 = vmatpush.bf16.msrb.mxu3 %v2743_v60 }
 0x237   :  { %1711 = vmatpush.bf16.msrb.mxu0 %v2543_v34  ;;  %1724 = vmatpush.bf16.msrb.mxu1 %v2607_v35 }
 0x238   :  { %1737 = vmatpush.bf16.msrb.mxu2 %v2671_v3  ;;  %1750 = vmatpush.bf16.msrb.mxu3 %v2735_v4 }
 0x23b   :  { %1712 = vmatpush.bf16.msrb.mxu0 %v2535_v46  ;;  %1725 = vmatpush.bf16.msrb.mxu1 %v2599_v49  ;;  %v909_v46 = vperm.slane %v906_v9, 1 }
 0x23c   :  { %1738 = vmatpush.bf16.msrb.mxu2 %v2663_v12  ;;  %1751 = vmatpush.bf16.msrb.mxu3 %v2727_v48 }
 0x23f   :  { %1713 = vmatpush.bf16.msrb.mxu0 %v2527_v20  ;;  %1726 = vmatpush.bf16.msrb.mxu1 %v2591_v22 }
 0x240   :  { %1739 = vmatpush.bf16.msrb.mxu2 %v2655_v33  ;;  %1752 = vmatpush.bf16.msrb.mxu3 %v2719_v29 }
 0x243   :  { %1714 = vmatpush.bf16.msrb.mxu0 %v2519_v6  ;;  %1727 = vmatpush.bf16.msrb.mxu1 %v2583_v45 }
 0x244   :  { %1740 = vmatpush.bf16.msrb.mxu2 %v2647_v16  ;;  %1753 = vmatpush.bf16.msrb.mxu3 %v2711_v52  ;;  %v3275_v16 = vmov 256.0  }
 0x245   :  { %3053 = vrcp.f32 %v3275_v16 }
 0x247   :  { %1715 = vmatpush.bf16.msrb.mxu0 %v2511_v15  ;;  %1728 = vmatpush.bf16.msrb.mxu1 %v2575_v51 }
 0x248   :  { %1741 = vmatpush.bf16.msrb.mxu2 %v2639_v57  ;;  %1754 = vmatpush.bf16.msrb.mxu3 %v2703_v58 }
 0x24a   :  { %1716 = vmatmul.bf16.vlgmr.msrb.gmra.mxu0 %v3487_v39  ;;  %1729 = vmatmul.bf16.vlgmr.msrb.gmra.mxu1 %v3489_v40 }
 0x24b   :  { %1742 = vmatmul.bf16.vlgmr.msrb.gmra.mxu2 %v3491_v42  ;;  %1755 = vmatmul.bf16.vlgmr.msrb.gmra.mxu3 %v3493_v43  ;;  %v3054_v52 = vpop.eup %3053 }
 0x24c   :  { %v1764_v27 = vmul.f32 256.0, %v3054_v52  ;;  %vm1768_vm4 = vweird.f32 %v3054_v52 }
 0x24e   :  { %v1765_v44 = vsub.f32 1.0, %v1764_v27 }
 0x250   :  { %v1766_v53 = vmul.f32 %v3054_v52, %v1765_v44 }
 0x252   :  { %v1767_v54 = vadd.f32 %v3054_v52, %v1766_v53 }
 0x254   :  { %v1769_v55 = vsel %vm1768_vm4, %v3054_v52, %v1767_v54 }
 0x286   :  { %v1561_v59 = vpop.f32.mrf.mxu0  ;;  %v1574_v60 = vpop.f32.mrf.mxu1 }
 0x287   :  { %v1562_v47 = vadd.f32 %v1561_v59, %v908_v10 }
 0x289   :  { %v1575_v48 = vadd.f32 %v1574_v60, %v1562_v47 }
 0x28d   :  { %v1587_v31 = vpop.f32.mrf.mxu2  ;;  %v1600_v61 = vpop.f32.mrf.mxu3 }
 0x28e   :  { %v1563_v32 = vpop.f32.mrf.mxu0  ;;  %v1576_v21 = vpop.f32.mrf.mxu1  ;;  %v1588_v13 = vadd.f32 %v1587_v31, %v1575_v48  ;;  %v3023_v31 = vld [vmem:[#allocation13 + $0x38] sm:$0xff] }
 0x28f   :  { %1944 = vmatpush.bf16.msra.mxu0 %v3023_v31  ;;  %v3022_v32 = vld [vmem:[#allocation13 + $0x30] sm:$0xff] }
 0x290   :  { %v1601_v17 = vadd.f32 %v1600_v61, %v1588_v13  ;;  %v3031_v61 = vld [vmem:[#allocation13 + $0x78] sm:$0xff]  ;;  %v3030_v21 = vld [vmem:[#allocation13 + $0x70] sm:$0xff] }
 0x291   :  { %1957 = vmatpush.bf16.msra.mxu1 %v3031_v61 }
 0x293   :  { %1945 = vmatpush.bf16.msra.mxu0 %v3022_v32 }
 0x295   :  { %v1589_v63 = vpop.f32.mrf.mxu2  ;;  %v1602_v0 = vpop.f32.mrf.mxu3  ;;  %1958 = vmatpush.bf16.msra.mxu1 %v3030_v21 }
 0x296   :  { %v1613_v34 = vpop.f32.mrf.mxu0  ;;  %v1626_v35 = vpop.f32.mrf.mxu1  ;;  %v3021_v63 = vld [vmem:[#allocation13 + $0x28] sm:$0xff] }
 0x297   :  { %v1614_v18 = vadd.f32 %v1613_v34, %v1601_v17  ;;  %v3029_v0 = vld [vmem:[#allocation13 + $0x68] sm:$0xff]  ;;  %1946 = vmatpush.bf16.msra.mxu0 %v3021_v63  ;;  %v3020_v34 = vld [vmem:[#allocation13 + $0x20] sm:$0xff] }
 0x299   :  { %v1627_v25 = vadd.f32 %v1626_v35, %v1614_v18  ;;  %1959 = vmatpush.bf16.msra.mxu1 %v3029_v0  ;;  %v3028_v35 = vld [vmem:[#allocation13 + $0x60] sm:$0xff] }
 0x29b   :  { %1947 = vmatpush.bf16.msra.mxu0 %v3020_v34 }
 0x29d   :  { %v1639_v1 = vpop.f32.mrf.mxu2  ;;  %v1652_v2 = vpop.f32.mrf.mxu3  ;;  %1960 = vmatpush.bf16.msra.mxu1 %v3028_v35 }
 0x29e   :  { %v1615_v3 = vpop.f32.mrf.mxu0  ;;  %v1628_v39 = vpop.f32.mrf.mxu1  ;;  %v1640_v33 = vadd.f32 %v1639_v1, %v1627_v25  ;;  %v3019_v1 = vld [vmem:[#allocation13 + $0x18] sm:$0xff] }
 0x29f   :  { %1948 = vmatpush.bf16.msra.mxu0 %v3019_v1  ;;  %v3018_v3 = vld [vmem:[#allocation13 + $0x10] sm:$0xff] }
 0x2a0   :  { %v1653_v41 = vadd.f32 %v1652_v2, %v1640_v33  ;;  %v3027_v2 = vld [vmem:[#allocation13 + $0x58] sm:$0xff]  ;;  %v3026_v39 = vld [vmem:[#allocation13 + $0x50] sm:$0xff] }
 0x2a1   :  { %1961 = vmatpush.bf16.msra.mxu1 %v3027_v2 }
 0x2a3   :  { %1949 = vmatpush.bf16.msra.mxu0 %v3018_v3 }
 0x2a5   :  { %v1641_v4 = vpop.f32.mrf.mxu2  ;;  %v1654_v40 = vpop.f32.mrf.mxu3  ;;  %1962 = vmatpush.bf16.msra.mxu1 %v3026_v39 }
 0x2a6   :  { %v3017_v4 = vld [vmem:[#allocation13 + $0x8] sm:$0xff] }
 0x2a7   :  { %v1665_v5 = vpop.f32.mrf.mxu0  ;;  %v1678_v42 = vpop.f32.mrf.mxu1  ;;  %v3025_v40 = vld [vmem:[#allocation13 + $0x48] sm:$0xff]  ;;  %1950 = vmatpush.bf16.msra.mxu0 %v3017_v4 }
 0x2a8   :  { %v1666_v12 = vadd.f32 %v1665_v5, %v909_v46  ;;  %v3016_v5 = vld [vmem:[#allocation13] sm:$0xff] }
 0x2a9   :  { %1963 = vmatpush.bf16.msra.mxu1 %v3025_v40 }
 0x2aa   :  { %v1679_v56 = vadd.f32 %v1678_v42, %v1666_v12  ;;  %v3024_v42 = vld [vmem:[#allocation13 + $0x40] sm:$0xff] }
 0x2ab   :  { %1951 = vmatpush.bf16.msra.mxu0 %v3016_v5  ;;  %v1800_v12 = vld [vmem:[%s3530_s8] sm:$0x3] }
 0x2ac   :  { %v1802_v18 = vperm.slane %v1800_v12, 0 }
 0x2ad   :  { %1964 = vmatpush.bf16.msra.mxu1 %v3024_v42 }
 0x2af   :  { %v1667_v7 = vpop.f32.mrf.mxu0  ;;  %v1680_v8 = vpop.f32.mrf.mxu1 }
 0x2b0   :  { %v1691_v24 = vpop.f32.mrf.mxu2  ;;  %v1704_v43 = vpop.f32.mrf.mxu3 }
 0x2b1   :  { %v1692_v28 = vadd.f32 %v1691_v24, %v1679_v56 }
 0x2b3   :  { %v1705_v19 = vadd.f32 %v1704_v43, %v1692_v28 }
 0x2b8   :  { %v1693_v49 = vpop.f32.mrf.mxu2  ;;  %v1706_v11 = vpop.f32.mrf.mxu3 }
 0x2b9   :  { %v1792_v11 = vld [vmem:[%s3529_s7] sm:$0x3] }
 0x2ba   :  { %v1794_v48 = vperm.slane %v1792_v11, 0  ;;  %v1795_v13 = vperm.slane %v1792_v11, 1 }
 0x2c7   :  { %v1717_v20 = vpop.f32.mrf.mxu0  ;;  %v1730_v22 = vpop.f32.mrf.mxu1 }
 0x2c8   :  { %v1718_v23 = vadd.f32 %v1717_v20, %v1705_v19  ;;  %v1803_v19 = vperm.slane %v1800_v12, 1 }
 0x2ca   :  { %v1731_v29 = vadd.f32 %v1730_v22, %v1718_v23 }
 0x2ce   :  { %v1743_v30 = vpop.f32.mrf.mxu2  ;;  %v1756_v37 = vpop.f32.mrf.mxu3 }
 0x2cf   :  { %v1744_v36 = vadd.f32 %v1743_v30, %v1731_v29  ;;  %v1719_v38 = vpop.f32.mrf.mxu0  ;;  %v1732_v62 = vpop.f32.mrf.mxu1 }
 0x2d1   :  { %v1757_v6 = vadd.f32 %v1756_v37, %v1744_v36  ;;  %v3048_v36 = vld [vmem:[%s3532_s10] ss:$0 sm:$0xff] }
 0x2d3   :  { %v1760_v45 = vadd.f32 %v1757_v6, %v1653_v41 }
 0x2d5   :  { %1761 = vadd.xlane.f32.xlu1 %v1760_v45 }
 0x2d6   :  { %v1745_v50 = vpop.f32.mrf.mxu2  ;;  %v1758_v26 = vpop.f32.mrf.mxu3 }
 0x348   :  { %v1762_v14 = vpop.xlane.xlu1 %1761 }
 0x349   :  { %v1770_v15 = vmul.f32 %v1769_v55, %v1762_v14 }
 0x34b   :  { %v1771_v51 = vsub.f32 %v1653_v41, %v1770_v15  ;;  %v1772_v57 = vsub.f32 %v1757_v6, %v1770_v15 }
 0x34d   :  { %v1773_v58 = vmul.f32 %v1771_v51, %v1771_v51  ;;  %v1774_v59 = vmul.f32 %v1772_v57, %v1772_v57 }
 0x34f   :  { %v1775_v60 = vadd.f32 %v1774_v59, %v1773_v58 }
 0x351   :  { %1776 = vadd.xlane.f32.xlu1 %v1775_v60 }
 0x3c4   :  { %v1777_v24 = vpop.xlane.xlu1 %1776 }
 0x3c5   :  { %v1778_v43 = vmul.f32 %v1777_v24, %v1769_v55 }
 0x3c7   :  { %v1779_v7 = vadd.f32 1e-05, %v1778_v43 }
 0x3c9   :  { %3055 = vrsqrt.f32 %v1779_v7  ;;  %vm1786_vm6 = vweird.f32 %v1779_v7 }
 0x3cf   :  { %v3056_v8 = vpop.eup %3055 }
 0x3d0   :  { %v1781_v9 = vmul.f32 %v3056_v8, %v1779_v7  ;;  %vm1787_vm5 = vweird.f32 %v3056_v8 }
 0x3d1   :  { %vm1788_vm7 = vmor %vm1786_vm6, %vm1787_vm5 }
 0x3d2   :  { %v1782_v10 = vmul.f32 %v3056_v8, %v1781_v9 }
 0x3d4   :  { %v1783_v46 = vmul.f32 0.5, %v1782_v10 }
 0x3d6   :  { %v1784_v49 = vsub.f32 1.5, %v1783_v46 }
 0x3d8   :  { %v1785_v47 = vmul.f32 %v3056_v8, %v1784_v49 }
 0x3da   :  { %v1789_v56 = vsel %vm1788_vm7, %v3056_v8, %v1785_v47 }
 0x3db   :  { %v1790_v28 = vmul.f32 %v1789_v56, %v1771_v51  ;;  %v1791_v17 = vmul.f32 %v1789_v56, %v1772_v57 }
 0x3dd   :  { %v1798_v20 = vmul.f32 %v1794_v48, %v1790_v28  ;;  %v1799_v22 = vmul.f32 %v1795_v13, %v1791_v17 }
 0x3df   :  { %v1806_v23 = vadd.f32 %v1802_v18, %v1798_v20  ;;  %v1807_v25 = vadd.f32 %v1803_v19, %v1799_v22 }
 0x3e1   :  { %v1808_v33 = vmax.f32 %v1806_v23, 0.0  ;;  %v1809_v29 = vmax.f32 %v1807_v25, 0.0 }
 0x3e3   :  { %v1810_v30 = vpack.c.bf16 %v1808_v33, %v1808_v33  ;;  %v1811_v37 = vpack.c.bf16 %v1809_v29, %v1809_v29 }
 0x3e5   :  { %1952 = vmatmul.bf16.vlgmr.msra.gmra.mxu0 %v1810_v30  ;;  %1965 = vmatmul.bf16.vlgmr.msra.gmra.mxu1 %v1811_v37 }
 0x462   :  { %v1953_v38 = vpop.f32.mrf.mxu0  ;;  %v1966_v62 = vpop.f32.mrf.mxu1 }
 0x463   :  { %v1954_v41 = vadd.f32 %v3048_v36, %v1953_v38 }
 0x465   :  { %v1967_v6 = vadd.f32 %v1966_v62, %v1954_v41 }
 0x467   :  { %3057 = vtanh.f32 %v1967_v6 }
 0x46a   :  { %v1955_v45 = vpop.f32.mrf.mxu0  ;;  %v1968_v50 = vpop.f32.mrf.mxu1 }
 0x46d   :  { %v3058_v26 = vpop.eup %3057 }
 0x46e   :  { %1971 = vst [vmem:[#allocation14] sm:$0xff] %v3058_v26 }
 0x46f   :  { %1982 = dma.vmem_to_hbm [thread:$0]  %s1978_s17, 128, %s1980_s20, [#allocation4]  }
 0x470   :  { %3259 = dma.done.wait [#allocation4], 128  }
 0x471   :  { %3260 = vsyncadd [#allocation4], 4294967168 }
 0x472   :  { %1987 = vsyncpa [#allocation3], 1 }
 0x473   :  { %1988 = vsyncpa [#allocation6], 1 }
 0x474   :  { %1989 = vsyncpa [#allocation9], 1 }
 0x475   :  { %1990 = vsyncpa [#allocation12], 1 }
 0x476   :  { %1991 = vsyncpa [#allocation4], 1 }

// kernel: tpu_custom_call.1
= control target key start
LH: loop header
LB: loop body
LE: loop exit
PB: predicated region body
PF: predicated region fallthrough
CT: control target
= control target key end

     0   :  { %16 = vsyncpa [#allocation3], 0  ;;  %s3522_s0 = inlined_call_operand.hbm [shape: f32[8,128], index: 0, kind: input, shape index: {}]   ;;  %s3523_s1 = inlined_call_operand.hbm [shape: bf16[128,1024], index: 1, kind: input, shape index: {}]   ;;  %s3524_s2 = inlined_call_operand.hbm [shape: f32[1,1024], index: 2, kind: input, shape index: {}]   ;;  %s3525_s3 = inlined_call_operand.hbm [shape: f32[1,1024], index: 3, kind: input, shape index: {}]   ;;  %s3526_s4 = inlined_call_operand.hbm [shape: f32[1,1024], index: 4, kind: input, shape index: {}]   ;;  %s3527_s5 = inlined_call_operand.hbm [shape: bf16[1024,256], index: 5, kind: input, shape index: {}]   ;;  %s3528_s6 = inlined_call_operand.vmem [shape: f32[1,256], index: 6, kind: input, shape index: {}]   ;;  %s3529_s7 = inlined_call_operand.vmem [shape: f32[1,256], index: 7, kind: input, shape index: {}]   ;;  %s3530_s8 = inlined_call_operand.vmem [shape: f32[1,256], index: 8, kind: input, shape index: {}]   ;;  %s3531_s9 = inlined_call_operand.hbm [shape: bf16[256,128], index: 9, kind: input, shape index: {}]   ;;  %s3532_s10 = inlined_call_operand.vmem [shape: f32[1,128], index: 10, kind: input, shape index: {}]   ;;  %s3533_s11 = inlined_call_operand.hbm [shape: f32[8,128], index: 11, kind: output, shape index: {}]  }
   0x1   :  { %17 = vsyncpa [#allocation6], 0 }
   0x2   :  { %18 = vsyncpa [#allocation9], 0 }
   0x3   :  { %19 = vsyncpa [#allocation12], 0  ;;  %s36_s19 = sshll.u32 %s3523_s1, 4  ;;  %s37_s19 = int_to_ptr.hbm [resolvable:$true] %s36_s19 }
   0x4   :  { %20 = vsyncpa [#allocation4], 0  ;;  %s3261_s20 = smov [#allocation5]   ;;  %s61_s24 = sshll.u32 %s3525_s3, 4  ;;  %s62_s24 = int_to_ptr.hbm [resolvable:$true] %s61_s24 }
   0x5   :  { %s38_s21 = sshll.u32 %s3261_s20, 4  ;;  %s3262_s25 = smov 512   ;;  %s39_s21 = int_to_ptr.vmem [resolvable:$true] %s38_s21 }
   0x6   :  { %s3263_s26 = smov 32   ;;  %s3264_s27 = smov [#allocation8]  }
   0x7   :  { %44 = dma.hbm_to_vmem [thread:$0]  %s37_s19, 8192, %s39_s21, [#allocation6], %s3262_s25, %s3262_s25, %s3263_s26  }
   0x8   :  { %s63_s28 = sshll.u32 %s3264_s27, 4  ;;  %s82_s12 = sshll.u32 %s3527_s5, 4  ;;  %s64_s28 = int_to_ptr.vmem [resolvable:$true] %s63_s28  ;;  %s83_s12 = int_to_ptr.hbm [resolvable:$true] %s82_s12 }
   0x9   :  { %66 = dma.hbm_to_vmem [thread:$0]  %s62_s24, 128, %s64_s28, [#allocation9]  }
   0xa   :  { %s3265_s1 = smov [#allocation11]   ;;  %s26_s3 = sshll.u32 %s3522_s0, 4  ;;  %s27_s3 = int_to_ptr.hbm [resolvable:$true] %s26_s3 }
   0xb   :  { %s84_s13 = sshll.u32 %s3265_s1, 4  ;;  %s3266_s16 = smov 128   ;;  %s85_s13 = int_to_ptr.vmem [resolvable:$true] %s84_s13 }
   0xc   :  { %s3267_s17 = smov 8   ;;  %s3268_s18 = smov [#allocation2]  }
   0xd   :  { %90 = dma.hbm_to_vmem [thread:$0]  %s83_s12, 16384, %s85_s13, [#allocation12], %s3266_s16, %s3266_s16, %s3267_s17  }
   0xe   :  { %s28_s19 = sshll.u32 %s3268_s18, 4  ;;  %s50_s5 = sshll.u32 %s3524_s2, 4  ;;  %s29_s19 = int_to_ptr.vmem [resolvable:$true] %s28_s19  ;;  %s51_s5 = int_to_ptr.hbm [resolvable:$true] %s50_s5 }
   0xf   :  { %31 = dma.hbm_to_vmem [thread:$0]  %s27_s3, 128, %s29_s19, [#allocation3]  }
  0x10   :  { %s72_s24 = sshll.u32 %s3526_s4, 4  ;;  %s3269_s25 = smov [#allocation7]   ;;  %s73_s24 = int_to_ptr.hbm [resolvable:$true] %s72_s24 }
  0x11   :  { %s52_s26 = sshll.u32 %s3269_s25, 4  ;;  %s3270_s0 = smov [#allocation10]   ;;  %s53_s26 = int_to_ptr.vmem [resolvable:$true] %s52_s26 }
  0x12   :  { %55 = dma.hbm_to_vmem [thread:$0]  %s51_s5, 128, %s53_s26, [#allocation6]  }
  0x13   :  { %s74_s27 = sshll.u32 %s3270_s0, 4  ;;  %s101_s30 = sshll.u32 %s3531_s9, 4  ;;  %s75_s27 = int_to_ptr.vmem [resolvable:$true] %s74_s27  ;;  %s102_s30 = int_to_ptr.hbm [resolvable:$true] %s101_s30 }
  0x14   :  { %77 = dma.hbm_to_vmem [thread:$0]  %s73_s24, 128, %s75_s27, [#allocation9]  }
  0x15   :  { %s3271_s2 = smov [#allocation13]   ;;  %s3272_s1 = smov 64  }
  0x16   :  { %s103_s12 = sshll.u32 %s3271_s2, 4  ;;  %s3273_s13 = smov 4   ;;  %s104_s12 = int_to_ptr.vmem [resolvable:$true] %s103_s12 }
  0x17   :  { %109 = dma.hbm_to_vmem [thread:$0]  %s102_s30, 2048, %s104_s12, [#allocation12], %s3272_s1, %s3272_s1, %s3273_s13  }
  0x18   :  { %3251 = dma.done.wait [#allocation3], 128  }
  0x19   :  { %3252 = vsyncadd [#allocation3], 4294967168 }
  0x1a   :  { %3253 = dma.done.wait [#allocation6], 8320  }
  0x1b   :  { %3254 = vsyncadd [#allocation6], 4294958976 }
  0x1c   :  { %3255 = dma.done.wait [#allocation9], 256  }
  0x1d   :  { %3256 = vsyncadd [#allocation9], 4294967040 }
  0x1e   :  { %3257 = dma.done.wait [#allocation12], 18432  }
  0x1f   :  { %3258 = vsyncadd [#allocation12], 4294948864  ;;  %v2218_v0 = vld [vmem:[#allocation5 + $0x1c0] sm:$0xf]  ;;  %v2880_v2 = vld [vmem:[#allocation5 + $0x1c4] sm:$0xf] }
  0x20   :  { %v2884_v1 = vld [vmem:[#allocation5 + $0x1dc] sm:$0xf0]  ;;  %v2220_v4 = vld [vmem:[#allocation5 + $0x1e0] sm:$0xf0]  ;;  %v2226_v5 = vld [vmem:[#allocation5 + $0x1c8] sm:$0xf] }
  0x21   :  { %v2219_v3 = vor.u32 %v2884_v1, %v2218_v0  ;;  %v2885_v6 = vld [vmem:[#allocation5 + $0x1e4] sm:$0xf0]  ;;  %v2223_v7 = vor.u32 %v2880_v2, %v2220_v4  ;;  %v2881_v9 = vld [vmem:[#allocation5 + $0x1cc] sm:$0xf]  ;;  %v2186_v11 = vld [vmem:[#allocation5 + $0x180] sm:$0xf] }
  0x22   :  { %v2227_v8 = vor.u32 %v2885_v6, %v2226_v5  ;;  %v2228_v10 = vld [vmem:[#allocation5 + $0x1e8] sm:$0xf0]  ;;  %v2876_v13 = vld [vmem:[#allocation5 + $0x19c] sm:$0xf0]  ;;  %v2872_v14 = vld [vmem:[#allocation5 + $0x184] sm:$0xf] }
  0x23   :  { %544 = vmatpush.bf16.msra.mxu0 %v2219_v3  ;;  %v2231_v12 = vor.u32 %v2881_v9, %v2228_v10  ;;  %v2188_v15 = vld [vmem:[#allocation5 + $0x1a0] sm:$0xf0]  ;;  %557 = vmatpush.bf16.msra.mxu1 %v2223_v7  ;;  %v2187_v16 = vor.u32 %v2876_v13, %v2186_v11  ;;  %v2194_v18 = vld [vmem:[#allocation5 + $0x188] sm:$0xf]  ;;  %v2873_v20 = vld [vmem:[#allocation5 + $0x18c] sm:$0xf] }
  0x24   :  { %570 = vmatpush.bf16.msra.mxu2 %v2227_v8  ;;  %v2191_v17 = vor.u32 %v2872_v14, %v2188_v15  ;;  %v2877_v19 = vld [vmem:[#allocation5 + $0x1a4] sm:$0xf0]  ;;  %v2196_v22 = vld [vmem:[#allocation5 + $0x1a8] sm:$0xf0]  ;;  %v2154_v23 = vld [vmem:[#allocation5 + $0x140] sm:$0xf] }
  0x25   :  { %583 = vmatpush.bf16.msra.mxu3 %v2231_v12  ;;  %v2195_v21 = vor.u32 %v2877_v19, %v2194_v18  ;;  %v2868_v24 = vld [vmem:[#allocation5 + $0x15c] sm:$0xf0]  ;;  %v2199_v25 = vor.u32 %v2873_v20, %v2196_v22  ;;  %v2864_v26 = vld [vmem:[#allocation5 + $0x144] sm:$0xf]  ;;  %v2162_v28 = vld [vmem:[#allocation5 + $0x148] sm:$0xf] }
  0x26   :  { %v2156_v27 = vld [vmem:[#allocation5 + $0x160] sm:$0xf0]  ;;  %v2155_v29 = vor.u32 %v2868_v24, %v2154_v23  ;;  %v2869_v30 = vld [vmem:[#allocation5 + $0x164] sm:$0xf0]  ;;  %v2865_v31 = vld [vmem:[#allocation5 + $0x14c] sm:$0xf] }
  0x27   :  { %545 = vmatpush.bf16.msra.mxu0 %v2187_v16  ;;  %v2164_v32 = vld [vmem:[#allocation5 + $0x168] sm:$0xf0]  ;;  %558 = vmatpush.bf16.msra.mxu1 %v2191_v17  ;;  %v2159_v33 = vor.u32 %v2864_v26, %v2156_v27  ;;  %v2163_v34 = vor.u32 %v2869_v30, %v2162_v28  ;;  %v2122_v35 = vld [vmem:[#allocation5 + $0x100] sm:$0xf]  ;;  %v2856_v37 = vld [vmem:[#allocation5 + $0x104] sm:$0xf] }
  0x28   :  { %571 = vmatpush.bf16.msra.mxu2 %v2195_v21  ;;  %v2860_v36 = vld [vmem:[#allocation5 + $0x11c] sm:$0xf0]  ;;  %v2167_v38 = vor.u32 %v2865_v31, %v2164_v32  ;;  %v2124_v39 = vld [vmem:[#allocation5 + $0x120] sm:$0xf0]  ;;  %v2130_v40 = vld [vmem:[#allocation5 + $0x108] sm:$0xf] }
  0x29   :  { %584 = vmatpush.bf16.msra.mxu3 %v2199_v25  ;;  %v2861_v41 = vld [vmem:[#allocation5 + $0x124] sm:$0xf0]  ;;  %v2857_v42 = vld [vmem:[#allocation5 + $0x10c] sm:$0xf]  ;;  %v2123_v44 = vor.u32 %v2860_v36, %v2122_v35  ;;  %v2127_v45 = vor.u32 %v2856_v37, %v2124_v39  ;;  %v2090_v47 = vld [vmem:[#allocation5 + $0xc0] sm:$0xf] }
  0x2a   :  { %v2132_v43 = vld [vmem:[#allocation5 + $0x128] sm:$0xf0]  ;;  %v2131_v46 = vor.u32 %v2861_v41, %v2130_v40  ;;  %v2852_v48 = vld [vmem:[#allocation5 + $0xdc] sm:$0xf0]  ;;  %v2848_v49 = vld [vmem:[#allocation5 + $0xc4] sm:$0xf] }
  0x2b   :  { %546 = vmatpush.bf16.msra.mxu0 %v2155_v29  ;;  %559 = vmatpush.bf16.msra.mxu1 %v2159_v33  ;;  %v2135_v50 = vor.u32 %v2857_v42, %v2132_v43  ;;  %v2092_v51 = vld [vmem:[#allocation5 + $0xe0] sm:$0xf0]  ;;  %v2098_v52 = vld [vmem:[#allocation5 + $0xc8] sm:$0xf]  ;;  %v2849_v54 = vld [vmem:[#allocation5 + $0xcc] sm:$0xf]  ;;  %v2091_v56 = vor.u32 %v2852_v48, %v2090_v47 }
  0x2c   :  { %572 = vmatpush.bf16.msra.mxu2 %v2163_v34  ;;  %v2853_v53 = vld [vmem:[#allocation5 + $0xe4] sm:$0xf0]  ;;  %v2100_v55 = vld [vmem:[#allocation5 + $0xe8] sm:$0xf0]  ;;  %v2095_v57 = vor.u32 %v2848_v49, %v2092_v51  ;;  %v2058_v59 = vld [vmem:[#allocation5 + $0x80] sm:$0xf] }
  0x2d   :  { %585 = vmatpush.bf16.msra.mxu3 %v2167_v38  ;;  %v2099_v58 = vor.u32 %v2853_v53, %v2098_v52  ;;  %v2844_v60 = vld [vmem:[#allocation5 + $0x9c] sm:$0xf0]  ;;  %v2840_v61 = vld [vmem:[#allocation5 + $0x84] sm:$0xf]  ;;  %v2103_v62 = vor.u32 %v2849_v54, %v2100_v55  ;;  %v2066_v0 = vld [vmem:[#allocation5 + $0x88] sm:$0xf] }
  0x2e   :  { %v2060_v63 = vld [vmem:[#allocation5 + $0xa0] sm:$0xf0]  ;;  %v2845_v1 = vld [vmem:[#allocation5 + $0xa4] sm:$0xf0]  ;;  %v2841_v2 = vld [vmem:[#allocation5 + $0x8c] sm:$0xf]  ;;  %v2059_v4 = vor.u32 %v2844_v60, %v2058_v59 }
  0x2f   :  { %547 = vmatpush.bf16.msra.mxu0 %v2123_v44  ;;  %560 = vmatpush.bf16.msra.mxu1 %v2127_v45  ;;  %v2068_v3 = vld [vmem:[#allocation5 + $0xa8] sm:$0xf0]  ;;  %v2063_v5 = vor.u32 %v2840_v61, %v2060_v63  ;;  %v2067_v6 = vor.u32 %v2845_v1, %v2066_v0  ;;  %v2026_v7 = vld [vmem:[#allocation5 + $0x40] sm:$0xf]  ;;  %v2832_v9 = vld [vmem:[#allocation5 + $0x44] sm:$0xf] }
  0x30   :  { %573 = vmatpush.bf16.msra.mxu2 %v2131_v46  ;;  %v2836_v8 = vld [vmem:[#allocation5 + $0x5c] sm:$0xf0]  ;;  %v2071_v10 = vor.u32 %v2841_v2, %v2068_v3  ;;  %v2028_v11 = vld [vmem:[#allocation5 + $0x60] sm:$0xf0]  ;;  %v2034_v12 = vld [vmem:[#allocation5 + $0x48] sm:$0xf] }
  0x31   :  { %586 = vmatpush.bf16.msra.mxu3 %v2135_v50  ;;  %v2837_v13 = vld [vmem:[#allocation5 + $0x64] sm:$0xf0]  ;;  %v2833_v14 = vld [vmem:[#allocation5 + $0x4c] sm:$0xf]  ;;  %v2027_v16 = vor.u32 %v2836_v8, %v2026_v7  ;;  %v1994_v17 = vld [vmem:[#allocation5] sm:$0xf]  ;;  %v2031_v19 = vor.u32 %v2832_v9, %v2028_v11 }
  0x32   :  { %v2036_v15 = vld [vmem:[#allocation5 + $0x68] sm:$0xf0]  ;;  %v2828_v18 = vld [vmem:[#allocation5 + $0x1c] sm:$0xf0]  ;;  %v2035_v20 = vor.u32 %v2837_v13, %v2034_v12  ;;  %v2824_v21 = vld [vmem:[#allocation5 + $0x4] sm:$0xf] }
  0x33   :  { %548 = vmatpush.bf16.msra.mxu0 %v2091_v56  ;;  %561 = vmatpush.bf16.msra.mxu1 %v2095_v57  ;;  %v1996_v22 = vld [vmem:[#allocation5 + $0x20] sm:$0xf0]  ;;  %v2002_v23 = vld [vmem:[#allocation5 + $0x8] sm:$0xf]  ;;  %v2039_v24 = vor.u32 %v2833_v14, %v2036_v15  ;;  %v2825_v26 = vld [vmem:[#allocation5 + $0xc] sm:$0xf]  ;;  %v1995_v31 = vor.u32 %v2828_v18, %v1994_v17 }
  0x34   :  { %574 = vmatpush.bf16.msra.mxu2 %v2099_v58  ;;  %v2829_v25 = vld [vmem:[#allocation5 + $0x24] sm:$0xf0]  ;;  %v2004_v27 = vld [vmem:[#allocation5 + $0x28] sm:$0xf0]  ;;  %v2234_v28 = vld [vmem:[#allocation5 + $0x1d0] sm:$0xf]  ;;  %v1999_v35 = vor.u32 %v2824_v21, %v1996_v22 }
  0x35   :  { %587 = vmatpush.bf16.msra.mxu3 %v2103_v62  ;;  %v2886_v29 = vld [vmem:[#allocation5 + $0x1ec] sm:$0xf0]  ;;  %v2882_v30 = vld [vmem:[#allocation5 + $0x1d4] sm:$0xf]  ;;  %v2242_v33 = vld [vmem:[#allocation5 + $0x1d8] sm:$0xf]  ;;  %v2003_v36 = vor.u32 %v2829_v25, %v2002_v23  ;;  %v2007_v40 = vor.u32 %v2825_v26, %v2004_v27 }
  0x36   :  { %v2236_v32 = vld [vmem:[#allocation5 + $0x1f0] sm:$0xf0]  ;;  %v2887_v34 = vld [vmem:[#allocation5 + $0x1f4] sm:$0xf0]  ;;  %v2883_v37 = vld [vmem:[#allocation5 + $0x1dc] sm:$0xf]  ;;  %v2235_v41 = vor.u32 %v2886_v29, %v2234_v28 }
  0x37   :  { %549 = vmatpush.bf16.msra.mxu0 %v2059_v4  ;;  %562 = vmatpush.bf16.msra.mxu1 %v2063_v5  ;;  %v2244_v38 = vld [vmem:[#allocation5 + $0x1f8] sm:$0xf0]  ;;  %v2239_v42 = vor.u32 %v2882_v30, %v2236_v32  ;;  %v2243_v43 = vor.u32 %v2887_v34, %v2242_v33  ;;  %v2202_v44 = vld [vmem:[#allocation5 + $0x190] sm:$0xf]  ;;  %v2874_v46 = vld [vmem:[#allocation5 + $0x194] sm:$0xf] }
  0x38   :  { %575 = vmatpush.bf16.msra.mxu2 %v2067_v6  ;;  %v140_v39 = vld [vmem:[#allocation2] sm:$0xff]  ;;  %v2878_v45 = vld [vmem:[#allocation5 + $0x1ac] sm:$0xf0]  ;;  %v2247_v47 = vor.u32 %v2883_v37, %v2244_v38  ;;  %v2204_v48 = vld [vmem:[#allocation5 + $0x1b0] sm:$0xf0]  ;;  %s3276_s16 = smov [#allocation14]  }
  0x39   :  { %588 = vmatpush.bf16.msra.mxu3 %v2071_v10  ;;  %v2210_v49 = vld [vmem:[#allocation5 + $0x198] sm:$0xf]  ;;  %v3358_v51 = vpack.c.bf16 %v140_v39, %v140_v39  ;;  %v2875_v52 = vld [vmem:[#allocation5 + $0x19c] sm:$0xf]  ;;  %v2203_v54 = vor.u32 %v2878_v45, %v2202_v44  ;;  %v2207_v55 = vor.u32 %v2874_v46, %v2204_v48  ;;  %v2170_v57 = vld [vmem:[#allocation5 + $0x150] sm:$0xf] }
  0x3a   :  { %v2879_v50 = vld [vmem:[#allocation5 + $0x1b4] sm:$0xf0]  ;;  %v2212_v53 = vld [vmem:[#allocation5 + $0x1b8] sm:$0xf0]  ;;  %v2870_v58 = vld [vmem:[#allocation5 + $0x16c] sm:$0xf0] }
  0x3b   :  { %550 = vmatpush.bf16.msra.mxu0 %v2027_v16  ;;  %563 = vmatpush.bf16.msra.mxu1 %v2031_v19  ;;  %v2211_v56 = vor.u32 %v2879_v50, %v2210_v49  ;;  %v2866_v59 = vld [vmem:[#allocation5 + $0x154] sm:$0xf]  ;;  %v2215_v60 = vor.u32 %v2875_v52, %v2212_v53  ;;  %v2178_v62 = vld [vmem:[#allocation5 + $0x158] sm:$0xf]  ;;  %v2867_v0 = vld [vmem:[#allocation5 + $0x15c] sm:$0xf]  ;;  %v2171_v2 = vor.u32 %v2870_v58, %v2170_v57 }
  0x3c   :  { %576 = vmatpush.bf16.msra.mxu2 %v2035_v20  ;;  %v2172_v61 = vld [vmem:[#allocation5 + $0x170] sm:$0xf0]  ;;  %v2871_v63 = vld [vmem:[#allocation5 + $0x174] sm:$0xf0]  ;;  %v2180_v1 = vld [vmem:[#allocation5 + $0x178] sm:$0xf0] }
  0x3d   :  { %589 = vmatpush.bf16.msra.mxu3 %v2039_v24  ;;  %v2175_v3 = vor.u32 %v2866_v59, %v2172_v61  ;;  %v2179_v4 = vor.u32 %v2871_v63, %v2178_v62  ;;  %v2138_v5 = vld [vmem:[#allocation5 + $0x110] sm:$0xf]  ;;  %v2858_v7 = vld [vmem:[#allocation5 + $0x114] sm:$0xf]  ;;  %v2183_v8 = vor.u32 %v2867_v0, %v2180_v1  ;;  %v2146_v10 = vld [vmem:[#allocation5 + $0x118] sm:$0xf] }
  0x3e   :  { %v2862_v6 = vld [vmem:[#allocation5 + $0x12c] sm:$0xf0]  ;;  %v2140_v9 = vld [vmem:[#allocation5 + $0x130] sm:$0xf0]  ;;  %v2863_v11 = vld [vmem:[#allocation5 + $0x134] sm:$0xf0] }
  0x3f   :  { %551 = vmatpush.bf16.msra.mxu0 %v1995_v31  ;;  %564 = vmatpush.bf16.msra.mxu1 %v1999_v35  ;;  %v2859_v12 = vld [vmem:[#allocation5 + $0x11c] sm:$0xf]  ;;  %v2139_v14 = vor.u32 %v2862_v6, %v2138_v5  ;;  %v2106_v15 = vld [vmem:[#allocation5 + $0xd0] sm:$0xf]  ;;  %v2143_v16 = vor.u32 %v2858_v7, %v2140_v9  ;;  %v2147_v17 = vor.u32 %v2863_v11, %v2146_v10  ;;  %v2850_v19 = vld [vmem:[#allocation5 + $0xd4] sm:$0xf] }
  0x40   :  { %577 = vmatpush.bf16.msra.mxu2 %v2003_v36  ;;  %v2148_v13 = vld [vmem:[#allocation5 + $0x138] sm:$0xf0]  ;;  %v2854_v18 = vld [vmem:[#allocation5 + $0xec] sm:$0xf0]  ;;  %v2108_v20 = vld [vmem:[#allocation5 + $0xf0] sm:$0xf0] }
  0x41   :  { %590 = vmatpush.bf16.msra.mxu3 %v2007_v40  ;;  %v2151_v21 = vor.u32 %v2859_v12, %v2148_v13  ;;  %v2114_v22 = vld [vmem:[#allocation5 + $0xd8] sm:$0xf]  ;;  %v2851_v24 = vld [vmem:[#allocation5 + $0xdc] sm:$0xf]  ;;  %v2107_v26 = vor.u32 %v2854_v18, %v2106_v15  ;;  %v2111_v27 = vor.u32 %v2850_v19, %v2108_v20  ;;  %v2074_v29 = vld [vmem:[#allocation5 + $0x90] sm:$0xf] }
  0x42   :  { %552 = vmatmul.bf16.vlgmr.msra.gmra.mxu0 %v3358_v51  ;;  %565 = vmatmul.bf16.vlgmr.msra.gmra.mxu1 %v3358_v51  ;;  %v2855_v23 = vld [vmem:[#allocation5 + $0xf4] sm:$0xf0]  ;;  %v2116_v25 = vld [vmem:[#allocation5 + $0xf8] sm:$0xf0]  ;;  %v2846_v30 = vld [vmem:[#allocation5 + $0xac] sm:$0xf0] }
  0x43   :  { %596 = vmatpush.bf16.msrb.mxu0 %v2235_v41  ;;  %609 = vmatpush.bf16.msrb.mxu1 %v2239_v42  ;;  %v2115_v28 = vor.u32 %v2855_v23, %v2114_v22  ;;  %v2842_v31 = vld [vmem:[#allocation5 + $0x94] sm:$0xf]  ;;  %v2119_v32 = vor.u32 %v2851_v24, %v2116_v25  ;;  %v2082_v34 = vld [vmem:[#allocation5 + $0x98] sm:$0xf]  ;;  %v2843_v36 = vld [vmem:[#allocation5 + $0x9c] sm:$0xf]  ;;  %v2075_v38 = vor.u32 %v2846_v30, %v2074_v29 }
  0x44   :  { %622 = vmatpush.bf16.msrb.mxu2 %v2243_v43  ;;  %591 = vmatmul.bf16.vlgmr.msra.gmra.mxu3 %v3358_v51  ;;  %v2076_v33 = vld [vmem:[#allocation5 + $0xb0] sm:$0xf0]  ;;  %v2847_v35 = vld [vmem:[#allocation5 + $0xb4] sm:$0xf0]  ;;  %v2084_v37 = vld [vmem:[#allocation5 + $0xb8] sm:$0xf0] }
  0x45   :  { %635 = vmatpush.bf16.msrb.mxu3 %v2247_v47  ;;  %578 = vmatmul.bf16.vlgmr.msra.gmra.mxu2 %v3358_v51  ;;  %v2079_v39 = vor.u32 %v2842_v31, %v2076_v33  ;;  %v2083_v40 = vor.u32 %v2847_v35, %v2082_v34  ;;  %v2042_v41 = vld [vmem:[#allocation5 + $0x50] sm:$0xf]  ;;  %v2834_v43 = vld [vmem:[#allocation5 + $0x54] sm:$0xf]  ;;  %v2087_v44 = vor.u32 %v2843_v36, %v2084_v37  ;;  %v2050_v46 = vld [vmem:[#allocation5 + $0x58] sm:$0xf] }
  0x46   :  { %v2838_v42 = vld [vmem:[#allocation5 + $0x6c] sm:$0xf0]  ;;  %v2044_v45 = vld [vmem:[#allocation5 + $0x70] sm:$0xf0]  ;;  %v2839_v47 = vld [vmem:[#allocation5 + $0x74] sm:$0xf0] }
  0x47   :  { %597 = vmatpush.bf16.msrb.mxu0 %v2203_v54  ;;  %610 = vmatpush.bf16.msrb.mxu1 %v2207_v55  ;;  %v2835_v48 = vld [vmem:[#allocation5 + $0x5c] sm:$0xf]  ;;  %v2043_v50 = vor.u32 %v2838_v42, %v2042_v41  ;;  %v2047_v52 = vor.u32 %v2834_v43, %v2044_v45  ;;  %v2051_v53 = vor.u32 %v2839_v47, %v2050_v46  ;;  %v2010_v54 = vld [vmem:[#allocation5 + $0x10] sm:$0xf]  ;;  %v2012_v58 = vld [vmem:[#allocation5 + $0x30] sm:$0xf0] }
  0x48   :  { %623 = vmatpush.bf16.msrb.mxu2 %v2211_v56  ;;  %v2052_v49 = vld [vmem:[#allocation5 + $0x78] sm:$0xf0]  ;;  %v2830_v55 = vld [vmem:[#allocation5 + $0x2c] sm:$0xf0]  ;;  %v2826_v56 = vld [vmem:[#allocation5 + $0x14] sm:$0xf] }
  0x49   :  { %636 = vmatpush.bf16.msrb.mxu3 %v2215_v60  ;;  %v2055_v57 = vor.u32 %v2835_v48, %v2052_v49  ;;  %v2018_v59 = vld [vmem:[#allocation5 + $0x18] sm:$0xf]  ;;  %v2827_v61 = vld [vmem:[#allocation5 + $0x1c] sm:$0xf]  ;;  %v2011_v63 = vor.u32 %v2830_v55, %v2010_v54  ;;  %v2015_v0 = vor.u32 %v2826_v56, %v2012_v58  ;;  %v206_v9 = vld [vmem:[#allocation7] sm:$0xff]  ;;  %v3274_v42 = vmov 1024.0  }
  0x4a   :  { %v2831_v60 = vld [vmem:[#allocation5 + $0x34] sm:$0xf0]  ;;  %v2020_v62 = vld [vmem:[#allocation5 + $0x38] sm:$0xf0]  ;;  %v208_v11 = vperm.slane %v206_v9, 0  ;;  %v209_v12 = vperm.slane %v206_v9, 1  ;;  %3049 = vrcp.f32 %v3274_v42 }
  0x4b   :  { %598 = vmatpush.bf16.msrb.mxu0 %v2171_v2  ;;  %611 = vmatpush.bf16.msrb.mxu1 %v2175_v3  ;;  %v2019_v1 = vor.u32 %v2831_v60, %v2018_v59  ;;  %v2023_v2 = vor.u32 %v2827_v61, %v2020_v62  ;;  %v211_v18 = vperm.slane %v206_v9, 3  ;;  %v212_v19 = vperm.slane %v206_v9, 4  ;;  %v2306_v46 = vld [vmem:[#allocation11 + $0x70] sm:$0xf]  ;;  %v2903_v47 = vld [vmem:[#allocation11 + $0x74] sm:$0xf0] }
  0x4c   :  { %624 = vmatpush.bf16.msrb.mxu2 %v2179_v4  ;;  %v213_v23 = vperm.slane %v206_v9, 5  ;;  %v214_v29 = vperm.slane %v206_v9, 6  ;;  %v215_v30 = vperm.slane %v206_v9, 7  ;;  %v2370_v48 = vld [vmem:[#allocation11 + $0xf0] sm:$0xf]  ;;  %s1977_s17 = sshll.u32 %s3276_s16, 4  ;;  %s1978_s17 = int_to_ptr.vmem [resolvable:$true] %s1977_s17 }
  0x4d   :  { %637 = vmatpush.bf16.msrb.mxu3 %v2183_v8  ;;  %v2935_v54 = vld [vmem:[#allocation11 + $0x174] sm:$0xf0]  ;;  %v2298_v59 = vld [vmem:[#allocation11 + $0x60] sm:$0xf]  ;;  %v2901_v61 = vld [vmem:[#allocation11 + $0x64] sm:$0xf0] }
  0x4e   :  { %v2951_v58 = vld [vmem:[#allocation11 + $0x1f4] sm:$0xf0]  ;;  %v2362_v62 = vld [vmem:[#allocation11 + $0xe0] sm:$0xf]  ;;  %s1979_s20 = sshll.u32 %s3533_s11, 4  ;;  %s1980_s20 = int_to_ptr.hbm [resolvable:$true] %s1979_s20 }
  0x4f   :  { %599 = vmatpush.bf16.msrb.mxu0 %v2139_v14  ;;  %612 = vmatpush.bf16.msrb.mxu1 %v2143_v16  ;;  %v210_v16 = vperm.slane %v206_v9, 2  ;;  %v2899_v9 = vld [vmem:[#allocation11 + $0x54] sm:$0xf0] }
  0x50   :  { %625 = vmatpush.bf16.msrb.mxu2 %v2147_v17  ;;  %v3050_v43 = vpop.eup %3049  ;;  %v2895_v42 = vld [vmem:[#allocation11 + $0x34] sm:$0xf0] }
  0x51   :  { %638 = vmatpush.bf16.msrb.mxu3 %v2151_v21  ;;  %vm662_vm0 = vweird.f32 %v3050_v43 }
  0x53   :  { %600 = vmatpush.bf16.msrb.mxu0 %v2107_v26  ;;  %613 = vmatpush.bf16.msrb.mxu1 %v2111_v27 }
  0x54   :  { %626 = vmatpush.bf16.msrb.mxu2 %v2115_v28 }
  0x55   :  { %639 = vmatpush.bf16.msrb.mxu3 %v2119_v32 }
  0x57   :  { %601 = vmatpush.bf16.msrb.mxu0 %v2075_v38  ;;  %614 = vmatpush.bf16.msrb.mxu1 %v2079_v39 }
  0x58   :  { %627 = vmatpush.bf16.msrb.mxu2 %v2083_v40 }
  0x59   :  { %640 = vmatpush.bf16.msrb.mxu3 %v2087_v44  ;;  %v658_v44 = vmul.f32 1024.0, %v3050_v43 }
  0x5b   :  { %602 = vmatpush.bf16.msrb.mxu0 %v2043_v50  ;;  %615 = vmatpush.bf16.msrb.mxu1 %v2047_v52  ;;  %v659_v45 = vsub.f32 1.0, %v658_v44  ;;  %v2307_v50 = vor.u32 %v2903_v47, %v2306_v46  ;;  %v2919_v52 = vld [vmem:[#allocation11 + $0xf4] sm:$0xf0]  ;;  %v2338_v44 = vld [vmem:[#allocation11 + $0xb0] sm:$0xf] }
  0x5c   :  { %628 = vmatpush.bf16.msrb.mxu2 %v2051_v53  ;;  %v2434_v53 = vld [vmem:[#allocation11 + $0x170] sm:$0xf]  ;;  %v2371_v55 = vor.u32 %v2919_v52, %v2370_v48  ;;  %v2927_v52 = vld [vmem:[#allocation11 + $0x134] sm:$0xf0] }
  0x5d   :  { %641 = vmatpush.bf16.msrb.mxu3 %v2055_v57  ;;  %v660_v49 = vmul.f32 %v3050_v43, %v659_v45  ;;  %v2435_v56 = vor.u32 %v2935_v54, %v2434_v53  ;;  %v2498_v57 = vld [vmem:[#allocation11 + $0x1f0] sm:$0xf]  ;;  %v2911_v45 = vld [vmem:[#allocation11 + $0xb4] sm:$0xf0] }
  0x5e   :  { %v2499_v60 = vor.u32 %v2951_v58, %v2498_v57  ;;  %v2466_v54 = vld [vmem:[#allocation11 + $0x1b0] sm:$0xf]  ;;  %v2266_v57 = vld [vmem:[#allocation11 + $0x20] sm:$0xf]  ;;  %v2893_v58 = vld [vmem:[#allocation11 + $0x24] sm:$0xf0] }
  0x5f   :  { %603 = vmatpush.bf16.msrb.mxu0 %v2011_v63  ;;  %616 = vmatpush.bf16.msrb.mxu1 %v2015_v0  ;;  %v2917_v63 = vld [vmem:[#allocation11 + $0xe4] sm:$0xf0]  ;;  %v2299_v0 = vor.u32 %v2901_v61, %v2298_v59 }
  0x60   :  { %629 = vmatpush.bf16.msrb.mxu2 %v2019_v1  ;;  %v2363_v1 = vor.u32 %v2917_v63, %v2362_v62  ;;  %v2909_v61 = vld [vmem:[#allocation11 + $0xa4] sm:$0xf0] }
  0x61   :  { %642 = vmatpush.bf16.msrb.mxu3 %v2023_v2  ;;  %v2426_v2 = vld [vmem:[#allocation11 + $0x160] sm:$0xf] }
  0x62   :  { %604 = vmatmul.bf16.vlgmr.msrb.gmra.mxu0 %v3358_v51  ;;  %617 = vmatmul.bf16.vlgmr.msrb.gmra.mxu1 %v3358_v51 }
  0x63   :  { %630 = vmatmul.bf16.vlgmr.msrb.gmra.mxu2 %v3358_v51  ;;  %1552 = vmatpush.bf16.msra.mxu0 %v2307_v50  ;;  %v2402_v50 = vld [vmem:[#allocation11 + $0x130] sm:$0xf] }
  0x64   :  { %643 = vmatmul.bf16.vlgmr.msrb.gmra.mxu3 %v3358_v51  ;;  %1565 = vmatpush.bf16.msra.mxu1 %v2371_v55  ;;  %v2943_v55 = vld [vmem:[#allocation11 + $0x1b4] sm:$0xf0]  ;;  %v2403_v59 = vor.u32 %v2927_v52, %v2402_v50  ;;  %v2442_v52 = vld [vmem:[#allocation11 + $0x180] sm:$0xf] }
  0x65   :  { %1578 = vmatpush.bf16.msra.mxu2 %v2435_v56  ;;  %1591 = vmatpush.bf16.msra.mxu3 %v2499_v60  ;;  %v2330_v60 = vld [vmem:[#allocation11 + $0xa0] sm:$0xf] }
  0x67   :  { %1553 = vmatpush.bf16.msra.mxu0 %v2299_v0  ;;  %v2467_v0 = vor.u32 %v2943_v55, %v2466_v54  ;;  %v2562_v54 = vld [vmem:[#allocation11 + $0x270] sm:$0xf] }
  0x68   :  { %1566 = vmatpush.bf16.msra.mxu1 %v2363_v1  ;;  %v2394_v1 = vld [vmem:[#allocation11 + $0x120] sm:$0xf] }
  0xbf   :  { %v553_v3 = vpop.f32.mrf.mxu0  ;;  %v566_v4 = vpop.f32.mrf.mxu1 }
  0xc0   :  { %v3368_v14 = vadd.f32 %v553_v3, %v208_v11  ;;  %v3370_v15 = vadd.f32 %v566_v4, %v209_v12  ;;  %v2933_v3 = vld [vmem:[#allocation11 + $0x164] sm:$0xf0]  ;;  %v2490_v4 = vld [vmem:[#allocation11 + $0x1e0] sm:$0xf]  ;;  %v2354_v11 = vld [vmem:[#allocation11 + $0xd0] sm:$0xf] }
  0xc1   :  { %v2915_v12 = vld [vmem:[#allocation11 + $0xd4] sm:$0xf0] }
  0xc2   :  { %v648_v17 = vadd.f32 %v3370_v15, %v3368_v14 }
  0xc7   :  { %v592_v6 = vpop.f32.mrf.mxu3  ;;  %v555_v7 = vpop.f32.mrf.mxu0 }
  0xc8   :  { %v579_v5 = vpop.f32.mrf.mxu2  ;;  %v568_v8 = vpop.f32.mrf.mxu1  ;;  %v3377_v21 = vadd.f32 %v592_v6, %v211_v18  ;;  %v2427_v6 = vor.u32 %v2933_v3, %v2426_v2  ;;  %v2949_v7 = vld [vmem:[#allocation11 + $0x1e4] sm:$0xf0]  ;;  %v2482_v18 = vld [vmem:[#allocation11 + $0x1d0] sm:$0xf]  ;;  %v2267_v3 = vor.u32 %v2893_v58, %v2266_v57 }
  0xc9   :  { %v3374_v51 = vadd.f32 %v579_v5, %v210_v16  ;;  %v661_v5 = vadd.f32 %v3050_v43, %v660_v49  ;;  %v2290_v8 = vld [vmem:[#allocation11 + $0x50] sm:$0xf]  ;;  %v2925_v2 = vld [vmem:[#allocation11 + $0x124] sm:$0xf0] }
  0xca   :  { %v2291_v16 = vor.u32 %v2899_v9, %v2290_v8  ;;  %1579 = vmatpush.bf16.msra.mxu2 %v2427_v6  ;;  %v2331_v8 = vor.u32 %v2909_v61, %v2330_v60  ;;  %v2258_v9 = vld [vmem:[#allocation11 + $0x10] sm:$0xf]  ;;  %v2999_v60 = vld [vmem:[#allocation11 + $0x374] sm:$0xf0] }
  0xcb   :  { %v649_v20 = vadd.f32 %v648_v17, %v3374_v51  ;;  %v2931_v17 = vld [vmem:[#allocation11 + $0x154] sm:$0xf0]  ;;  %v2754_v61 = vld [vmem:[#allocation11 + $0x3f0] sm:$0xf] }
  0xcc   :  { %1554 = vmatpush.bf16.msra.mxu0 %v2291_v16 }
  0xcd   :  { %v650_v26 = vadd.f32 %v649_v20, %v3377_v21  ;;  %v2355_v20 = vor.u32 %v2915_v12, %v2354_v11  ;;  %v2395_v11 = vor.u32 %v2925_v2, %v2394_v1  ;;  %v2322_v12 = vld [vmem:[#allocation11 + $0x90] sm:$0xf]  ;;  %v2965_v1 = vld [vmem:[#allocation11 + $0x264] sm:$0xf0] }
  0xcf   :  { %v594_v13 = vpop.f32.mrf.mxu3  ;;  %1567 = vmatpush.bf16.msra.mxu1 %v2355_v20  ;;  %v2923_v20 = vld [vmem:[#allocation11 + $0x114] sm:$0xf0] }
  0xd0   :  { %v581_v10 = vpop.f32.mrf.mxu2  ;;  %v2418_v13 = vld [vmem:[#allocation11 + $0x150] sm:$0xf] }
  0xd1   :  { %v2491_v10 = vor.u32 %v2949_v7, %v2490_v4  ;;  %v2458_v4 = vld [vmem:[#allocation11 + $0x1a0] sm:$0xf] }
  0xd3   :  { %1592 = vmatpush.bf16.msra.mxu3 %v2491_v10  ;;  %v2891_v10 = vld [vmem:[#allocation11 + $0x14] sm:$0xf0] }
  0xdf   :  { %v605_v22 = vpop.f32.mrf.mxu0  ;;  %v618_v25 = vpop.f32.mrf.mxu1 }
  0xe0   :  { %v3379_v24 = vadd.f32 %v605_v22, %v212_v19  ;;  %v3383_v28 = vadd.f32 %v618_v25, %v213_v23  ;;  %v2947_v19 = vld [vmem:[#allocation11 + $0x1d4] sm:$0xf0]  ;;  %v2419_v22 = vor.u32 %v2931_v17, %v2418_v13  ;;  %v2282_v23 = vld [vmem:[#allocation11 + $0x40] sm:$0xf]  ;;  %v2897_v25 = vld [vmem:[#allocation11 + $0x44] sm:$0xf0] }
  0xe1   :  { %v2907_v13 = vld [vmem:[#allocation11 + $0x94] sm:$0xf0] }
  0xe2   :  { %v651_v27 = vadd.f32 %v650_v26, %v3379_v24  ;;  %v3393_v26 = vsel %vm662_vm0, %v3050_v43, %v661_v5  ;;  %1580 = vmatpush.bf16.msra.mxu2 %v2419_v22  ;;  %v2941_v5 = vld [vmem:[#allocation11 + $0x1a4] sm:$0xf0]  ;;  %v2259_v22 = vor.u32 %v2891_v10, %v2258_v9  ;;  %v2746_v9 = vld [vmem:[#allocation11 + $0x3e0] sm:$0xf] }
  0xe3   :  { %v3013_v10 = vld [vmem:[#allocation11 + $0x3e4] sm:$0xf0] }
  0xe4   :  { %v652_v32 = vadd.f32 %v651_v27, %v3383_v28  ;;  %v2483_v27 = vor.u32 %v2947_v19, %v2482_v18  ;;  %v2459_v18 = vor.u32 %v2941_v5, %v2458_v4  ;;  %v2386_v19 = vld [vmem:[#allocation11 + $0x110] sm:$0xf]  ;;  %v2618_v4 = vld [vmem:[#allocation11 + $0x2e0] sm:$0xf]  ;;  %v2981_v5 = vld [vmem:[#allocation11 + $0x2e4] sm:$0xf0] }
  0xe6   :  { %v631_v31 = vpop.f32.mrf.mxu2  ;;  %1593 = vmatpush.bf16.msra.mxu3 %v2483_v27 }
  0xe7   :  { %v3386_v33 = vadd.f32 %v631_v31, %v214_v29  ;;  %v644_v34 = vpop.f32.mrf.mxu3  ;;  %v607_v35 = vpop.f32.mrf.mxu0  ;;  %v2346_v29 = vld [vmem:[#allocation11 + $0xc0] sm:$0xf] }
  0xe8   :  { %v3388_v36 = vadd.f32 %v644_v34, %v215_v30  ;;  %v620_v37 = vpop.f32.mrf.mxu1  ;;  %v2913_v30 = vld [vmem:[#allocation11 + $0xc4] sm:$0xf0]  ;;  %v2410_v31 = vld [vmem:[#allocation11 + $0x140] sm:$0xf]  ;;  %v2283_v35 = vor.u32 %v2897_v25, %v2282_v23  ;;  %v2450_v23 = vld [vmem:[#allocation11 + $0x190] sm:$0xf] }
  0xe9   :  { %v653_v38 = vadd.f32 %v652_v32, %v3386_v33  ;;  %v2929_v32 = vld [vmem:[#allocation11 + $0x144] sm:$0xf0]  ;;  %v2474_v37 = vld [vmem:[#allocation11 + $0x1c0] sm:$0xf]  ;;  %v2939_v25 = vld [vmem:[#allocation11 + $0x194] sm:$0xf0] }
  0xea   :  { %v2411_v43 = vor.u32 %v2929_v32, %v2410_v31  ;;  %1555 = vmatpush.bf16.msra.mxu0 %v2283_v35  ;;  %v2387_v31 = vor.u32 %v2923_v20, %v2386_v19  ;;  %v2451_v35 = vor.u32 %v2939_v25, %v2450_v23  ;;  %v2979_v19 = vld [vmem:[#allocation11 + $0x2d4] sm:$0xf0]  ;;  %v2674_v20 = vld [vmem:[#allocation11 + $0x350] sm:$0xf] }
  0xeb   :  { %v654_v39 = vadd.f32 %v653_v38, %v3388_v36  ;;  %v2945_v38 = vld [vmem:[#allocation11 + $0x1c4] sm:$0xf0] }
  0xec   :  { %v2475_v49 = vor.u32 %v2945_v38, %v2474_v37  ;;  %1581 = vmatpush.bf16.msra.mxu2 %v2411_v43  ;;  %v2905_v43 = vld [vmem:[#allocation11 + $0x84] sm:$0xf0] }
  0xed   :  { %655 = vadd.xlane.f32.xlu0 %v654_v39 }
  0xee   :  { %v633_v40 = vpop.f32.mrf.mxu2  ;;  %1594 = vmatpush.bf16.msra.mxu3 %v2475_v49 }
  0xef   :  { %v646_v41 = vpop.f32.mrf.mxu3  ;;  %v2347_v40 = vor.u32 %v2913_v30, %v2346_v29  ;;  %v2323_v30 = vor.u32 %v2907_v13, %v2322_v12  ;;  %v2747_v12 = vor.u32 %v3013_v10, %v2746_v9  ;;  %v2546_v13 = vld [vmem:[#allocation11 + $0x250] sm:$0xf]  ;;  %v2971_v9 = vld [vmem:[#allocation11 + $0x294] sm:$0xf0] }
  0xf0   :  { %v2274_v41 = vld [vmem:[#allocation11 + $0x30] sm:$0xf]  ;;  %1582 = vmatpush.bf16.msra.mxu2 %v2403_v59 }
  0xf1   :  { %v2275_v53 = vor.u32 %v2895_v42, %v2274_v41  ;;  %1568 = vmatpush.bf16.msra.mxu1 %v2347_v40  ;;  %v2889_v40 = vld [vmem:[#allocation11 + $0x4] sm:$0xf0]  ;;  %v2314_v41 = vld [vmem:[#allocation11 + $0x80] sm:$0xf]  ;;  %v2690_v59 = vld [vmem:[#allocation11 + $0x370] sm:$0xf] }
  0xf2   :  { %1595 = vmatpush.bf16.msra.mxu3 %v2467_v0  ;;  %v2315_v49 = vor.u32 %v2905_v43, %v2314_v41  ;;  %v2554_v0 = vld [vmem:[#allocation11 + $0x260] sm:$0xf]  ;;  %v2642_v10 = vld [vmem:[#allocation11 + $0x310] sm:$0xf] }
  0xf3   :  { %1556 = vmatpush.bf16.msra.mxu0 %v2275_v53  ;;  %v2937_v53 = vld [vmem:[#allocation11 + $0x184] sm:$0xf0]  ;;  %v2730_v41 = vld [vmem:[#allocation11 + $0x3c0] sm:$0xf] }
  0xf4   :  { %1583 = vmatpush.bf16.msra.mxu2 %v2395_v11  ;;  %v2443_v55 = vor.u32 %v2937_v53, %v2442_v52  ;;  %v2975_v52 = vld [vmem:[#allocation11 + $0x2b4] sm:$0xf0]  ;;  %v2658_v53 = vld [vmem:[#allocation11 + $0x330] sm:$0xf] }
  0xf6   :  { %1596 = vmatpush.bf16.msra.mxu3 %v2459_v18 }
  0xf7   :  { %1557 = vmatpush.bf16.msra.mxu0 %v2267_v3  ;;  %v2555_v3 = vor.u32 %v2965_v1, %v2554_v0  ;;  %v2989_v0 = vld [vmem:[#allocation11 + $0x324] sm:$0xf0] }
  0xf8   :  { %1584 = vmatpush.bf16.msra.mxu2 %v2387_v31  ;;  %v2538_v31 = vld [vmem:[#allocation11 + $0x240] sm:$0xf] }
  0xfa   :  { %1597 = vmatpush.bf16.msra.mxu3 %v2451_v35 }
  0xfb   :  { %1558 = vmatpush.bf16.msra.mxu0 %v2259_v22  ;;  %v2995_v22 = vld [vmem:[#allocation11 + $0x354] sm:$0xf0] }
  0xfc   :  { %v2675_v25 = vor.u32 %v2995_v22, %v2674_v20  ;;  %v2953_v20 = vld [vmem:[#allocation11 + $0x204] sm:$0xf0]  ;;  %v2570_v22 = vld [vmem:[#allocation11 + $0x280] sm:$0xf] }
  0xfe   :  { %1598 = vmatpush.bf16.msra.mxu3 %v2443_v55 }
 0x160   :  { %v656_v34 = vpop.xlane.xlu0 %655 }
 0x161   :  { %v3396_v39 = vmul.f32 %v3393_v26, %v656_v34 }
 0x163   :  { %v3400_v46 = vsub.f32 %v3368_v14, %v3396_v39  ;;  %v3404_v47 = vsub.f32 %v3370_v15, %v3396_v39  ;;  %v3408_v48 = vsub.f32 %v3374_v51, %v3396_v39  ;;  %v3412_v56 = vsub.f32 %v3377_v21, %v3396_v39 }
 0x164   :  { %v2339_v51 = vor.u32 %v2911_v45, %v2338_v44  ;;  %v3420_v62 = vsub.f32 %v3379_v24, %v3396_v39  ;;  %v3426_v6 = vsub.f32 %v3383_v28, %v3396_v39  ;;  %v3432_v16 = vsub.f32 %v3386_v33, %v3396_v39  ;;  %v2378_v44 = vld [vmem:[#allocation11 + $0x100] sm:$0xf]  ;;  %v2921_v45 = vld [vmem:[#allocation11 + $0x104] sm:$0xf0] }
 0x165   :  { %v673_v14 = vmul.f32 %v3400_v46, %v3400_v46  ;;  %v674_v15 = vmul.f32 %v3404_v47, %v3404_v47  ;;  %v675_v21 = vmul.f32 %v3408_v48, %v3408_v48  ;;  %v676_v24 = vmul.f32 %v3412_v56, %v3412_v56 }
 0x166   :  { %1569 = vmatpush.bf16.msra.mxu1 %v2339_v51  ;;  %v677_v28 = vmul.f32 %v3420_v62, %v3420_v62  ;;  %v3438_v27 = vsub.f32 %v3388_v36, %v3396_v39  ;;  %v678_v33 = vmul.f32 %v3426_v6, %v3426_v6  ;;  %v679_v32 = vmul.f32 %v3432_v16, %v3432_v16  ;;  %v2250_v39 = vld [vmem:[#allocation11] sm:$0xf]  ;;  %v2983_v51 = vld [vmem:[#allocation11 + $0x2f4] sm:$0xf0] }
 0x167   :  { %v681_v63 = vadd.f32 %v674_v15, %v673_v14  ;;  %v2251_v42 = vor.u32 %v2889_v40, %v2250_v39  ;;  %v2379_v50 = vor.u32 %v2921_v45, %v2378_v44  ;;  %v2967_v14 = vld [vmem:[#allocation11 + $0x274] sm:$0xf0]  ;;  %v2626_v15 = vld [vmem:[#allocation11 + $0x2f0] sm:$0xf] }
 0x168   :  { %v680_v37 = vmul.f32 %v3438_v27, %v3438_v27  ;;  %v2563_v57 = vor.u32 %v2967_v14, %v2562_v54  ;;  %v2627_v58 = vor.u32 %v2983_v51, %v2626_v15  ;;  %v2530_v44 = vld [vmem:[#allocation11 + $0x230] sm:$0xf]  ;;  %v2959_v45 = vld [vmem:[#allocation11 + $0x234] sm:$0xf0] }
 0x169   :  { %v682_v7 = vadd.f32 %v681_v63, %v675_v21  ;;  %1559 = vmatpush.bf16.msra.mxu0 %v2251_v42  ;;  %1585 = vmatpush.bf16.msra.mxu2 %v2379_v50  ;;  %v2691_v21 = vor.u32 %v2999_v60, %v2690_v59  ;;  %v3015_v63 = vld [vmem:[#allocation11 + $0x3f4] sm:$0xf0]  ;;  %v3009_v42 = vld [vmem:[#allocation11 + $0x3c4] sm:$0xf0]  ;;  %v2531_v50 = vor.u32 %v2959_v45, %v2530_v44  ;;  %v2722_v15 = vld [vmem:[#allocation11 + $0x3b0] sm:$0xf] }
 0x16a   :  { %1570 = vmatpush.bf16.msra.mxu1 %v2331_v8  ;;  %v2755_v2 = vor.u32 %v3015_v63, %v2754_v61  ;;  %v2997_v8 = vld [vmem:[#allocation11 + $0x364] sm:$0xf0]  ;;  %v2731_v43 = vor.u32 %v3009_v42, %v2730_v41  ;;  %v2991_v54 = vld [vmem:[#allocation11 + $0x334] sm:$0xf0]  ;;  %v2586_v60 = vld [vmem:[#allocation11 + $0x2a0] sm:$0xf] }
 0x16b   :  { %v683_v17 = vadd.f32 %v682_v7, %v676_v24  ;;  %v2682_v24 = vld [vmem:[#allocation11 + $0x360] sm:$0xf]  ;;  %v2619_v7 = vor.u32 %v2981_v5, %v2618_v4  ;;  %v2659_v14 = vor.u32 %v2991_v54, %v2658_v53  ;;  %v3007_v51 = vld [vmem:[#allocation11 + $0x3b4] sm:$0xf0]  ;;  %v2957_v59 = vld [vmem:[#allocation11 + $0x224] sm:$0xf0] }
 0x16c   :  { %1643 = vmatpush.bf16.msrb.mxu3 %v2755_v2  ;;  %v2683_v11 = vor.u32 %v2997_v8, %v2682_v24  ;;  %v2650_v63 = vld [vmem:[#allocation11 + $0x320] sm:$0xf]  ;;  %v3005_v4 = vld [vmem:[#allocation11 + $0x3a4] sm:$0xf0]  ;;  %v2514_v5 = vld [vmem:[#allocation11 + $0x210] sm:$0xf] }
 0x16d   :  { %v684_v29 = vadd.f32 %v683_v17, %v677_v28  ;;  %1604 = vmatpush.bf16.msrb.mxu0 %v2563_v57  ;;  %1630 = vmatpush.bf16.msrb.mxu2 %v2691_v21  ;;  %v2963_v28 = vld [vmem:[#allocation11 + $0x254] sm:$0xf0]  ;;  %v2610_v17 = vld [vmem:[#allocation11 + $0x2d0] sm:$0xf]  ;;  %v2723_v57 = vor.u32 %v3007_v51, %v2722_v15  ;;  %v2973_v21 = vld [vmem:[#allocation11 + $0x2a4] sm:$0xf0]  ;;  %v2651_v2 = vor.u32 %v2989_v0, %v2650_v63 }
 0x16e   :  { %1571 = vmatpush.bf16.msra.mxu1 %v2323_v30  ;;  %v2547_v18 = vor.u32 %v2963_v28, %v2546_v13  ;;  %v2611_v23 = vor.u32 %v2979_v19, %v2610_v17  ;;  %v2587_v1 = vor.u32 %v2973_v21, %v2586_v60  ;;  %v2578_v8 = vld [vmem:[#allocation11 + $0x290] sm:$0xf]  ;;  %v3003_v17 = vld [vmem:[#allocation11 + $0x394] sm:$0xf0]  ;;  %v2902_v21 = vld [vmem:[#allocation11 + $0x74] sm:$0xf] }
 0x16f   :  { %v685_v34 = vadd.f32 %v684_v29, %v678_v33  ;;  %v2738_v33 = vld [vmem:[#allocation11 + $0x3d0] sm:$0xf]  ;;  %v3011_v29 = vld [vmem:[#allocation11 + $0x3d4] sm:$0xf0]  ;;  %v2579_v28 = vor.u32 %v2971_v9, %v2578_v8  ;;  %v2308_v63 = vld [vmem:[#allocation11 + $0x78] sm:$0xf0] }
 0x170   :  { %1644 = vmatpush.bf16.msrb.mxu3 %v2747_v12  ;;  %v2739_v30 = vor.u32 %v3011_v29, %v2738_v33  ;;  %v2706_v12 = vld [vmem:[#allocation11 + $0x390] sm:$0xf]  ;;  %v2634_v33 = vld [vmem:[#allocation11 + $0x300] sm:$0xf]  ;;  %v2985_v29 = vld [vmem:[#allocation11 + $0x304] sm:$0xf0] }
 0x171   :  { %v686_v36 = vadd.f32 %v685_v34, %v679_v32  ;;  %1605 = vmatpush.bf16.msrb.mxu0 %v2555_v3  ;;  %1631 = vmatpush.bf16.msrb.mxu2 %v2683_v11  ;;  %v2961_v32 = vld [vmem:[#allocation11 + $0x244] sm:$0xf0]  ;;  %v2602_v34 = vld [vmem:[#allocation11 + $0x2c0] sm:$0xf]  ;;  %v2987_v11 = vld [vmem:[#allocation11 + $0x314] sm:$0xf0] }
 0x172   :  { %1572 = vmatpush.bf16.msra.mxu1 %v2315_v49  ;;  %v2539_v35 = vor.u32 %v2961_v32, %v2538_v31  ;;  %v2594_v49 = vld [vmem:[#allocation11 + $0x2b0] sm:$0xf]  ;;  %v2714_v3 = vld [vmem:[#allocation11 + $0x3a0] sm:$0xf]  ;;  %v2643_v19 = vor.u32 %v2987_v11, %v2642_v10  ;;  %v3001_v31 = vld [vmem:[#allocation11 + $0x384] sm:$0xf0] }
 0x173   :  { %v687_v38 = vadd.f32 %v686_v36, %v680_v37  ;;  %v2977_v37 = vld [vmem:[#allocation11 + $0x2c4] sm:$0xf0]  ;;  %v2666_v36 = vld [vmem:[#allocation11 + $0x340] sm:$0xf]  ;;  %v2595_v55 = vor.u32 %v2975_v52, %v2594_v49  ;;  %v2715_v24 = vor.u32 %v3005_v4, %v2714_v3  ;;  %v3447_v44 = vld [vmem:[#allocation8] sm:$0xff] }
 0x174   :  { %v2603_v39 = vor.u32 %v2977_v37, %v2602_v34  ;;  %1645 = vmatpush.bf16.msrb.mxu3 %v2739_v30  ;;  %v2698_v30 = vld [vmem:[#allocation11 + $0x380] sm:$0xf]  ;;  %v2635_v37 = vor.u32 %v2985_v29, %v2634_v33  ;;  %v3449_v49 = vld [vmem:[#allocation10] sm:$0xff]  ;;  %v713_v53 = vperm.slane %v3447_v44, 1  ;;  %v714_v54 = vperm.slane %v3447_v44, 2 }
 0x175   :  { %688 = vadd.xlane.f32.xlu0 %v687_v38  ;;  %1606 = vmatpush.bf16.msrb.mxu0 %v2547_v18  ;;  %v2993_v38 = vld [vmem:[#allocation11 + $0x344] sm:$0xf0]  ;;  %v2506_v18 = vld [vmem:[#allocation11 + $0x200] sm:$0xf]  ;;  %v738_v52 = vperm.slane %v3449_v49, 0  ;;  %v739_v15 = vperm.slane %v3449_v49, 1 }
 0x176   :  { %1617 = vmatpush.bf16.msrb.mxu1 %v2627_v58  ;;  %1632 = vmatpush.bf16.msrb.mxu2 %v2675_v25  ;;  %v2667_v40 = vor.u32 %v2993_v38, %v2666_v36  ;;  %v2522_v58 = vld [vmem:[#allocation11 + $0x220] sm:$0xf]  ;;  %v2707_v25 = vor.u32 %v3003_v17, %v2706_v12  ;;  %v2507_v32 = vor.u32 %v2953_v20, %v2506_v18  ;;  %v740_v51 = vperm.slane %v3449_v49, 2  ;;  %v2918_v0 = vld [vmem:[#allocation11 + $0xf4] sm:$0xf] }
 0x177   :  { %v2523_v61 = vor.u32 %v2957_v59, %v2522_v58  ;;  %v2699_v38 = vor.u32 %v3001_v31, %v2698_v30  ;;  %v2950_v8 = vld [vmem:[#allocation11 + $0x1f4] sm:$0xf]  ;;  %v2500_v9 = vld [vmem:[#allocation11 + $0x1f8] sm:$0xf0]  ;;  %v2311_v12 = vor.u32 %v2902_v21, %v2308_v63  ;;  %v2900_v20 = vld [vmem:[#allocation11 + $0x64] sm:$0xf] }
 0x178   :  { %1646 = vmatpush.bf16.msrb.mxu3 %v2731_v43  ;;  %v716_v33 = vperm.slane %v3447_v44, 4  ;;  %v717_v30 = vperm.slane %v3447_v44, 5  ;;  %v2484_v21 = vld [vmem:[#allocation11 + $0x1d8] sm:$0xf0] }
 0x179   :  { %1607 = vmatpush.bf16.msrb.mxu0 %v2539_v35 }
 0x17a   :  { %1618 = vmatpush.bf16.msrb.mxu1 %v2619_v7  ;;  %1633 = vmatpush.bf16.msrb.mxu2 %v2667_v40  ;;  %v2955_v7 = vld [vmem:[#allocation11 + $0x214] sm:$0xf0] }
 0x17b   :  { %v2515_v13 = vor.u32 %v2955_v7, %v2514_v5  ;;  %v2436_v7 = vld [vmem:[#allocation11 + $0x178] sm:$0xf0] }
 0x17c   :  { %1647 = vmatpush.bf16.msrb.mxu3 %v2723_v57  ;;  %v741_v57 = vperm.slane %v3449_v49, 3 }
 0x17d   :  { %1608 = vmatpush.bf16.msrb.mxu0 %v2531_v50 }
 0x17e   :  { %1619 = vmatpush.bf16.msrb.mxu1 %v2611_v23  ;;  %1634 = vmatpush.bf16.msrb.mxu2 %v2659_v14  ;;  %v2969_v23 = vld [vmem:[#allocation11 + $0x284] sm:$0xf0] }
 0x17f   :  { %v2571_v34 = vor.u32 %v2969_v23, %v2570_v22  ;;  %v2300_v22 = vld [vmem:[#allocation11 + $0x68] sm:$0xf0]  ;;  %v2916_v23 = vld [vmem:[#allocation11 + $0xe4] sm:$0xf] }
 0x180   :  { %1648 = vmatpush.bf16.msrb.mxu3 %v2715_v24 }
 0x181   :  { %1609 = vmatpush.bf16.msrb.mxu0 %v2523_v61 }
 0x182   :  { %1620 = vmatpush.bf16.msrb.mxu1 %v2603_v39  ;;  %1635 = vmatpush.bf16.msrb.mxu2 %v2651_v2  ;;  %v2934_v2 = vld [vmem:[#allocation11 + $0x174] sm:$0xf] }
 0x184   :  { %1649 = vmatpush.bf16.msrb.mxu3 %v2707_v25 }
 0x185   :  { %1610 = vmatpush.bf16.msrb.mxu0 %v2515_v13  ;;  %v2439_v13 = vor.u32 %v2934_v2, %v2436_v7  ;;  %v2896_v2 = vld [vmem:[#allocation11 + $0x44] sm:$0xf] }
 0x186   :  { %1621 = vmatpush.bf16.msrb.mxu1 %v2595_v55  ;;  %1636 = vmatpush.bf16.msrb.mxu2 %v2643_v19  ;;  %v715_v55 = vperm.slane %v3447_v44, 3  ;;  %v2912_v7 = vld [vmem:[#allocation11 + $0xc4] sm:$0xf] }
 0x188   :  { %1650 = vmatpush.bf16.msrb.mxu3 %v2699_v38  ;;  %v2428_v38 = vld [vmem:[#allocation11 + $0x168] sm:$0xf0] }
 0x189   :  { %1611 = vmatpush.bf16.msrb.mxu0 %v2507_v32 }
 0x18a   :  { %1622 = vmatpush.bf16.msrb.mxu1 %v2587_v1  ;;  %1637 = vmatpush.bf16.msrb.mxu2 %v2635_v37  ;;  %v2372_v1 = vld [vmem:[#allocation11 + $0xf8] sm:$0xf0]  ;;  %v2364_v37 = vld [vmem:[#allocation11 + $0xe8] sm:$0xf0] }
 0x18e   :  { %1623 = vmatpush.bf16.msrb.mxu1 %v2579_v28 }
 0x192   :  { %1624 = vmatpush.bf16.msrb.mxu1 %v2571_v34 }
 0x1e8   :  { %v689_v35 = vpop.xlane.xlu0 %688 }
 0x1e9   :  { %v690_v36 = vmul.f32 %v689_v35, %v3393_v26  ;;  %v712_v26 = vperm.slane %v3447_v44, 0 }
 0x1eb   :  { %v691_v39 = vadd.f32 1e-05, %v690_v36  ;;  %v2932_v36 = vld [vmem:[#allocation11 + $0x164] sm:$0xf] }
 0x1ed   :  { %3051 = vrsqrt.f32 %v691_v39  ;;  %vm698_vm2 = vweird.f32 %v691_v39 }
 0x1f3   :  { %v3052_v40 = vpop.eup %3051 }
 0x1f4   :  { %v693_v41 = vmul.f32 %v3052_v40, %v691_v39  ;;  %vm699_vm1 = vweird.f32 %v3052_v40  ;;  %v2948_v39 = vld [vmem:[#allocation11 + $0x1e4] sm:$0xf] }
 0x1f5   :  { %vm700_vm3 = vmor %vm698_vm2, %vm699_vm1 }
 0x1f6   :  { %v694_v42 = vmul.f32 %v3052_v40, %v693_v41  ;;  %v718_v41 = vperm.slane %v3447_v44, 6 }
 0x1f8   :  { %v695_v43 = vmul.f32 0.5, %v694_v42  ;;  %v719_v42 = vperm.slane %v3447_v44, 7  ;;  %v2292_v44 = vld [vmem:[#allocation11 + $0x58] sm:$0xf0] }
 0x1fa   :  { %v696_v45 = vsub.f32 1.5, %v695_v43  ;;  %v742_v43 = vperm.slane %v3449_v49, 4 }
 0x1fc   :  { %v697_v50 = vmul.f32 %v3052_v40, %v696_v45  ;;  %v2303_v45 = vor.u32 %v2900_v20, %v2300_v22 }
 0x1fe   :  { %v701_v14 = vsel %vm700_vm3, %v3052_v40, %v697_v50  ;;  %v2492_v40 = vld [vmem:[#allocation11 + $0x1e8] sm:$0xf0]  ;;  %v2367_v50 = vor.u32 %v2916_v23, %v2364_v37  ;;  %v2468_v37 = vld [vmem:[#allocation11 + $0x1b8] sm:$0xf0] }
 0x1ff   :  { %v702_v58 = vmul.f32 %v701_v14, %v3400_v46  ;;  %v703_v59 = vmul.f32 %v701_v14, %v3404_v47  ;;  %v704_v60 = vmul.f32 %v701_v14, %v3408_v48  ;;  %v705_v61 = vmul.f32 %v701_v14, %v3412_v56 }
 0x200   :  { %v2375_v48 = vor.u32 %v2918_v0, %v2372_v1  ;;  %v2503_v56 = vor.u32 %v2950_v8, %v2500_v9  ;;  %v706_v25 = vmul.f32 %v701_v14, %v3420_v62  ;;  %v707_v29 = vmul.f32 %v701_v14, %v3426_v6  ;;  %v2348_v8 = vld [vmem:[#allocation11 + $0xc8] sm:$0xf0]  ;;  %v2928_v9 = vld [vmem:[#allocation11 + $0x144] sm:$0xf] }
 0x201   :  { %v728_v3 = vmul.f32 %v712_v26, %v702_v58  ;;  %v729_v4 = vmul.f32 %v713_v53, %v703_v59  ;;  %v730_v5 = vmul.f32 %v714_v54, %v704_v60  ;;  %v731_v24 = vmul.f32 %v715_v55, %v705_v61  ;;  %v2914_v53 = vld [vmem:[#allocation11 + $0xd4] sm:$0xf]  ;;  %v2356_v54 = vld [vmem:[#allocation11 + $0xd8] sm:$0xf0] }
 0x202   :  { %v708_v62 = vmul.f32 %v701_v14, %v3432_v16  ;;  %v709_v6 = vmul.f32 %v701_v14, %v3438_v27  ;;  %v2431_v26 = vor.u32 %v2932_v36, %v2428_v38  ;;  %v2898_v16 = vld [vmem:[#allocation11 + $0x54] sm:$0xf]  ;;  %v2495_v27 = vor.u32 %v2948_v39, %v2492_v40 }
 0x203   :  { %v754_v10 = vadd.f32 %v738_v52, %v728_v3  ;;  %v755_v46 = vadd.f32 %v739_v15, %v729_v4  ;;  %v756_v11 = vadd.f32 %v740_v51, %v730_v5  ;;  %v757_v47 = vadd.f32 %v741_v57, %v731_v24  ;;  %v2930_v15 = vld [vmem:[#allocation11 + $0x154] sm:$0xf]  ;;  %v2420_v51 = vld [vmem:[#allocation11 + $0x158] sm:$0xf0]  ;;  %v2284_v3 = vld [vmem:[#allocation11 + $0x48] sm:$0xf0] }
 0x204   :  { %v743_v52 = vperm.slane %v3449_v49, 5  ;;  %v732_v55 = vmul.f32 %v716_v33, %v706_v25  ;;  %v733_v14 = vmul.f32 %v717_v30, %v707_v29  ;;  %v734_v57 = vmul.f32 %v718_v41, %v708_v62  ;;  %v2946_v61 = vld [vmem:[#allocation11 + $0x1d4] sm:$0xf]  ;;  %v2404_v29 = vld [vmem:[#allocation11 + $0x138] sm:$0xf0] }
 0x205   :  { %v762_v28 = vmax.f32 %v754_v10, 0.0  ;;  %v763_v17 = vmax.f32 %v755_v46, 0.0  ;;  %v764_v18 = vmax.f32 %v756_v11, 0.0  ;;  %v765_v19 = vmax.f32 %v757_v47, 0.0  ;;  %v2944_v11 = vld [vmem:[#allocation11 + $0x1c4] sm:$0xf] }
 0x206   :  { %v744_v58 = vperm.slane %v3449_v49, 6  ;;  %v735_v59 = vmul.f32 %v719_v42, %v709_v6  ;;  %v745_v60 = vperm.slane %v3449_v49, 7  ;;  %v2295_v63 = vor.u32 %v2898_v16, %v2292_v44  ;;  %v2412_v49 = vld [vmem:[#allocation11 + $0x148] sm:$0xf0]  ;;  %v2926_v33 = vld [vmem:[#allocation11 + $0x134] sm:$0xf] }
 0x207   :  { %v3467_v31 = vpack.c.bf16 %v762_v28, %v762_v28  ;;  %v3469_v32 = vpack.c.bf16 %v763_v17, %v763_v17  ;;  %v3471_v34 = vpack.c.bf16 %v764_v18, %v764_v18  ;;  %v3473_v35 = vpack.c.bf16 %v765_v19, %v765_v19  ;;  %v2476_v47 = vld [vmem:[#allocation11 + $0x1c8] sm:$0xf0]  ;;  %v2910_v18 = vld [vmem:[#allocation11 + $0xb4] sm:$0xf]  ;;  %v2340_v19 = vld [vmem:[#allocation11 + $0xb8] sm:$0xf0] }
 0x208   :  { %v2359_v0 = vor.u32 %v2914_v53, %v2356_v54  ;;  %v2423_v1 = vor.u32 %v2930_v15, %v2420_v51  ;;  %v758_v4 = vadd.f32 %v742_v43, %v732_v55  ;;  %v759_v5 = vadd.f32 %v743_v52, %v733_v14  ;;  %v2942_v30 = vld [vmem:[#allocation11 + $0x1b4] sm:$0xf]  ;;  %v2892_v41 = vld [vmem:[#allocation11 + $0x24] sm:$0xf]  ;;  %v2268_v6 = vld [vmem:[#allocation11 + $0x28] sm:$0xf0] }
 0x209   :  { %1560 = vmatmul.bf16.vlgmr.msra.gmra.mxu0 %v3467_v31  ;;  %1573 = vmatmul.bf16.vlgmr.msra.gmra.mxu1 %v3469_v32  ;;  %v2487_v24 = vor.u32 %v2946_v61, %v2484_v21  ;;  %v760_v10 = vadd.f32 %v744_v58, %v734_v57  ;;  %v761_v46 = vadd.f32 %v745_v60, %v735_v59  ;;  %v2924_v16 = vld [vmem:[#allocation11 + $0x124] sm:$0xf]  ;;  %v2396_v52 = vld [vmem:[#allocation11 + $0x128] sm:$0xf0]  ;;  %v2890_v55 = vld [vmem:[#allocation11 + $0x14] sm:$0xf] }
 0x20a   :  { %1586 = vmatmul.bf16.vlgmr.msra.gmra.mxu2 %v3471_v34  ;;  %1599 = vmatmul.bf16.vlgmr.msra.gmra.mxu3 %v3473_v35  ;;  %v766_v28 = vmax.f32 %v758_v4, 0.0  ;;  %v767_v17 = vmax.f32 %v759_v5, 0.0  ;;  %v2415_v20 = vor.u32 %v2928_v9, %v2412_v49  ;;  %v2479_v22 = vor.u32 %v2944_v11, %v2476_v47  ;;  %v2460_v44 = vld [vmem:[#allocation11 + $0x1a8] sm:$0xf0]  ;;  %v2260_v14 = vld [vmem:[#allocation11 + $0x18] sm:$0xf0] }
 0x20b   :  { %1656 = vmatpush.bf16.msra.mxu0 %v2311_v12  ;;  %1669 = vmatpush.bf16.msra.mxu1 %v2375_v48  ;;  %v2894_v12 = vld [vmem:[#allocation11 + $0x34] sm:$0xf]  ;;  %v2276_v48 = vld [vmem:[#allocation11 + $0x38] sm:$0xf0]  ;;  %v768_v23 = vmax.f32 %v760_v10, 0.0  ;;  %v769_v25 = vmax.f32 %v761_v46, 0.0  ;;  %v2343_v38 = vor.u32 %v2910_v18, %v2340_v19  ;;  %v2407_v62 = vor.u32 %v2926_v33, %v2404_v29 }
 0x20c   :  { %1682 = vmatpush.bf16.msra.mxu2 %v2439_v13  ;;  %1695 = vmatpush.bf16.msra.mxu3 %v2503_v56  ;;  %v2287_v13 = vor.u32 %v2896_v2, %v2284_v3  ;;  %v2351_v56 = vor.u32 %v2912_v7, %v2348_v8  ;;  %v2279_v36 = vor.u32 %v2894_v12, %v2276_v48  ;;  %v2906_v57 = vld [vmem:[#allocation11 + $0x94] sm:$0xf]  ;;  %v2324_v58 = vld [vmem:[#allocation11 + $0x98] sm:$0xf0]  ;;  %v2252_v2 = vld [vmem:[#allocation11 + $0x8] sm:$0xf0] }
 0x20d   :  { %v3487_v39 = vpack.c.bf16 %v766_v28, %v766_v28  ;;  %v3489_v40 = vpack.c.bf16 %v767_v17, %v767_v17  ;;  %v3491_v42 = vpack.c.bf16 %v768_v23, %v768_v23  ;;  %v3493_v43 = vpack.c.bf16 %v769_v25, %v769_v25  ;;  %v2922_v59 = vld [vmem:[#allocation11 + $0x114] sm:$0xf]  ;;  %v2388_v60 = vld [vmem:[#allocation11 + $0x118] sm:$0xf0]  ;;  %v2904_v3 = vld [vmem:[#allocation11 + $0x84] sm:$0xf] }
 0x20e   :  { %v2271_v53 = vor.u32 %v2892_v41, %v2268_v6  ;;  %v2399_v15 = vor.u32 %v2924_v16, %v2396_v52  ;;  %v2938_v61 = vld [vmem:[#allocation11 + $0x194] sm:$0xf]  ;;  %v2452_v21 = vld [vmem:[#allocation11 + $0x198] sm:$0xf0]  ;;  %v2316_v4 = vld [vmem:[#allocation11 + $0x88] sm:$0xf0]  ;;  %v2391_v5 = vor.u32 %v2922_v59, %v2388_v60 }
 0x20f   :  { %1657 = vmatpush.bf16.msra.mxu0 %v2303_v45  ;;  %1670 = vmatpush.bf16.msra.mxu1 %v2367_v50  ;;  %v2471_v45 = vor.u32 %v2942_v30, %v2468_v37  ;;  %v2908_v50 = vld [vmem:[#allocation11 + $0xa4] sm:$0xf]  ;;  %v2380_v8 = vld [vmem:[#allocation11 + $0x108] sm:$0xf0]  ;;  %v2966_v46 = vld [vmem:[#allocation11 + $0x274] sm:$0xf] }
 0x210   :  { %1683 = vmatpush.bf16.msra.mxu2 %v2431_v26  ;;  %1696 = vmatpush.bf16.msra.mxu3 %v2495_v27  ;;  %v2332_v26 = vld [vmem:[#allocation11 + $0xa8] sm:$0xf0]  ;;  %v2940_v27 = vld [vmem:[#allocation11 + $0x1a4] sm:$0xf]  ;;  %v2564_v49 = vld [vmem:[#allocation11 + $0x278] sm:$0xf0] }
 0x211   :  { %v2335_v54 = vor.u32 %v2908_v50, %v2332_v26  ;;  %v2463_v51 = vor.u32 %v2940_v27, %v2460_v44  ;;  %v2920_v7 = vld [vmem:[#allocation11 + $0x104] sm:$0xf]  ;;  %v2444_v10 = vld [vmem:[#allocation11 + $0x188] sm:$0xf0]  ;;  %v2982_v11 = vld [vmem:[#allocation11 + $0x2f4] sm:$0xf] }
 0x212   :  { %v2936_v9 = vld [vmem:[#allocation11 + $0x184] sm:$0xf]  ;;  %v2628_v47 = vld [vmem:[#allocation11 + $0x2f8] sm:$0xf0]  ;;  %v2998_v12 = vld [vmem:[#allocation11 + $0x374] sm:$0xf]  ;;  %v2383_v18 = vor.u32 %v2920_v7, %v2380_v8 }
 0x213   :  { %1658 = vmatpush.bf16.msra.mxu0 %v2295_v63  ;;  %1671 = vmatpush.bf16.msra.mxu1 %v2359_v0  ;;  %v2888_v63 = vld [vmem:[#allocation11 + $0x4] sm:$0xf]  ;;  %v2263_v0 = vor.u32 %v2890_v55, %v2260_v14  ;;  %v3014_v28 = vld [vmem:[#allocation11 + $0x3f4] sm:$0xf]  ;;  %v2756_v17 = vld [vmem:[#allocation11 + $0x3f8] sm:$0xf0]  ;;  %v2447_v19 = vor.u32 %v2936_v9, %v2444_v10 }
 0x214   :  { %1684 = vmatpush.bf16.msra.mxu2 %v2423_v1  ;;  %1697 = vmatpush.bf16.msra.mxu3 %v2487_v24  ;;  %v2327_v1 = vor.u32 %v2906_v57, %v2324_v58  ;;  %v2455_v24 = vor.u32 %v2938_v61, %v2452_v21  ;;  %v2255_v48 = vor.u32 %v2888_v63, %v2252_v2  ;;  %v2964_v23 = vld [vmem:[#allocation11 + $0x264] sm:$0xf]  ;;  %v2556_v25 = vld [vmem:[#allocation11 + $0x268] sm:$0xf0]  ;;  %v2962_v50 = vld [vmem:[#allocation11 + $0x254] sm:$0xf] }
 0x215   :  { %v2759_v29 = vor.u32 %v3014_v28, %v2756_v17  ;;  %v2980_v30 = vld [vmem:[#allocation11 + $0x2e4] sm:$0xf]  ;;  %v2620_v37 = vld [vmem:[#allocation11 + $0x2e8] sm:$0xf0]  ;;  %v2559_v6 = vor.u32 %v2964_v23, %v2556_v25  ;;  %v2548_v26 = vld [vmem:[#allocation11 + $0x258] sm:$0xf0] }
 0x216   :  { %v2748_v41 = vld [vmem:[#allocation11 + $0x3e8] sm:$0xf0]  ;;  %v2978_v27 = vld [vmem:[#allocation11 + $0x2d4] sm:$0xf]  ;;  %v2612_v44 = vld [vmem:[#allocation11 + $0x2d8] sm:$0xf0] }
 0x217   :  { %1659 = vmatpush.bf16.msra.mxu0 %v2287_v13  ;;  %1672 = vmatpush.bf16.msra.mxu1 %v2351_v56  ;;  %v2319_v13 = vor.u32 %v2904_v3, %v2316_v4  ;;  %v2692_v56 = vld [vmem:[#allocation11 + $0x378] sm:$0xf0]  ;;  %v3010_v55 = vld [vmem:[#allocation11 + $0x3d4] sm:$0xf]  ;;  %v2960_v57 = vld [vmem:[#allocation11 + $0x244] sm:$0xf] }
 0x218   :  { %1685 = vmatpush.bf16.msra.mxu2 %v2415_v20  ;;  %1698 = vmatpush.bf16.msra.mxu3 %v2479_v22  ;;  %v2567_v20 = vor.u32 %v2966_v46, %v2564_v49  ;;  %v2631_v22 = vor.u32 %v2982_v11, %v2628_v47  ;;  %v2695_v33 = vor.u32 %v2998_v12, %v2692_v56  ;;  %v2740_v14 = vld [vmem:[#allocation11 + $0x3d8] sm:$0xf0]  ;;  %v2540_v58 = vld [vmem:[#allocation11 + $0x248] sm:$0xf0]  ;;  %v3008_v63 = vld [vmem:[#allocation11 + $0x3c4] sm:$0xf] }
 0x219   :  { %1612 = vmatmul.bf16.vlgmr.msrb.gmra.mxu0 %v3487_v39  ;;  %1625 = vmatmul.bf16.vlgmr.msrb.gmra.mxu1 %v3489_v40  ;;  %v2743_v60 = vor.u32 %v3010_v55, %v2740_v14  ;;  %v2604_v61 = vld [vmem:[#allocation11 + $0x2c8] sm:$0xf0]  ;;  %v2532_v2 = vld [vmem:[#allocation11 + $0x238] sm:$0xf0]  ;;  %v2990_v7 = vld [vmem:[#allocation11 + $0x334] sm:$0xf] }
 0x21a   :  { %1638 = vmatmul.bf16.vlgmr.msrb.gmra.mxu2 %v3491_v42  ;;  %1651 = vmatmul.bf16.vlgmr.msrb.gmra.mxu3 %v3493_v43  ;;  %v2668_v21 = vld [vmem:[#allocation11 + $0x348] sm:$0xf0]  ;;  %v2660_v8 = vld [vmem:[#allocation11 + $0x338] sm:$0xf0]  ;;  %v3006_v9 = vld [vmem:[#allocation11 + $0x3b4] sm:$0xf] }
 0x21b   :  { %1660 = vmatpush.bf16.msra.mxu0 %v2279_v36  ;;  %1673 = vmatpush.bf16.msra.mxu1 %v2343_v38  ;;  %v2996_v36 = vld [vmem:[#allocation11 + $0x364] sm:$0xf]  ;;  %v2684_v38 = vld [vmem:[#allocation11 + $0x368] sm:$0xf0]  ;;  %v2724_v10 = vld [vmem:[#allocation11 + $0x3b8] sm:$0xf0]  ;;  %v2663_v12 = vor.u32 %v2990_v7, %v2660_v8 }
 0x21c   :  { %1686 = vmatpush.bf16.msra.mxu2 %v2407_v62  ;;  %1699 = vmatpush.bf16.msra.mxu3 %v2471_v45  ;;  %v3012_v62 = vld [vmem:[#allocation11 + $0x3e4] sm:$0xf]  ;;  %v2623_v45 = vor.u32 %v2980_v30, %v2620_v37  ;;  %v2687_v16 = vor.u32 %v2996_v36, %v2684_v38  ;;  %v2524_v47 = vld [vmem:[#allocation11 + $0x228] sm:$0xf0]  ;;  %v2954_v23 = vld [vmem:[#allocation11 + $0x214] sm:$0xf] }
 0x21d   :  { %v2751_v52 = vor.u32 %v3012_v62, %v2748_v41  ;;  %v2956_v11 = vld [vmem:[#allocation11 + $0x224] sm:$0xf]  ;;  %v2588_v56 = vld [vmem:[#allocation11 + $0x2a8] sm:$0xf0]  ;;  %v2516_v25 = vld [vmem:[#allocation11 + $0x218] sm:$0xf0] }
 0x21e   :  { %v2988_v28 = vld [vmem:[#allocation11 + $0x324] sm:$0xf]  ;;  %v2652_v17 = vld [vmem:[#allocation11 + $0x328] sm:$0xf0]  ;;  %v2970_v30 = vld [vmem:[#allocation11 + $0x294] sm:$0xf] }
 0x21f   :  { %1661 = vmatpush.bf16.msra.mxu0 %v2271_v53  ;;  %1674 = vmatpush.bf16.msra.mxu1 %v2335_v54  ;;  %v2994_v53 = vld [vmem:[#allocation11 + $0x354] sm:$0xf]  ;;  %v2676_v54 = vld [vmem:[#allocation11 + $0x358] sm:$0xf0]  ;;  %v3000_v55 = vld [vmem:[#allocation11 + $0x384] sm:$0xf] }
 0x220   :  { %1687 = vmatpush.bf16.msra.mxu2 %v2399_v15  ;;  %1700 = vmatpush.bf16.msra.mxu3 %v2463_v51  ;;  %v2551_v15 = vor.u32 %v2962_v50, %v2548_v26  ;;  %v2615_v51 = vor.u32 %v2978_v27, %v2612_v44  ;;  %v2679_v59 = vor.u32 %v2994_v53, %v2676_v54  ;;  %v2580_v37 = vld [vmem:[#allocation11 + $0x298] sm:$0xf0]  ;;  %v2986_v36 = vld [vmem:[#allocation11 + $0x314] sm:$0xf]  ;;  %v2952_v50 = vld [vmem:[#allocation11 + $0x204] sm:$0xf] }
 0x221   :  { %v2644_v38 = vld [vmem:[#allocation11 + $0x318] sm:$0xf0]  ;;  %v3002_v62 = vld [vmem:[#allocation11 + $0x394] sm:$0xf]  ;;  %v2508_v26 = vld [vmem:[#allocation11 + $0x208] sm:$0xf0] }
 0x222   :  { %v2708_v41 = vld [vmem:[#allocation11 + $0x398] sm:$0xf0]  ;;  %v2968_v27 = vld [vmem:[#allocation11 + $0x284] sm:$0xf]  ;;  %v2572_v44 = vld [vmem:[#allocation11 + $0x288] sm:$0xf0] }
 0x223   :  { %1662 = vmatpush.bf16.msra.mxu0 %v2263_v0  ;;  %1675 = vmatpush.bf16.msra.mxu1 %v2327_v1  ;;  %v2732_v0 = vld [vmem:[#allocation11 + $0x3c8] sm:$0xf0]  ;;  %v2958_v1 = vld [vmem:[#allocation11 + $0x234] sm:$0xf]  ;;  %v2984_v53 = vld [vmem:[#allocation11 + $0x304] sm:$0xf] }
 0x224   :  { %1688 = vmatpush.bf16.msra.mxu2 %v2391_v5  ;;  %1701 = vmatpush.bf16.msra.mxu3 %v2455_v24  ;;  %v2735_v4 = vor.u32 %v3008_v63, %v2732_v0  ;;  %v2974_v5 = vld [vmem:[#allocation11 + $0x2b4] sm:$0xf]  ;;  %v2596_v24 = vld [vmem:[#allocation11 + $0x2b8] sm:$0xf0]  ;;  %v2535_v46 = vor.u32 %v2958_v1, %v2532_v2  ;;  %v2636_v54 = vld [vmem:[#allocation11 + $0x308] sm:$0xf0] }
 0x225   :  { %v2599_v49 = vor.u32 %v2974_v5, %v2596_v24  ;;  %v2700_v14 = vld [vmem:[#allocation11 + $0x388] sm:$0xf0] }
 0x227   :  { %1663 = vmatpush.bf16.msra.mxu0 %v2255_v48  ;;  %1676 = vmatpush.bf16.msra.mxu1 %v2319_v13  ;;  %v2727_v48 = vor.u32 %v3006_v9, %v2724_v10  ;;  %v2972_v13 = vld [vmem:[#allocation11 + $0x2a4] sm:$0xf]  ;;  %v906_v9 = vld [vmem:[%s3528_s6] sm:$0x3] }
 0x228   :  { %1689 = vmatpush.bf16.msra.mxu2 %v2383_v18  ;;  %1702 = vmatpush.bf16.msra.mxu3 %v2447_v19  ;;  %v3004_v18 = vld [vmem:[#allocation11 + $0x3a4] sm:$0xf]  ;;  %v2716_v19 = vld [vmem:[#allocation11 + $0x3a8] sm:$0xf0]  ;;  %v908_v10 = vperm.slane %v906_v9, 0 }
 0x22a   :  { %1664 = vmatmul.bf16.vlgmr.msra.gmra.mxu0 %v3467_v31  ;;  %1677 = vmatmul.bf16.vlgmr.msra.gmra.mxu1 %v3469_v32  ;;  %v2976_v31 = vld [vmem:[#allocation11 + $0x2c4] sm:$0xf] }
 0x22b   :  { %1708 = vmatpush.bf16.msrb.mxu0 %v2567_v20  ;;  %1721 = vmatpush.bf16.msrb.mxu1 %v2631_v22  ;;  %v2992_v32 = vld [vmem:[#allocation11 + $0x344] sm:$0xf]  ;;  %v2527_v20 = vor.u32 %v2956_v11, %v2524_v47  ;;  %v2591_v22 = vor.u32 %v2972_v13, %v2588_v56 }
 0x22c   :  { %1734 = vmatpush.bf16.msrb.mxu2 %v2695_v33  ;;  %1747 = vmatpush.bf16.msrb.mxu3 %v2759_v29  ;;  %v2671_v3 = vor.u32 %v2992_v32, %v2668_v21  ;;  %v2655_v33 = vor.u32 %v2988_v28, %v2652_v17  ;;  %v2719_v29 = vor.u32 %v3004_v18, %v2716_v19 }
 0x22d   :  { %1690 = vmatmul.bf16.vlgmr.msra.gmra.mxu2 %v3471_v34  ;;  %1703 = vmatmul.bf16.vlgmr.msra.gmra.mxu3 %v3473_v35  ;;  %v2543_v34 = vor.u32 %v2960_v57, %v2540_v58  ;;  %v2607_v35 = vor.u32 %v2976_v31, %v2604_v61  ;;  %v2639_v57 = vor.u32 %v2984_v53, %v2636_v54 }
 0x22e   :  { %v2703_v58 = vor.u32 %v3000_v55, %v2700_v14 }
 0x22f   :  { %1709 = vmatpush.bf16.msrb.mxu0 %v2559_v6  ;;  %1722 = vmatpush.bf16.msrb.mxu1 %v2623_v45  ;;  %v2519_v6 = vor.u32 %v2954_v23, %v2516_v25  ;;  %v2583_v45 = vor.u32 %v2970_v30, %v2580_v37 }
 0x230   :  { %1735 = vmatpush.bf16.msrb.mxu2 %v2687_v16  ;;  %1748 = vmatpush.bf16.msrb.mxu3 %v2751_v52  ;;  %v2647_v16 = vor.u32 %v2986_v36, %v2644_v38  ;;  %v2711_v52 = vor.u32 %v3002_v62, %v2708_v41 }
 0x233   :  { %1710 = vmatpush.bf16.msrb.mxu0 %v2551_v15  ;;  %1723 = vmatpush.bf16.msrb.mxu1 %v2615_v51  ;;  %v2511_v15 = vor.u32 %v2952_v50, %v2508_v26  ;;  %v2575_v51 = vor.u32 %v2968_v27, %v2572_v44 }
 0x234   :  { %1736 = vmatpush.bf16.msrb.mxu2 %v2679_v59  ;;  %1749 = vmatpush.bf16.msrb.mxu3 %v2743_v60 }
 0x237   :  { %1711 = vmatpush.bf16.msrb.mxu0 %v2543_v34  ;;  %1724 = vmatpush.bf16.msrb.mxu1 %v2607_v35 }
 0x238   :  { %1737 = vmatpush.bf16.msrb.mxu2 %v2671_v3  ;;  %1750 = vmatpush.bf16.msrb.mxu3 %v2735_v4 }
 0x23b   :  { %1712 = vmatpush.bf16.msrb.mxu0 %v2535_v46  ;;  %1725 = vmatpush.bf16.msrb.mxu1 %v2599_v49  ;;  %v909_v46 = vperm.slane %v906_v9, 1 }
 0x23c   :  { %1738 = vmatpush.bf16.msrb.mxu2 %v2663_v12  ;;  %1751 = vmatpush.bf16.msrb.mxu3 %v2727_v48 }
 0x23f   :  { %1713 = vmatpush.bf16.msrb.mxu0 %v2527_v20  ;;  %1726 = vmatpush.bf16.msrb.mxu1 %v2591_v22 }
 0x240   :  { %1739 = vmatpush.bf16.msrb.mxu2 %v2655_v33  ;;  %1752 = vmatpush.bf16.msrb.mxu3 %v2719_v29 }
 0x243   :  { %1714 = vmatpush.bf16.msrb.mxu0 %v2519_v6  ;;  %1727 = vmatpush.bf16.msrb.mxu1 %v2583_v45 }
 0x244   :  { %1740 = vmatpush.bf16.msrb.mxu2 %v2647_v16  ;;  %1753 = vmatpush.bf16.msrb.mxu3 %v2711_v52  ;;  %v3275_v16 = vmov 256.0  }
 0x245   :  { %3053 = vrcp.f32 %v3275_v16 }
 0x247   :  { %1715 = vmatpush.bf16.msrb.mxu0 %v2511_v15  ;;  %1728 = vmatpush.bf16.msrb.mxu1 %v2575_v51 }
 0x248   :  { %1741 = vmatpush.bf16.msrb.mxu2 %v2639_v57  ;;  %1754 = vmatpush.bf16.msrb.mxu3 %v2703_v58 }
 0x24a   :  { %1716 = vmatmul.bf16.vlgmr.msrb.gmra.mxu0 %v3487_v39  ;;  %1729 = vmatmul.bf16.vlgmr.msrb.gmra.mxu1 %v3489_v40 }
 0x24b   :  { %1742 = vmatmul.bf16.vlgmr.msrb.gmra.mxu2 %v3491_v42  ;;  %1755 = vmatmul.bf16.vlgmr.msrb.gmra.mxu3 %v3493_v43  ;;  %v3054_v52 = vpop.eup %3053 }
 0x24c   :  { %v1764_v27 = vmul.f32 256.0, %v3054_v52  ;;  %vm1768_vm4 = vweird.f32 %v3054_v52 }
 0x24e   :  { %v1765_v44 = vsub.f32 1.0, %v1764_v27 }
 0x250   :  { %v1766_v53 = vmul.f32 %v3054_v52, %v1765_v44 }
 0x252   :  { %v1767_v54 = vadd.f32 %v3054_v52, %v1766_v53 }
 0x254   :  { %v1769_v55 = vsel %vm1768_vm4, %v3054_v52, %v1767_v54 }
 0x286   :  { %v1561_v59 = vpop.f32.mrf.mxu0  ;;  %v1574_v60 = vpop.f32.mrf.mxu1 }
 0x287   :  { %v1562_v47 = vadd.f32 %v1561_v59, %v908_v10 }
 0x289   :  { %v1575_v48 = vadd.f32 %v1574_v60, %v1562_v47 }
 0x28d   :  { %v1587_v31 = vpop.f32.mrf.mxu2  ;;  %v1600_v61 = vpop.f32.mrf.mxu3 }
 0x28e   :  { %v1563_v32 = vpop.f32.mrf.mxu0  ;;  %v1576_v21 = vpop.f32.mrf.mxu1  ;;  %v1588_v13 = vadd.f32 %v1587_v31, %v1575_v48  ;;  %v3023_v31 = vld [vmem:[#allocation13 + $0x38] sm:$0xff] }
 0x28f   :  { %1944 = vmatpush.bf16.msra.mxu0 %v3023_v31  ;;  %v3022_v32 = vld [vmem:[#allocation13 + $0x30] sm:$0xff] }
 0x290   :  { %v1601_v17 = vadd.f32 %v1600_v61, %v1588_v13  ;;  %v3031_v61 = vld [vmem:[#allocation13 + $0x78] sm:$0xff]  ;;  %v3030_v21 = vld [vmem:[#allocation13 + $0x70] sm:$0xff] }
 0x291   :  { %1957 = vmatpush.bf16.msra.mxu1 %v3031_v61 }
 0x293   :  { %1945 = vmatpush.bf16.msra.mxu0 %v3022_v32 }
 0x295   :  { %v1589_v63 = vpop.f32.mrf.mxu2  ;;  %v1602_v0 = vpop.f32.mrf.mxu3  ;;  %1958 = vmatpush.bf16.msra.mxu1 %v3030_v21 }
 0x296   :  { %v1613_v34 = vpop.f32.mrf.mxu0  ;;  %v1626_v35 = vpop.f32.mrf.mxu1  ;;  %v3021_v63 = vld [vmem:[#allocation13 + $0x28] sm:$0xff] }
 0x297   :  { %v1614_v18 = vadd.f32 %v1613_v34, %v1601_v17  ;;  %v3029_v0 = vld [vmem:[#allocation13 + $0x68] sm:$0xff]  ;;  %1946 = vmatpush.bf16.msra.mxu0 %v3021_v63  ;;  %v3020_v34 = vld [vmem:[#allocation13 + $0x20] sm:$0xff] }
 0x299   :  { %v1627_v25 = vadd.f32 %v1626_v35, %v1614_v18  ;;  %1959 = vmatpush.bf16.msra.mxu1 %v3029_v0  ;;  %v3028_v35 = vld [vmem:[#allocation13 + $0x60] sm:$0xff] }
 0x29b   :  { %1947 = vmatpush.bf16.msra.mxu0 %v3020_v34 }
 0x29d   :  { %v1639_v1 = vpop.f32.mrf.mxu2  ;;  %v1652_v2 = vpop.f32.mrf.mxu3  ;;  %1960 = vmatpush.bf16.msra.mxu1 %v3028_v35 }
 0x29e   :  { %v1615_v3 = vpop.f32.mrf.mxu0  ;;  %v1628_v39 = vpop.f32.mrf.mxu1  ;;  %v1640_v33 = vadd.f32 %v1639_v1, %v1627_v25  ;;  %v3019_v1 = vld [vmem:[#allocation13 + $0x18] sm:$0xff] }
 0x29f   :  { %1948 = vmatpush.bf16.msra.mxu0 %v3019_v1  ;;  %v3018_v3 = vld [vmem:[#allocation13 + $0x10] sm:$0xff] }
 0x2a0   :  { %v1653_v41 = vadd.f32 %v1652_v2, %v1640_v33  ;;  %v3027_v2 = vld [vmem:[#allocation13 + $0x58] sm:$0xff]  ;;  %v3026_v39 = vld [vmem:[#allocation13 + $0x50] sm:$0xff] }
 0x2a1   :  { %1961 = vmatpush.bf16.msra.mxu1 %v3027_v2 }
 0x2a3   :  { %1949 = vmatpush.bf16.msra.mxu0 %v3018_v3 }
 0x2a5   :  { %v1641_v4 = vpop.f32.mrf.mxu2  ;;  %v1654_v40 = vpop.f32.mrf.mxu3  ;;  %1962 = vmatpush.bf16.msra.mxu1 %v3026_v39 }
 0x2a6   :  { %v3017_v4 = vld [vmem:[#allocation13 + $0x8] sm:$0xff] }
 0x2a7   :  { %v1665_v5 = vpop.f32.mrf.mxu0  ;;  %v1678_v42 = vpop.f32.mrf.mxu1  ;;  %v3025_v40 = vld [vmem:[#allocation13 + $0x48] sm:$0xff]  ;;  %1950 = vmatpush.bf16.msra.mxu0 %v3017_v4 }
 0x2a8   :  { %v1666_v12 = vadd.f32 %v1665_v5, %v909_v46  ;;  %v3016_v5 = vld [vmem:[#allocation13] sm:$0xff] }
 0x2a9   :  { %1963 = vmatpush.bf16.msra.mxu1 %v3025_v40 }
 0x2aa   :  { %v1679_v56 = vadd.f32 %v1678_v42, %v1666_v12  ;;  %v3024_v42 = vld [vmem:[#allocation13 + $0x40] sm:$0xff] }
 0x2ab   :  { %1951 = vmatpush.bf16.msra.mxu0 %v3016_v5  ;;  %v1800_v12 = vld [vmem:[%s3530_s8] sm:$0x3] }
 0x2ac   :  { %v1802_v18 = vperm.slane %v1800_v12, 0 }
 0x2ad   :  { %1964 = vmatpush.bf16.msra.mxu1 %v3024_v42 }
 0x2af   :  { %v1667_v7 = vpop.f32.mrf.mxu0  ;;  %v1680_v8 = vpop.f32.mrf.mxu1 }
 0x2b0   :  { %v1691_v24 = vpop.f32.mrf.mxu2  ;;  %v1704_v43 = vpop.f32.mrf.mxu3 }
 0x2b1   :  { %v1692_v28 = vadd.f32 %v1691_v24, %v1679_v56 }
 0x2b3   :  { %v1705_v19 = vadd.f32 %v1704_v43, %v1692_v28 }
 0x2b8   :  { %v1693_v49 = vpop.f32.mrf.mxu2  ;;  %v1706_v11 = vpop.f32.mrf.mxu3 }
 0x2b9   :  { %v1792_v11 = vld [vmem:[%s3529_s7] sm:$0x3] }
 0x2ba   :  { %v1794_v48 = vperm.slane %v1792_v11, 0  ;;  %v1795_v13 = vperm.slane %v1792_v11, 1 }
 0x2c7   :  { %v1717_v20 = vpop.f32.mrf.mxu0  ;;  %v1730_v22 = vpop.f32.mrf.mxu1 }
 0x2c8   :  { %v1718_v23 = vadd.f32 %v1717_v20, %v1705_v19  ;;  %v1803_v19 = vperm.slane %v1800_v12, 1 }
 0x2ca   :  { %v1731_v29 = vadd.f32 %v1730_v22, %v1718_v23 }
 0x2ce   :  { %v1743_v30 = vpop.f32.mrf.mxu2  ;;  %v1756_v37 = vpop.f32.mrf.mxu3 }
 0x2cf   :  { %v1744_v36 = vadd.f32 %v1743_v30, %v1731_v29  ;;  %v1719_v38 = vpop.f32.mrf.mxu0  ;;  %v1732_v62 = vpop.f32.mrf.mxu1 }
 0x2d1   :  { %v1757_v6 = vadd.f32 %v1756_v37, %v1744_v36  ;;  %v3048_v36 = vld [vmem:[%s3532_s10] ss:$0 sm:$0xff] }
 0x2d3   :  { %v1760_v45 = vadd.f32 %v1757_v6, %v1653_v41 }
 0x2d5   :  { %1761 = vadd.xlane.f32.xlu1 %v1760_v45 }
 0x2d6   :  { %v1745_v50 = vpop.f32.mrf.mxu2  ;;  %v1758_v26 = vpop.f32.mrf.mxu3 }
 0x348   :  { %v1762_v14 = vpop.xlane.xlu1 %1761 }
 0x349   :  { %v1770_v15 = vmul.f32 %v1769_v55, %v1762_v14 }
 0x34b   :  { %v1771_v51 = vsub.f32 %v1653_v41, %v1770_v15  ;;  %v1772_v57 = vsub.f32 %v1757_v6, %v1770_v15 }
 0x34d   :  { %v1773_v58 = vmul.f32 %v1771_v51, %v1771_v51  ;;  %v1774_v59 = vmul.f32 %v1772_v57, %v1772_v57 }
 0x34f   :  { %v1775_v60 = vadd.f32 %v1774_v59, %v1773_v58 }
 0x351   :  { %1776 = vadd.xlane.f32.xlu1 %v1775_v60 }
 0x3c4   :  { %v1777_v24 = vpop.xlane.xlu1 %1776 }
 0x3c5   :  { %v1778_v43 = vmul.f32 %v1777_v24, %v1769_v55 }
 0x3c7   :  { %v1779_v7 = vadd.f32 1e-05, %v1778_v43 }
 0x3c9   :  { %3055 = vrsqrt.f32 %v1779_v7  ;;  %vm1786_vm6 = vweird.f32 %v1779_v7 }
 0x3cf   :  { %v3056_v8 = vpop.eup %3055 }
 0x3d0   :  { %v1781_v9 = vmul.f32 %v3056_v8, %v1779_v7  ;;  %vm1787_vm5 = vweird.f32 %v3056_v8 }
 0x3d1   :  { %vm1788_vm7 = vmor %vm1786_vm6, %vm1787_vm5 }
 0x3d2   :  { %v1782_v10 = vmul.f32 %v3056_v8, %v1781_v9 }
 0x3d4   :  { %v1783_v46 = vmul.f32 0.5, %v1782_v10 }
 0x3d6   :  { %v1784_v49 = vsub.f32 1.5, %v1783_v46 }
 0x3d8   :  { %v1785_v47 = vmul.f32 %v3056_v8, %v1784_v49 }
 0x3da   :  { %v1789_v56 = vsel %vm1788_vm7, %v3056_v8, %v1785_v47 }
 0x3db   :  { %v1790_v28 = vmul.f32 %v1789_v56, %v1771_v51  ;;  %v1791_v17 = vmul.f32 %v1789_v56, %v1772_v57 }
 0x3dd   :  { %v1798_v20 = vmul.f32 %v1794_v48, %v1790_v28  ;;  %v1799_v22 = vmul.f32 %v1795_v13, %v1791_v17 }
 0x3df   :  { %v1806_v23 = vadd.f32 %v1802_v18, %v1798_v20  ;;  %v1807_v25 = vadd.f32 %v1803_v19, %v1799_v22 }
 0x3e1   :  { %v1808_v33 = vmax.f32 %v1806_v23, 0.0  ;;  %v1809_v29 = vmax.f32 %v1807_v25, 0.0 }
 0x3e3   :  { %v1810_v30 = vpack.c.bf16 %v1808_v33, %v1808_v33  ;;  %v1811_v37 = vpack.c.bf16 %v1809_v29, %v1809_v29 }
 0x3e5   :  { %1952 = vmatmul.bf16.vlgmr.msra.gmra.mxu0 %v1810_v30  ;;  %1965 = vmatmul.bf16.vlgmr.msra.gmra.mxu1 %v1811_v37 }
 0x462   :  { %v1953_v38 = vpop.f32.mrf.mxu0  ;;  %v1966_v62 = vpop.f32.mrf.mxu1 }
 0x463   :  { %v1954_v41 = vadd.f32 %v3048_v36, %v1953_v38 }
 0x465   :  { %v1967_v6 = vadd.f32 %v1966_v62, %v1954_v41 }
 0x467   :  { %3057 = vtanh.f32 %v1967_v6 }
 0x46a   :  { %v1955_v45 = vpop.f32.mrf.mxu0  ;;  %v1968_v50 = vpop.f32.mrf.mxu1 }
 0x46d   :  { %v3058_v26 = vpop.eup %3057 }
 0x46e   :  { %1971 = vst [vmem:[#allocation14] sm:$0xff] %v3058_v26 }
 0x46f   :  { %1982 = dma.vmem_to_hbm [thread:$0]  %s1978_s17, 128, %s1980_s20, [#allocation4]  }
 0x470   :  { %3259 = dma.done.wait [#allocation4], 128  }
 0x471   :  { %3260 = vsyncadd [#allocation4], 4294967168 }
 0x472   :  { %1987 = vsyncpa [#allocation3], 1 }
 0x473   :  { %1988 = vsyncpa [#allocation6], 1 }
 0x474   :  { %1989 = vsyncpa [#allocation9], 1 }
 0x475   :  { %1990 = vsyncpa [#allocation12], 1 }
 0x476   :  { %1991 = vsyncpa [#allocation4], 1 }

</bundles_post_ra>
